<compile_context>
chip_gen: v7x
topology: tpu7x:2x2x1
jax: 0.10.0
libtpu: 0.0.40
codegen_flags: <defaults>
</compile_context>

<pallas_src>
import functools
import math

import jax
import jax.numpy as jnp
from jax.experimental import pallas as pl
from jax.experimental.pallas import tpu as pltpu

EPS = 1e-6

_COMPILER_PARAMS = pltpu.CompilerParams(
    dimension_semantics=("parallel",),          # batch grid axis -> both TCs on v7x
    vmem_limit_bytes=48 * 1024 * 1024,          # below v7x 64 MiB (and v5e/v6e 128 MiB)
)


# ------------------------------ kernel helpers ------------------------------ #

def _layer_norm(x, g, b):
    # f32 statistics on all generations (v5e has no bf16 VPU/EUP path)
    mean = jnp.mean(x, axis=-1, keepdims=True)
    var = jnp.mean(jnp.square(x - mean), axis=-1, keepdims=True)
    return (x - mean) * jax.lax.rsqrt(var + EPS) * g + b


def _mha_core(x, xn, kv, mask, wq, bq, wk, bk, wv, bv, wo, bo, *, h):
    """Fused multi-head attention + out-proj + residual for one batch item.

    x, xn: (Sq, D) f32.  kv: (Sk, D) f32.  mask: (Sq, Sk) additive f32.
    Weights are bf16 (D, D); biases f32 (1, D).  1/sqrt(dh) already folded
    into wq/bq.  Returns x + Attn(xn, kv) @ Wo + bo, f32.
    """
    sq, d = xn.shape
    dh = d // h
    xb = xn.astype(jnp.bfloat16)
    kvb = kv.astype(jnp.bfloat16)

    # Fused projections for ALL heads at once (lane dim = d_model, not d_head).
    q = jnp.dot(xb, wq, preferred_element_type=jnp.float32) + bq
    k = jnp.dot(kvb, wk, preferred_element_type=jnp.float32) + bk
    v = jnp.dot(kvb, wv, preferred_element_type=jnp.float32) + bv

    acc = x + bo                                   # residual + output bias (f32)

    dn_t = (((1,), (1,)), ((), ()))                # A @ B^T (contract last dims)
    dn_n = (((1,), (0,)), ((), ()))                # A @ B

    # Static unroll over heads: all heads handled inside one grid step, and the
    # out-projection is accumulated per head (out = x + bo + sum_h o_h @ Wo[h]).
    for head in range(h):
        sl = slice(head * dh, (head + 1) * dh)
        qh = q[:, sl].astype(jnp.bfloat16)
        kh = k[:, sl].astype(jnp.bfloat16)
        vh = v[:, sl].astype(jnp.bfloat16)

        s = jax.lax.dot_general(qh, kh, dn_t,
                                preferred_element_type=jnp.float32) + mask
        s = s - jnp.max(s, axis=-1, keepdims=True)
        p = jnp.exp(s)
        p = p * pl.reciprocal(jnp.sum(p, axis=-1, keepdims=True), approx=True)

        oh = jax.lax.dot_general(p.astype(jnp.bfloat16), vh, dn_n,
                                 preferred_element_type=jnp.float32)
        acc = acc + jax.lax.dot_general(oh.astype(jnp.bfloat16), wo[sl, :], dn_n,
                                        preferred_element_type=jnp.float32)
    return acc


# -------------------------------- kernels ----------------------------------- #

def _decoder_layer_kernel(
        x_ref, kv_ref, tmask_ref, smask_ref,
        ln1_g_ref, ln1_b_ref,
        sa_wq_ref, sa_bq_ref, sa_wk_ref, sa_bk_ref,
        sa_wv_ref, sa_bv_ref, sa_wo_ref, sa_bo_ref,
        ln2_g_ref, ln2_b_ref,
        ca_wq_ref, ca_bq_ref, ca_wk_ref, ca_bk_ref,
        ca_wv_ref, ca_bv_ref, ca_wo_ref, ca_bo_ref,
        ln3_g_ref, ln3_b_ref, w1_ref, b1_ref, w2_ref, b2_ref,
        fin_g_ref, fin_b_ref,
        o_ref, *, h, apply_final_ln):
    """One full decoder layer (self-attn + cross-attn + FFN, pre-norm residual),
    optionally followed by the stack's final LayerNorm (fused for last layer)."""
    x = x_ref[0]          # (Sq, D) f32 residual stream, stays in VMEM/vregs
    kv = kv_ref[0]        # (Sk, D) f32 encoder output

    # ---- self-attention block ----
    xn = _layer_norm(x, ln1_g_ref[...], ln1_b_ref[...])
    x = _mha_core(x, xn, xn, tmask_ref[...],
                  sa_wq_ref[...], sa_bq_ref[...], sa_wk_ref[...], sa_bk_ref[...],
                  sa_wv_ref[...], sa_bv_ref[...], sa_wo_ref[...], sa_bo_ref[...],
                  h=h)

    # ---- cross-attention block ----
    xn = _layer_norm(x, ln2_g_ref[...], ln2_b_ref[...])
    x = _mha_core(x, xn, kv, smask_ref[...],
                  ca_wq_ref[...], ca_bq_ref[...], ca_wk_ref[...], ca_bk_ref[...],
                  ca_wv_ref[...], ca_bv_ref[...], ca_wo_ref[...], ca_bo_ref[...],
                  h=h)

    # ---- feed-forward block ----
    xn = _layer_norm(x, ln3_g_ref[...], ln3_b_ref[...])
    hid = jnp.dot(xn.astype(jnp.bfloat16), w1_ref[...],
                  preferred_element_type=jnp.float32) + b1_ref[...]
    hid = jnp.maximum(hid, 0.0)                    # ReLU in f32
    y = jnp.dot(hid.astype(jnp.bfloat16), w2_ref[...],
                preferred_element_type=jnp.float32) + b2_ref[...]
    x = x + y

    # ---- final stack LayerNorm, fused into the last layer's kernel ----
    if apply_final_ln:
        x = _layer_norm(x, fin_g_ref[...], fin_b_ref[...])

    o_ref[0] = x


def _final_norm_kernel(x_ref, g_ref, b_ref, o_ref):
    # Only used for the degenerate num_layers == 0 case.
    o_ref[0] = _layer_norm(x_ref[0], g_ref[...], b_ref[...])


# ------------------------------ pallas wrappers ------------------------------ #

def _resident(arr):
    # full-array block with a constant index_map -> stays VMEM-resident across
    # the batch grid (no per-step re-DMA; masks/weights loaded once).
    nd = arr.ndim
    return pl.BlockSpec(arr.shape, lambda b, _n=nd: (0,) * _n)


def _batch_spec(s, d):
    return pl.BlockSpec((1, s, d), lambda b: (b, 0, 0))


def decoder_layer_block(x, kv, tgt_mask, src_mask, layer_args, fin_g, fin_b,
                        *, h, apply_final_ln):
    B, Sq, D = x.shape
    Sk = kv.shape[1]
    args = (x, kv, tgt_mask, src_mask) + tuple(layer_args) + (fin_g, fin_b)
    in_specs = ([_batch_spec(Sq, D), _batch_spec(Sk, D)]
                + [_resident(a) for a in args[2:]])
    return pl.pallas_call(
        functools.partial(_decoder_layer_kernel, h=h,
                          apply_final_ln=apply_final_ln),
        out_shape=jax.ShapeDtypeStruct((B, Sq, D), jnp.float32),
        grid=(B,),
        in_specs=in_specs,
        out_specs=_batch_spec(Sq, D),
        compiler_params=_COMPILER_PARAMS,
    )(*args)


def final_norm(x, g, b):
    B, S, D = x.shape
    return pl.pallas_call(
        _final_norm_kernel,
        out_shape=jax.ShapeDtypeStruct((B, S, D), jnp.float32),
        grid=(B,),
        in_specs=[_batch_spec(S, D), _resident(g), _resident(b)],
        out_specs=_batch_spec(S, D),
        compiler_params=_COMPILER_PARAMS,
    )(x, g, b)


# -------------------------------- model glue --------------------------------- #

def _prep_mha(p, scale):
    # bf16 weights for the MXU (halves HBM/VMEM traffic); f32 biases.
    # 1/sqrt(dh) folded into the query projection (zero in-kernel cost).
    return (
        (p["wq"] * scale).astype(jnp.bfloat16), (p["bq"] * scale).reshape(1, -1),
        p["wk"].astype(jnp.bfloat16), p["bk"].reshape(1, -1),
        p["wv"].astype(jnp.bfloat16), p["bv"].reshape(1, -1),
        p["wo"].astype(jnp.bfloat16), p["bo"].reshape(1, -1),
    )


def _prep_layer(lp, d_model, scale):
    # Flat, kernel-argument-ordered tuple of per-layer parameters.
    return (
        (lp["ln1_g"].reshape(1, d_model), lp["ln1_b"].reshape(1, d_model))
        + _prep_mha(lp["self_attn"], scale)
        + (lp["ln2_g"].reshape(1, d_model), lp["ln2_b"].reshape(1, d_model))
        + _prep_mha(lp["cross_attn"], scale)
        + (lp["ln3_g"].reshape(1, d_model), lp["ln3_b"].reshape(1, d_model),
           lp["w1"].astype(jnp.bfloat16), lp["b1"].reshape(1, -1),
           lp["w2"].astype(jnp.bfloat16), lp["b2"].reshape(1, -1))
    )


@functools.partial(jax.jit, static_argnames=("h",))
def decoder_forward(params, x, encoder_output, src_mask_add=None,
                    tgt_mask_add=None, *, h):
    # dropout layers are the identity in eval mode (deterministic forward)
    B, Sq, D = x.shape
    Sk = encoder_output.shape[1]
    if tgt_mask_add is None:
        tgt_mask_add = jnp.zeros((Sq, Sq), jnp.float32)
    if src_mask_add is None:
        src_mask_add = jnp.zeros((Sq, Sk), jnp.float32)
    scale = 1.0 / math.sqrt(D // h)

    fin_g = params["final_g"].reshape(1, D)
    fin_b = params["final_b"].reshape(1, D)

    layers = params["layers"]
    n_layers = len(layers)
    if n_layers == 0:
        return final_norm(x, fin_g, fin_b)

    for i, lp in enumerate(layers):
        x = decoder_layer_block(
            x, encoder_output, tgt_mask_add, src_mask_add,
            _prep_layer(lp, D, scale), fin_g, fin_b,
            h=h, apply_final_ln=(i == n_layers - 1))
    return x


# ---------------------------- deterministic params --------------------------- #

def _dense(key, din, dout):
    # synthetic deterministic init (not a checkpoint load)
    w = jax.random.normal(key, (din, dout), jnp.float32) * 0.02
    b = jnp.zeros((dout,), jnp.float32)
    return w, b


def init_params(key, d_model, h, d_ff, num_layers):
    layers = []
    layer_keys = jax.random.split(key, num_layers + 1)
    for lk in layer_keys[:num_layers]:
        ks = jax.random.split(lk, 10)

        def mha(k0, k1, k2, k3):
            wq, bq = _dense(k0, d_model, d_model)
            wk, bk = _dense(k1, d_model, d_model)
            wv, bv = _dense(k2, d_model, d_model)
            wo, bo = _dense(k3, d_model, d_model)
            return dict(wq=wq, bq=bq, wk=wk, bk=bk, wv=wv, bv=bv, wo=wo, bo=bo)

        w1, b1 = _dense(ks[8], d_model, d_ff)
        w2, b2 = _dense(ks[9], d_ff, d_model)
        layers.append(dict(
            self_attn=mha(ks[0], ks[1], ks[2], ks[3]),
            cross_attn=mha(ks[4], ks[5], ks[6], ks[7]),
            w1=w1, b1=b1, w2=w2, b2=b2,
            ln1_g=jnp.ones((d_model,), jnp.float32), ln1_b=jnp.zeros((d_model,), jnp.float32),
            ln2_g=jnp.ones((d_model,), jnp.float32), ln2_b=jnp.zeros((d_model,), jnp.float32),
            ln3_g=jnp.ones((d_model,), jnp.float32), ln3_b=jnp.zeros((d_model,), jnp.float32),
        ))
    return dict(
        layers=layers,
        final_g=jnp.ones((d_model,), jnp.float32),
        final_b=jnp.zeros((d_model,), jnp.float32),
    )


# ----------------------------------- main ------------------------------------ #

if __name__ == "__main__":
    d_model, h, d_ff, num_layers = 32, 4, 64, 2
    B, S_tgt, S_src = 2, 8, 8

    key = jax.random.PRNGKey(0)
    k_p, k_x, k_e = jax.random.split(key, 3)

    params = init_params(k_p, d_model, h, d_ff, num_layers)
    x = jax.random.normal(k_x, (B, S_tgt, d_model), jnp.float32)
    encoder_output = jax.random.normal(k_e, (B, S_src, d_model), jnp.float32)

    # tgt_mask: causal (masked positions get -1e9 before softmax); src_mask: None
    causal = jnp.tril(jnp.ones((S_tgt, S_tgt), jnp.float32))
    tgt_mask_add = jnp.where(causal == 0, -1e9, 0.0).astype(jnp.float32)

    out = decoder_forward(params, x, encoder_output,
                          None, tgt_mask_add, h=h)
    out = jax.block_until_ready(out)
    assert out.shape == (B, S_tgt, d_model) and out.dtype == jnp.float32
    assert bool(jnp.all(jnp.isfinite(out)))
    print("KERNEL_OK")
</pallas_src>

<mosaic_0001>
module attributes {stable_mosaic.version = 11 : i64} {
  func.func @_decoder_layer_kernel(%arg0: i32, %arg1: memref<1x8x32xf32, #tpu.memory_space<vmem>>, %arg2: memref<1x8x32xf32, #tpu.memory_space<vmem>>, %arg3: memref<8x8xf32, #tpu.memory_space<vmem>>, %arg4: memref<8x8xf32, #tpu.memory_space<vmem>>, %arg5: memref<1x32xf32, #tpu.memory_space<vmem>>, %arg6: memref<1x32xf32, #tpu.memory_space<vmem>>, %arg7: memref<32x32xbf16, #tpu.memory_space<vmem>>, %arg8: memref<1x32xf32, #tpu.memory_space<vmem>>, %arg9: memref<32x32xbf16, #tpu.memory_space<vmem>>, %arg10: memref<1x32xf32, #tpu.memory_space<vmem>>, %arg11: memref<32x32xbf16, #tpu.memory_space<vmem>>, %arg12: memref<1x32xf32, #tpu.memory_space<vmem>>, %arg13: memref<32x32xbf16, #tpu.memory_space<vmem>>, %arg14: memref<1x32xf32, #tpu.memory_space<vmem>>, %arg15: memref<1x32xf32, #tpu.memory_space<vmem>>, %arg16: memref<1x32xf32, #tpu.memory_space<vmem>>, %arg17: memref<32x32xbf16, #tpu.memory_space<vmem>>, %arg18: memref<1x32xf32, #tpu.memory_space<vmem>>, %arg19: memref<32x32xbf16, #tpu.memory_space<vmem>>, %arg20: memref<1x32xf32, #tpu.memory_space<vmem>>, %arg21: memref<32x32xbf16, #tpu.memory_space<vmem>>, %arg22: memref<1x32xf32, #tpu.memory_space<vmem>>, %arg23: memref<32x32xbf16, #tpu.memory_space<vmem>>, %arg24: memref<1x32xf32, #tpu.memory_space<vmem>>, %arg25: memref<1x32xf32, #tpu.memory_space<vmem>>, %arg26: memref<1x32xf32, #tpu.memory_space<vmem>>, %arg27: memref<32x64xbf16, #tpu.memory_space<vmem>>, %arg28: memref<1x64xf32, #tpu.memory_space<vmem>>, %arg29: memref<64x32xbf16, #tpu.memory_space<vmem>>, %arg30: memref<1x32xf32, #tpu.memory_space<vmem>>, %arg31: memref<1x32xf32, #tpu.memory_space<vmem>>, %arg32: memref<1x32xf32, #tpu.memory_space<vmem>>, %arg33: memref<1x8x32xf32, #tpu.memory_space<vmem>>) attributes {dimension_semantics = [#tpu.dimension_semantics<parallel>], iteration_bounds = array<i64: 2>, scalar_prefetch = 0 : i64, scratch_operands = 0 : i64, tpu.core_type = #tpu.core_type<tc>, window_params = [{transform_indices = @transform_0, window_bounds = array<i64: 1, 8, 32>}, {transform_indices = @transform_1, window_bounds = array<i64: 1, 8, 32>}, {pipeline_mode = #tpu.pipeline_mode<synchronous>, transform_indices = @transform_2, window_bounds = array<i64: 8, 8>}, {pipeline_mode = #tpu.pipeline_mode<synchronous>, transform_indices = @transform_3, window_bounds = array<i64: 8, 8>}, {pipeline_mode = #tpu.pipeline_mode<synchronous>, transform_indices = @transform_4, window_bounds = array<i64: 1, 32>}, {pipeline_mode = #tpu.pipeline_mode<synchronous>, transform_indices = @transform_5, window_bounds = array<i64: 1, 32>}, {pipeline_mode = #tpu.pipeline_mode<synchronous>, transform_indices = @transform_6, window_bounds = array<i64: 32, 32>}, {pipeline_mode = #tpu.pipeline_mode<synchronous>, transform_indices = @transform_7, window_bounds = array<i64: 1, 32>}, {pipeline_mode = #tpu.pipeline_mode<synchronous>, transform_indices = @transform_8, window_bounds = array<i64: 32, 32>}, {pipeline_mode = #tpu.pipeline_mode<synchronous>, transform_indices = @transform_9, window_bounds = array<i64: 1, 32>}, {pipeline_mode = #tpu.pipeline_mode<synchronous>, transform_indices = @transform_10, window_bounds = array<i64: 32, 32>}, {pipeline_mode = #tpu.pipeline_mode<synchronous>, transform_indices = @transform_11, window_bounds = array<i64: 1, 32>}, {pipeline_mode = #tpu.pipeline_mode<synchronous>, transform_indices = @transform_12, window_bounds = array<i64: 32, 32>}, {pipeline_mode = #tpu.pipeline_mode<synchronous>, transform_indices = @transform_13, window_bounds = array<i64: 1, 32>}, {pipeline_mode = #tpu.pipeline_mode<synchronous>, transform_indices = @transform_14, window_bounds = array<i64: 1, 32>}, {pipeline_mode = #tpu.pipeline_mode<synchronous>, transform_indices = @transform_15, window_bounds = array<i64: 1, 32>}, {pipeline_mode = #tpu.pipeline_mode<synchronous>, transform_indices = @transform_16, window_bounds = array<i64: 32, 32>}, {pipeline_mode = #tpu.pipeline_mode<synchronous>, transform_indices = @transform_17, window_bounds = array<i64: 1, 32>}, {pipeline_mode = #tpu.pipeline_mode<synchronous>, transform_indices = @transform_18, window_bounds = array<i64: 32, 32>}, {pipeline_mode = #tpu.pipeline_mode<synchronous>, transform_indices = @transform_19, window_bounds = array<i64: 1, 32>}, {pipeline_mode = #tpu.pipeline_mode<synchronous>, transform_indices = @transform_20, window_bounds = array<i64: 32, 32>}, {pipeline_mode = #tpu.pipeline_mode<synchronous>, transform_indices = @transform_21, window_bounds = array<i64: 1, 32>}, {pipeline_mode = #tpu.pipeline_mode<synchronous>, transform_indices = @transform_22, window_bounds = array<i64: 32, 32>}, {pipeline_mode = #tpu.pipeline_mode<synchronous>, transform_indices = @transform_23, window_bounds = array<i64: 1, 32>}, {pipeline_mode = #tpu.pipeline_mode<synchronous>, transform_indices = @transform_24, window_bounds = array<i64: 1, 32>}, {pipeline_mode = #tpu.pipeline_mode<synchronous>, transform_indices = @transform_25, window_bounds = array<i64: 1, 32>}, {pipeline_mode = #tpu.pipeline_mode<synchronous>, transform_indices = @transform_26, window_bounds = array<i64: 32, 64>}, {pipeline_mode = #tpu.pipeline_mode<synchronous>, transform_indices = @transform_27, window_bounds = array<i64: 1, 64>}, {pipeline_mode = #tpu.pipeline_mode<synchronous>, transform_indices = @transform_28, window_bounds = array<i64: 64, 32>}, {pipeline_mode = #tpu.pipeline_mode<synchronous>, transform_indices = @transform_29, window_bounds = array<i64: 1, 32>}, {pipeline_mode = #tpu.pipeline_mode<synchronous>, transform_indices = @transform_30, window_bounds = array<i64: 1, 32>}, {pipeline_mode = #tpu.pipeline_mode<synchronous>, transform_indices = @transform_31, window_bounds = array<i64: 1, 32>}, {transform_indices = @transform_32, window_bounds = array<i64: 1, 8, 32>}]} {
    %c0 = arith.constant 0 : index
    %c0_0 = arith.constant 0 : index
    %c0_1 = arith.constant 0 : index
    %0 = vector.load %arg1[%c0, %c0_0, %c0_1] : memref<1x8x32xf32, #tpu.memory_space<vmem>>, vector<1x8x32xf32>
    %1 = vector.shape_cast %0 : vector<1x8x32xf32> to vector<8x32xf32>
    %c0_2 = arith.constant 0 : index
    %c0_3 = arith.constant 0 : index
    %c0_4 = arith.constant 0 : index
    %2 = vector.load %arg2[%c0_2, %c0_3, %c0_4] : memref<1x8x32xf32, #tpu.memory_space<vmem>>, vector<1x8x32xf32>
    %3 = vector.shape_cast %2 : vector<1x8x32xf32> to vector<8x32xf32>
    %c0_5 = arith.constant 0 : index
    %c0_6 = arith.constant 0 : index
    %4 = vector.load %arg5[%c0_5, %c0_6] : memref<1x32xf32, #tpu.memory_space<vmem>>, vector<1x32xf32>
    %c0_7 = arith.constant 0 : index
    %c0_8 = arith.constant 0 : index
    %5 = vector.load %arg6[%c0_7, %c0_8] : memref<1x32xf32, #tpu.memory_space<vmem>>, vector<1x32xf32>
    %cst = arith.constant dense<0.000000e+00> : vector<8xf32>
    %6 = vector.multi_reduction <add>, %1, %cst [1] : vector<8x32xf32> to vector<8xf32>
    %7 = vector.shape_cast %6 : vector<8xf32> to vector<8x1xf32>
    %cst_9 = arith.constant 3.200000e+01 : f32
    %8 = vector.broadcast %cst_9 : f32 to vector<8x1xf32>
    %9 = arith.divf %7, %8 : vector<8x1xf32>
    %10 = vector.broadcast %9 : vector<8x1xf32> to vector<8x32xf32>
    %11 = arith.subf %1, %10 : vector<8x32xf32>
    %12 = arith.mulf %11, %11 : vector<8x32xf32>
    %cst_10 = arith.constant dense<0.000000e+00> : vector<8xf32>
    %13 = vector.multi_reduction <add>, %12, %cst_10 [1] : vector<8x32xf32> to vector<8xf32>
    %14 = vector.shape_cast %13 : vector<8xf32> to vector<8x1xf32>
    %cst_11 = arith.constant 3.200000e+01 : f32
    %15 = vector.broadcast %cst_11 : f32 to vector<8x1xf32>
    %16 = arith.divf %14, %15 : vector<8x1xf32>
    %17 = vector.broadcast %9 : vector<8x1xf32> to vector<8x32xf32>
    %18 = arith.subf %1, %17 : vector<8x32xf32>
    %cst_12 = arith.constant 9.99999997E-7 : f32
    %19 = vector.broadcast %cst_12 : f32 to vector<8x1xf32>
    %20 = arith.addf %16, %19 : vector<8x1xf32>
    %21 = math.rsqrt %20 : vector<8x1xf32>
    %22 = vector.broadcast %21 : vector<8x1xf32> to vector<8x32xf32>
    %23 = arith.mulf %18, %22 : vector<8x32xf32>
    %24 = vector.broadcast %4 : vector<1x32xf32> to vector<8x32xf32>
    %25 = arith.mulf %23, %24 : vector<8x32xf32>
    %26 = vector.broadcast %5 : vector<1x32xf32> to vector<8x32xf32>
    %27 = arith.addf %25, %26 : vector<8x32xf32>
    %c0_13 = arith.constant 0 : index
    %c0_14 = arith.constant 0 : index
    %28 = vector.load %arg3[%c0_13, %c0_14] : memref<8x8xf32, #tpu.memory_space<vmem>>, vector<8x8xf32>
    %c0_15 = arith.constant 0 : index
    %c0_16 = arith.constant 0 : index
    %29 = vector.load %arg7[%c0_15, %c0_16] : memref<32x32xbf16, #tpu.memory_space<vmem>>, vector<32x32xbf16>
    %c0_17 = arith.constant 0 : index
    %c0_18 = arith.constant 0 : index
    %30 = vector.load %arg8[%c0_17, %c0_18] : memref<1x32xf32, #tpu.memory_space<vmem>>, vector<1x32xf32>
    %c0_19 = arith.constant 0 : index
    %c0_20 = arith.constant 0 : index
    %31 = vector.load %arg9[%c0_19, %c0_20] : memref<32x32xbf16, #tpu.memory_space<vmem>>, vector<32x32xbf16>
    %c0_21 = arith.constant 0 : index
    %c0_22 = arith.constant 0 : index
    %32 = vector.load %arg10[%c0_21, %c0_22] : memref<1x32xf32, #tpu.memory_space<vmem>>, vector<1x32xf32>
    %c0_23 = arith.constant 0 : index
    %c0_24 = arith.constant 0 : index
    %33 = vector.load %arg11[%c0_23, %c0_24] : memref<32x32xbf16, #tpu.memory_space<vmem>>, vector<32x32xbf16>
    %c0_25 = arith.constant 0 : index
    %c0_26 = arith.constant 0 : index
    %34 = vector.load %arg12[%c0_25, %c0_26] : memref<1x32xf32, #tpu.memory_space<vmem>>, vector<1x32xf32>
    %c0_27 = arith.constant 0 : index
    %c0_28 = arith.constant 0 : index
    %35 = vector.load %arg13[%c0_27, %c0_28] : memref<32x32xbf16, #tpu.memory_space<vmem>>, vector<32x32xbf16>
    %c0_29 = arith.constant 0 : index
    %c0_30 = arith.constant 0 : index
    %36 = vector.load %arg14[%c0_29, %c0_30] : memref<1x32xf32, #tpu.memory_space<vmem>>, vector<1x32xf32>
    %37 = arith.truncf %27 : vector<8x32xf32> to vector<8x32xbf16>
    %38 = arith.truncf %27 : vector<8x32xf32> to vector<8x32xbf16>
    %cst_31 = arith.constant dense<0.000000e+00> : vector<8x32xf32>
    %39 = tpu.matmul %37, %29, %cst_31 {dimension_numbers = #tpu.dot_dimension_numbers<[1], [0], [0], [1], [0, 0, 1, 1], [], []>} : vector<8x32xbf16>, vector<32x32xbf16>, vector<8x32xf32> -> vector<8x32xf32>
    %40 = vector.broadcast %30 : vector<1x32xf32> to vector<8x32xf32>
    %41 = arith.addf %39, %40 : vector<8x32xf32>
    %cst_32 = arith.constant dense<0.000000e+00> : vector<8x32xf32>
    %42 = tpu.matmul %38, %31, %cst_32 {dimension_numbers = #tpu.dot_dimension_numbers<[1], [0], [0], [1], [0, 0, 1, 1], [], []>} : vector<8x32xbf16>, vector<32x32xbf16>, vector<8x32xf32> -> vector<8x32xf32>
    %43 = vector.broadcast %32 : vector<1x32xf32> to vector<8x32xf32>
    %44 = arith.addf %42, %43 : vector<8x32xf32>
    %cst_33 = arith.constant dense<0.000000e+00> : vector<8x32xf32>
    %45 = tpu.matmul %38, %33, %cst_33 {dimension_numbers = #tpu.dot_dimension_numbers<[1], [0], [0], [1], [0, 0, 1, 1], [], []>} : vector<8x32xbf16>, vector<32x32xbf16>, vector<8x32xf32> -> vector<8x32xf32>
    %46 = vector.broadcast %34 : vector<1x32xf32> to vector<8x32xf32>
    %47 = arith.addf %45, %46 : vector<8x32xf32>
    %48 = vector.broadcast %36 : vector<1x32xf32> to vector<8x32xf32>
    %49 = arith.addf %1, %48 : vector<8x32xf32>
    %50 = vector.extract_strided_slice %41 {offsets = [0, 0], sizes = [8, 8], strides = [1, 1]} : vector<8x32xf32> to vector<8x8xf32>
    %51 = arith.truncf %50 : vector<8x8xf32> to vector<8x8xbf16>
    %52 = vector.extract_strided_slice %44 {offsets = [0, 0], sizes = [8, 8], strides = [1, 1]} : vector<8x32xf32> to vector<8x8xf32>
    %53 = arith.truncf %52 : vector<8x8xf32> to vector<8x8xbf16>
    %54 = vector.extract_strided_slice %47 {offsets = [0, 0], sizes = [8, 8], strides = [1, 1]} : vector<8x32xf32> to vector<8x8xf32>
    %55 = arith.truncf %54 : vector<8x8xf32> to vector<8x8xbf16>
    %cst_34 = arith.constant dense<0.000000e+00> : vector<8x8xf32>
    %56 = tpu.matmul %51, %53, %cst_34 {dimension_numbers = #tpu.dot_dimension_numbers<[1], [1], [0], [0], [0, 0, 1, 0], [], []>} : vector<8x8xbf16>, vector<8x8xbf16>, vector<8x8xf32> -> vector<8x8xf32>
    %57 = arith.addf %56, %28 : vector<8x8xf32>
    %cst_35 = arith.constant dense<0xFF800000> : vector<8xf32>
    %58 = vector.multi_reduction <maximumf>, %57, %cst_35 [1] : vector<8x8xf32> to vector<8xf32>
    %59 = vector.shape_cast %58 : vector<8xf32> to vector<8x1xf32>
    %60 = vector.broadcast %59 : vector<8x1xf32> to vector<8x8xf32>
    %61 = arith.subf %57, %60 : vector<8x8xf32>
    %62 = math.exp %61 : vector<8x8xf32>
    %cst_36 = arith.constant dense<0.000000e+00> : vector<8xf32>
    %63 = vector.multi_reduction <add>, %62, %cst_36 [1] : vector<8x8xf32> to vector<8xf32>
    %64 = vector.shape_cast %63 : vector<8xf32> to vector<8x1xf32>
    %65 = tpu.reciprocal %64 {approx = true} : vector<8x1xf32> -> vector<8x1xf32>
    %66 = vector.broadcast %65 : vector<8x1xf32> to vector<8x8xf32>
    %67 = arith.mulf %62, %66 : vector<8x8xf32>
    %68 = arith.truncf %67 : vector<8x8xf32> to vector<8x8xbf16>
    %cst_37 = arith.constant dense<0.000000e+00> : vector<8x8xf32>
    %69 = tpu.matmul %68, %55, %cst_37 {dimension_numbers = #tpu.dot_dimension_numbers<[1], [0], [0], [1], [0, 0, 1, 1], [], []>} : vector<8x8xbf16>, vector<8x8xbf16>, vector<8x8xf32> -> vector<8x8xf32>
    %70 = arith.truncf %69 : vector<8x8xf32> to vector<8x8xbf16>
    %71 = vector.extract_strided_slice %35 {offsets = [0, 0], sizes = [8, 32], strides = [1, 1]} : vector<32x32xbf16> to vector<8x32xbf16>
    %cst_38 = arith.constant dense<0.000000e+00> : vector<8x32xf32>
    %72 = tpu.matmul %70, %71, %cst_38 {dimension_numbers = #tpu.dot_dimension_numbers<[1], [0], [0], [1], [0, 0, 1, 1], [], []>} : vector<8x8xbf16>, vector<8x32xbf16>, vector<8x32xf32> -> vector<8x32xf32>
    %73 = arith.addf %49, %72 : vector<8x32xf32>
    %74 = vector.extract_strided_slice %41 {offsets = [0, 8], sizes = [8, 8], strides = [1, 1]} : vector<8x32xf32> to vector<8x8xf32>
    %75 = arith.truncf %74 : vector<8x8xf32> to vector<8x8xbf16>
    %76 = vector.extract_strided_slice %44 {offsets = [0, 8], sizes = [8, 8], strides = [1, 1]} : vector<8x32xf32> to vector<8x8xf32>
    %77 = arith.truncf %76 : vector<8x8xf32> to vector<8x8xbf16>
    %78 = vector.extract_strided_slice %47 {offsets = [0, 8], sizes = [8, 8], strides = [1, 1]} : vector<8x32xf32> to vector<8x8xf32>
    %79 = arith.truncf %78 : vector<8x8xf32> to vector<8x8xbf16>
    %cst_39 = arith.constant dense<0.000000e+00> : vector<8x8xf32>
    %80 = tpu.matmul %75, %77, %cst_39 {dimension_numbers = #tpu.dot_dimension_numbers<[1], [1], [0], [0], [0, 0, 1, 0], [], []>} : vector<8x8xbf16>, vector<8x8xbf16>, vector<8x8xf32> -> vector<8x8xf32>
    %81 = arith.addf %80, %28 : vector<8x8xf32>
    %cst_40 = arith.constant dense<0xFF800000> : vector<8xf32>
    %82 = vector.multi_reduction <maximumf>, %81, %cst_40 [1] : vector<8x8xf32> to vector<8xf32>
    %83 = vector.shape_cast %82 : vector<8xf32> to vector<8x1xf32>
    %84 = vector.broadcast %83 : vector<8x1xf32> to vector<8x8xf32>
    %85 = arith.subf %81, %84 : vector<8x8xf32>
    %86 = math.exp %85 : vector<8x8xf32>
    %cst_41 = arith.constant dense<0.000000e+00> : vector<8xf32>
    %87 = vector.multi_reduction <add>, %86, %cst_41 [1] : vector<8x8xf32> to vector<8xf32>
    %88 = vector.shape_cast %87 : vector<8xf32> to vector<8x1xf32>
    %89 = tpu.reciprocal %88 {approx = true} : vector<8x1xf32> -> vector<8x1xf32>
    %90 = vector.broadcast %89 : vector<8x1xf32> to vector<8x8xf32>
    %91 = arith.mulf %86, %90 : vector<8x8xf32>
    %92 = arith.truncf %91 : vector<8x8xf32> to vector<8x8xbf16>
    %cst_42 = arith.constant dense<0.000000e+00> : vector<8x8xf32>
    %93 = tpu.matmul %92, %79, %cst_42 {dimension_numbers = #tpu.dot_dimension_numbers<[1], [0], [0], [1], [0, 0, 1, 1], [], []>} : vector<8x8xbf16>, vector<8x8xbf16>, vector<8x8xf32> -> vector<8x8xf32>
    %94 = arith.truncf %93 : vector<8x8xf32> to vector<8x8xbf16>
    %95 = vector.extract_strided_slice %35 {offsets = [8, 0], sizes = [8, 32], strides = [1, 1]} : vector<32x32xbf16> to vector<8x32xbf16>
    %cst_43 = arith.constant dense<0.000000e+00> : vector<8x32xf32>
    %96 = tpu.matmul %94, %95, %cst_43 {dimension_numbers = #tpu.dot_dimension_numbers<[1], [0], [0], [1], [0, 0, 1, 1], [], []>} : vector<8x8xbf16>, vector<8x32xbf16>, vector<8x32xf32> -> vector<8x32xf32>
    %97 = arith.addf %73, %96 : vector<8x32xf32>
    %98 = vector.extract_strided_slice %41 {offsets = [0, 16], sizes = [8, 8], strides = [1, 1]} : vector<8x32xf32> to vector<8x8xf32>
    %99 = arith.truncf %98 : vector<8x8xf32> to vector<8x8xbf16>
    %100 = vector.extract_strided_slice %44 {offsets = [0, 16], sizes = [8, 8], strides = [1, 1]} : vector<8x32xf32> to vector<8x8xf32>
    %101 = arith.truncf %100 : vector<8x8xf32> to vector<8x8xbf16>
    %102 = vector.extract_strided_slice %47 {offsets = [0, 16], sizes = [8, 8], strides = [1, 1]} : vector<8x32xf32> to vector<8x8xf32>
    %103 = arith.truncf %102 : vector<8x8xf32> to vector<8x8xbf16>
    %cst_44 = arith.constant dense<0.000000e+00> : vector<8x8xf32>
    %104 = tpu.matmul %99, %101, %cst_44 {dimension_numbers = #tpu.dot_dimension_numbers<[1], [1], [0], [0], [0, 0, 1, 0], [], []>} : vector<8x8xbf16>, vector<8x8xbf16>, vector<8x8xf32> -> vector<8x8xf32>
    %105 = arith.addf %104, %28 : vector<8x8xf32>
    %cst_45 = arith.constant dense<0xFF800000> : vector<8xf32>
    %106 = vector.multi_reduction <maximumf>, %105, %cst_45 [1] : vector<8x8xf32> to vector<8xf32>
    %107 = vector.shape_cast %106 : vector<8xf32> to vector<8x1xf32>
    %108 = vector.broadcast %107 : vector<8x1xf32> to vector<8x8xf32>
    %109 = arith.subf %105, %108 : vector<8x8xf32>
    %110 = math.exp %109 : vector<8x8xf32>
    %cst_46 = arith.constant dense<0.000000e+00> : vector<8xf32>
    %111 = vector.multi_reduction <add>, %110, %cst_46 [1] : vector<8x8xf32> to vector<8xf32>
    %112 = vector.shape_cast %111 : vector<8xf32> to vector<8x1xf32>
    %113 = tpu.reciprocal %112 {approx = true} : vector<8x1xf32> -> vector<8x1xf32>
    %114 = vector.broadcast %113 : vector<8x1xf32> to vector<8x8xf32>
    %115 = arith.mulf %110, %114 : vector<8x8xf32>
    %116 = arith.truncf %115 : vector<8x8xf32> to vector<8x8xbf16>
    %cst_47 = arith.constant dense<0.000000e+00> : vector<8x8xf32>
    %117 = tpu.matmul %116, %103, %cst_47 {dimension_numbers = #tpu.dot_dimension_numbers<[1], [0], [0], [1], [0, 0, 1, 1], [], []>} : vector<8x8xbf16>, vector<8x8xbf16>, vector<8x8xf32> -> vector<8x8xf32>
    %118 = arith.truncf %117 : vector<8x8xf32> to vector<8x8xbf16>
    %119 = vector.extract_strided_slice %35 {offsets = [16, 0], sizes = [8, 32], strides = [1, 1]} : vector<32x32xbf16> to vector<8x32xbf16>
    %cst_48 = arith.constant dense<0.000000e+00> : vector<8x32xf32>
    %120 = tpu.matmul %118, %119, %cst_48 {dimension_numbers = #tpu.dot_dimension_numbers<[1], [0], [0], [1], [0, 0, 1, 1], [], []>} : vector<8x8xbf16>, vector<8x32xbf16>, vector<8x32xf32> -> vector<8x32xf32>
    %121 = arith.addf %97, %120 : vector<8x32xf32>
    %122 = vector.extract_strided_slice %41 {offsets = [0, 24], sizes = [8, 8], strides = [1, 1]} : vector<8x32xf32> to vector<8x8xf32>
    %123 = arith.truncf %122 : vector<8x8xf32> to vector<8x8xbf16>
    %124 = vector.extract_strided_slice %44 {offsets = [0, 24], sizes = [8, 8], strides = [1, 1]} : vector<8x32xf32> to vector<8x8xf32>
    %125 = arith.truncf %124 : vector<8x8xf32> to vector<8x8xbf16>
    %126 = vector.extract_strided_slice %47 {offsets = [0, 24], sizes = [8, 8], strides = [1, 1]} : vector<8x32xf32> to vector<8x8xf32>
    %127 = arith.truncf %126 : vector<8x8xf32> to vector<8x8xbf16>
    %cst_49 = arith.constant dense<0.000000e+00> : vector<8x8xf32>
    %128 = tpu.matmul %123, %125, %cst_49 {dimension_numbers = #tpu.dot_dimension_numbers<[1], [1], [0], [0], [0, 0, 1, 0], [], []>} : vector<8x8xbf16>, vector<8x8xbf16>, vector<8x8xf32> -> vector<8x8xf32>
    %129 = arith.addf %128, %28 : vector<8x8xf32>
    %cst_50 = arith.constant dense<0xFF800000> : vector<8xf32>
    %130 = vector.multi_reduction <maximumf>, %129, %cst_50 [1] : vector<8x8xf32> to vector<8xf32>
    %131 = vector.shape_cast %130 : vector<8xf32> to vector<8x1xf32>
    %132 = vector.broadcast %131 : vector<8x1xf32> to vector<8x8xf32>
    %133 = arith.subf %129, %132 : vector<8x8xf32>
    %134 = math.exp %133 : vector<8x8xf32>
    %cst_51 = arith.constant dense<0.000000e+00> : vector<8xf32>
    %135 = vector.multi_reduction <add>, %134, %cst_51 [1] : vector<8x8xf32> to vector<8xf32>
    %136 = vector.shape_cast %135 : vector<8xf32> to vector<8x1xf32>
    %137 = tpu.reciprocal %136 {approx = true} : vector<8x1xf32> -> vector<8x1xf32>
    %138 = vector.broadcast %137 : vector<8x1xf32> to vector<8x8xf32>
    %139 = arith.mulf %134, %138 : vector<8x8xf32>
    %140 = arith.truncf %139 : vector<8x8xf32> to vector<8x8xbf16>
    %cst_52 = arith.constant dense<0.000000e+00> : vector<8x8xf32>
    %141 = tpu.matmul %140, %127, %cst_52 {dimension_numbers = #tpu.dot_dimension_numbers<[1], [0], [0], [1], [0, 0, 1, 1], [], []>} : vector<8x8xbf16>, vector<8x8xbf16>, vector<8x8xf32> -> vector<8x8xf32>
    %142 = arith.truncf %141 : vector<8x8xf32> to vector<8x8xbf16>
    %143 = vector.extract_strided_slice %35 {offsets = [24, 0], sizes = [8, 32], strides = [1, 1]} : vector<32x32xbf16> to vector<8x32xbf16>
    %cst_53 = arith.constant dense<0.000000e+00> : vector<8x32xf32>
    %144 = tpu.matmul %142, %143, %cst_53 {dimension_numbers = #tpu.dot_dimension_numbers<[1], [0], [0], [1], [0, 0, 1, 1], [], []>} : vector<8x8xbf16>, vector<8x32xbf16>, vector<8x32xf32> -> vector<8x32xf32>
    %145 = arith.addf %121, %144 : vector<8x32xf32>
    %c0_54 = arith.constant 0 : index
    %c0_55 = arith.constant 0 : index
    %146 = vector.load %arg15[%c0_54, %c0_55] : memref<1x32xf32, #tpu.memory_space<vmem>>, vector<1x32xf32>
    %c0_56 = arith.constant 0 : index
    %c0_57 = arith.constant 0 : index
    %147 = vector.load %arg16[%c0_56, %c0_57] : memref<1x32xf32, #tpu.memory_space<vmem>>, vector<1x32xf32>
    %cst_58 = arith.constant dense<0.000000e+00> : vector<8xf32>
    %148 = vector.multi_reduction <add>, %145, %cst_58 [1] : vector<8x32xf32> to vector<8xf32>
    %149 = vector.shape_cast %148 : vector<8xf32> to vector<8x1xf32>
    %cst_59 = arith.constant 3.200000e+01 : f32
    %150 = vector.broadcast %cst_59 : f32 to vector<8x1xf32>
    %151 = arith.divf %149, %150 : vector<8x1xf32>
    %152 = vector.broadcast %151 : vector<8x1xf32> to vector<8x32xf32>
    %153 = arith.subf %145, %152 : vector<8x32xf32>
    %154 = arith.mulf %153, %153 : vector<8x32xf32>
    %cst_60 = arith.constant dense<0.000000e+00> : vector<8xf32>
    %155 = vector.multi_reduction <add>, %154, %cst_60 [1] : vector<8x32xf32> to vector<8xf32>
    %156 = vector.shape_cast %155 : vector<8xf32> to vector<8x1xf32>
    %cst_61 = arith.constant 3.200000e+01 : f32
    %157 = vector.broadcast %cst_61 : f32 to vector<8x1xf32>
    %158 = arith.divf %156, %157 : vector<8x1xf32>
    %159 = vector.broadcast %151 : vector<8x1xf32> to vector<8x32xf32>
    %160 = arith.subf %145, %159 : vector<8x32xf32>
    %cst_62 = arith.constant 9.99999997E-7 : f32
    %161 = vector.broadcast %cst_62 : f32 to vector<8x1xf32>
    %162 = arith.addf %158, %161 : vector<8x1xf32>
    %163 = math.rsqrt %162 : vector<8x1xf32>
    %164 = vector.broadcast %163 : vector<8x1xf32> to vector<8x32xf32>
    %165 = arith.mulf %160, %164 : vector<8x32xf32>
    %166 = vector.broadcast %146 : vector<1x32xf32> to vector<8x32xf32>
    %167 = arith.mulf %165, %166 : vector<8x32xf32>
    %168 = vector.broadcast %147 : vector<1x32xf32> to vector<8x32xf32>
    %169 = arith.addf %167, %168 : vector<8x32xf32>
    %c0_63 = arith.constant 0 : index
    %c0_64 = arith.constant 0 : index
    %170 = vector.load %arg4[%c0_63, %c0_64] : memref<8x8xf32, #tpu.memory_space<vmem>>, vector<8x8xf32>
    %c0_65 = arith.constant 0 : index
    %c0_66 = arith.constant 0 : index
    %171 = vector.load %arg17[%c0_65, %c0_66] : memref<32x32xbf16, #tpu.memory_space<vmem>>, vector<32x32xbf16>
    %c0_67 = arith.constant 0 : index
    %c0_68 = arith.constant 0 : index
    %172 = vector.load %arg18[%c0_67, %c0_68] : memref<1x32xf32, #tpu.memory_space<vmem>>, vector<1x32xf32>
    %c0_69 = arith.constant 0 : index
    %c0_70 = arith.constant 0 : index
    %173 = vector.load %arg19[%c0_69, %c0_70] : memref<32x32xbf16, #tpu.memory_space<vmem>>, vector<32x32xbf16>
    %c0_71 = arith.constant 0 : index
    %c0_72 = arith.constant 0 : index
    %174 = vector.load %arg20[%c0_71, %c0_72] : memref<1x32xf32, #tpu.memory_space<vmem>>, vector<1x32xf32>
    %c0_73 = arith.constant 0 : index
    %c0_74 = arith.constant 0 : index
    %175 = vector.load %arg21[%c0_73, %c0_74] : memref<32x32xbf16, #tpu.memory_space<vmem>>, vector<32x32xbf16>
    %c0_75 = arith.constant 0 : index
    %c0_76 = arith.constant 0 : index
    %176 = vector.load %arg22[%c0_75, %c0_76] : memref<1x32xf32, #tpu.memory_space<vmem>>, vector<1x32xf32>
    %c0_77 = arith.constant 0 : index
    %c0_78 = arith.constant 0 : index
    %177 = vector.load %arg23[%c0_77, %c0_78] : memref<32x32xbf16, #tpu.memory_space<vmem>>, vector<32x32xbf16>
    %c0_79 = arith.constant 0 : index
    %c0_80 = arith.constant 0 : index
    %178 = vector.load %arg24[%c0_79, %c0_80] : memref<1x32xf32, #tpu.memory_space<vmem>>, vector<1x32xf32>
    %179 = arith.truncf %169 : vector<8x32xf32> to vector<8x32xbf16>
    %180 = arith.truncf %3 : vector<8x32xf32> to vector<8x32xbf16>
    %cst_81 = arith.constant dense<0.000000e+00> : vector<8x32xf32>
    %181 = tpu.matmul %179, %171, %cst_81 {dimension_numbers = #tpu.dot_dimension_numbers<[1], [0], [0], [1], [0, 0, 1, 1], [], []>} : vector<8x32xbf16>, vector<32x32xbf16>, vector<8x32xf32> -> vector<8x32xf32>
    %182 = vector.broadcast %172 : vector<1x32xf32> to vector<8x32xf32>
    %183 = arith.addf %181, %182 : vector<8x32xf32>
    %cst_82 = arith.constant dense<0.000000e+00> : vector<8x32xf32>
    %184 = tpu.matmul %180, %173, %cst_82 {dimension_numbers = #tpu.dot_dimension_numbers<[1], [0], [0], [1], [0, 0, 1, 1], [], []>} : vector<8x32xbf16>, vector<32x32xbf16>, vector<8x32xf32> -> vector<8x32xf32>
    %185 = vector.broadcast %174 : vector<1x32xf32> to vector<8x32xf32>
    %186 = arith.addf %184, %185 : vector<8x32xf32>
    %cst_83 = arith.constant dense<0.000000e+00> : vector<8x32xf32>
    %187 = tpu.matmul %180, %175, %cst_83 {dimension_numbers = #tpu.dot_dimension_numbers<[1], [0], [0], [1], [0, 0, 1, 1], [], []>} : vector<8x32xbf16>, vector<32x32xbf16>, vector<8x32xf32> -> vector<8x32xf32>
    %188 = vector.broadcast %176 : vector<1x32xf32> to vector<8x32xf32>
    %189 = arith.addf %187, %188 : vector<8x32xf32>
    %190 = vector.broadcast %178 : vector<1x32xf32> to vector<8x32xf32>
    %191 = arith.addf %145, %190 : vector<8x32xf32>
    %192 = vector.extract_strided_slice %183 {offsets = [0, 0], sizes = [8, 8], strides = [1, 1]} : vector<8x32xf32> to vector<8x8xf32>
    %193 = arith.truncf %192 : vector<8x8xf32> to vector<8x8xbf16>
    %194 = vector.extract_strided_slice %186 {offsets = [0, 0], sizes = [8, 8], strides = [1, 1]} : vector<8x32xf32> to vector<8x8xf32>
    %195 = arith.truncf %194 : vector<8x8xf32> to vector<8x8xbf16>
    %196 = vector.extract_strided_slice %189 {offsets = [0, 0], sizes = [8, 8], strides = [1, 1]} : vector<8x32xf32> to vector<8x8xf32>
    %197 = arith.truncf %196 : vector<8x8xf32> to vector<8x8xbf16>
    %cst_84 = arith.constant dense<0.000000e+00> : vector<8x8xf32>
    %198 = tpu.matmul %193, %195, %cst_84 {dimension_numbers = #tpu.dot_dimension_numbers<[1], [1], [0], [0], [0, 0, 1, 0], [], []>} : vector<8x8xbf16>, vector<8x8xbf16>, vector<8x8xf32> -> vector<8x8xf32>
    %199 = arith.addf %198, %170 : vector<8x8xf32>
    %cst_85 = arith.constant dense<0xFF800000> : vector<8xf32>
    %200 = vector.multi_reduction <maximumf>, %199, %cst_85 [1] : vector<8x8xf32> to vector<8xf32>
    %201 = vector.shape_cast %200 : vector<8xf32> to vector<8x1xf32>
    %202 = vector.broadcast %201 : vector<8x1xf32> to vector<8x8xf32>
    %203 = arith.subf %199, %202 : vector<8x8xf32>
    %204 = math.exp %203 : vector<8x8xf32>
    %cst_86 = arith.constant dense<0.000000e+00> : vector<8xf32>
    %205 = vector.multi_reduction <add>, %204, %cst_86 [1] : vector<8x8xf32> to vector<8xf32>
    %206 = vector.shape_cast %205 : vector<8xf32> to vector<8x1xf32>
    %207 = tpu.reciprocal %206 {approx = true} : vector<8x1xf32> -> vector<8x1xf32>
    %208 = vector.broadcast %207 : vector<8x1xf32> to vector<8x8xf32>
    %209 = arith.mulf %204, %208 : vector<8x8xf32>
    %210 = arith.truncf %209 : vector<8x8xf32> to vector<8x8xbf16>
    %cst_87 = arith.constant dense<0.000000e+00> : vector<8x8xf32>
    %211 = tpu.matmul %210, %197, %cst_87 {dimension_numbers = #tpu.dot_dimension_numbers<[1], [0], [0], [1], [0, 0, 1, 1], [], []>} : vector<8x8xbf16>, vector<8x8xbf16>, vector<8x8xf32> -> vector<8x8xf32>
    %212 = arith.truncf %211 : vector<8x8xf32> to vector<8x8xbf16>
    %213 = vector.extract_strided_slice %177 {offsets = [0, 0], sizes = [8, 32], strides = [1, 1]} : vector<32x32xbf16> to vector<8x32xbf16>
    %cst_88 = arith.constant dense<0.000000e+00> : vector<8x32xf32>
    %214 = tpu.matmul %212, %213, %cst_88 {dimension_numbers = #tpu.dot_dimension_numbers<[1], [0], [0], [1], [0, 0, 1, 1], [], []>} : vector<8x8xbf16>, vector<8x32xbf16>, vector<8x32xf32> -> vector<8x32xf32>
    %215 = arith.addf %191, %214 : vector<8x32xf32>
    %216 = vector.extract_strided_slice %183 {offsets = [0, 8], sizes = [8, 8], strides = [1, 1]} : vector<8x32xf32> to vector<8x8xf32>
    %217 = arith.truncf %216 : vector<8x8xf32> to vector<8x8xbf16>
    %218 = vector.extract_strided_slice %186 {offsets = [0, 8], sizes = [8, 8], strides = [1, 1]} : vector<8x32xf32> to vector<8x8xf32>
    %219 = arith.truncf %218 : vector<8x8xf32> to vector<8x8xbf16>
    %220 = vector.extract_strided_slice %189 {offsets = [0, 8], sizes = [8, 8], strides = [1, 1]} : vector<8x32xf32> to vector<8x8xf32>
    %221 = arith.truncf %220 : vector<8x8xf32> to vector<8x8xbf16>
    %cst_89 = arith.constant dense<0.000000e+00> : vector<8x8xf32>
    %222 = tpu.matmul %217, %219, %cst_89 {dimension_numbers = #tpu.dot_dimension_numbers<[1], [1], [0], [0], [0, 0, 1, 0], [], []>} : vector<8x8xbf16>, vector<8x8xbf16>, vector<8x8xf32> -> vector<8x8xf32>
    %223 = arith.addf %222, %170 : vector<8x8xf32>
    %cst_90 = arith.constant dense<0xFF800000> : vector<8xf32>
    %224 = vector.multi_reduction <maximumf>, %223, %cst_90 [1] : vector<8x8xf32> to vector<8xf32>
    %225 = vector.shape_cast %224 : vector<8xf32> to vector<8x1xf32>
    %226 = vector.broadcast %225 : vector<8x1xf32> to vector<8x8xf32>
    %227 = arith.subf %223, %226 : vector<8x8xf32>
    %228 = math.exp %227 : vector<8x8xf32>
    %cst_91 = arith.constant dense<0.000000e+00> : vector<8xf32>
    %229 = vector.multi_reduction <add>, %228, %cst_91 [1] : vector<8x8xf32> to vector<8xf32>
    %230 = vector.shape_cast %229 : vector<8xf32> to vector<8x1xf32>
    %231 = tpu.reciprocal %230 {approx = true} : vector<8x1xf32> -> vector<8x1xf32>
    %232 = vector.broadcast %231 : vector<8x1xf32> to vector<8x8xf32>
    %233 = arith.mulf %228, %232 : vector<8x8xf32>
    %234 = arith.truncf %233 : vector<8x8xf32> to vector<8x8xbf16>
    %cst_92 = arith.constant dense<0.000000e+00> : vector<8x8xf32>
    %235 = tpu.matmul %234, %221, %cst_92 {dimension_numbers = #tpu.dot_dimension_numbers<[1], [0], [0], [1], [0, 0, 1, 1], [], []>} : vector<8x8xbf16>, vector<8x8xbf16>, vector<8x8xf32> -> vector<8x8xf32>
    %236 = arith.truncf %235 : vector<8x8xf32> to vector<8x8xbf16>
    %237 = vector.extract_strided_slice %177 {offsets = [8, 0], sizes = [8, 32], strides = [1, 1]} : vector<32x32xbf16> to vector<8x32xbf16>
    %cst_93 = arith.constant dense<0.000000e+00> : vector<8x32xf32>
    %238 = tpu.matmul %236, %237, %cst_93 {dimension_numbers = #tpu.dot_dimension_numbers<[1], [0], [0], [1], [0, 0, 1, 1], [], []>} : vector<8x8xbf16>, vector<8x32xbf16>, vector<8x32xf32> -> vector<8x32xf32>
    %239 = arith.addf %215, %238 : vector<8x32xf32>
    %240 = vector.extract_strided_slice %183 {offsets = [0, 16], sizes = [8, 8], strides = [1, 1]} : vector<8x32xf32> to vector<8x8xf32>
    %241 = arith.truncf %240 : vector<8x8xf32> to vector<8x8xbf16>
    %242 = vector.extract_strided_slice %186 {offsets = [0, 16], sizes = [8, 8], strides = [1, 1]} : vector<8x32xf32> to vector<8x8xf32>
    %243 = arith.truncf %242 : vector<8x8xf32> to vector<8x8xbf16>
    %244 = vector.extract_strided_slice %189 {offsets = [0, 16], sizes = [8, 8], strides = [1, 1]} : vector<8x32xf32> to vector<8x8xf32>
    %245 = arith.truncf %244 : vector<8x8xf32> to vector<8x8xbf16>
    %cst_94 = arith.constant dense<0.000000e+00> : vector<8x8xf32>
    %246 = tpu.matmul %241, %243, %cst_94 {dimension_numbers = #tpu.dot_dimension_numbers<[1], [1], [0], [0], [0, 0, 1, 0], [], []>} : vector<8x8xbf16>, vector<8x8xbf16>, vector<8x8xf32> -> vector<8x8xf32>
    %247 = arith.addf %246, %170 : vector<8x8xf32>
    %cst_95 = arith.constant dense<0xFF800000> : vector<8xf32>
    %248 = vector.multi_reduction <maximumf>, %247, %cst_95 [1] : vector<8x8xf32> to vector<8xf32>
    %249 = vector.shape_cast %248 : vector<8xf32> to vector<8x1xf32>
    %250 = vector.broadcast %249 : vector<8x1xf32> to vector<8x8xf32>
    %251 = arith.subf %247, %250 : vector<8x8xf32>
    %252 = math.exp %251 : vector<8x8xf32>
    %cst_96 = arith.constant dense<0.000000e+00> : vector<8xf32>
    %253 = vector.multi_reduction <add>, %252, %cst_96 [1] : vector<8x8xf32> to vector<8xf32>
    %254 = vector.shape_cast %253 : vector<8xf32> to vector<8x1xf32>
    %255 = tpu.reciprocal %254 {approx = true} : vector<8x1xf32> -> vector<8x1xf32>
    %256 = vector.broadcast %255 : vector<8x1xf32> to vector<8x8xf32>
    %257 = arith.mulf %252, %256 : vector<8x8xf32>
    %258 = arith.truncf %257 : vector<8x8xf32> to vector<8x8xbf16>
    %cst_97 = arith.constant dense<0.000000e+00> : vector<8x8xf32>
    %259 = tpu.matmul %258, %245, %cst_97 {dimension_numbers = #tpu.dot_dimension_numbers<[1], [0], [0], [1], [0, 0, 1, 1], [], []>} : vector<8x8xbf16>, vector<8x8xbf16>, vector<8x8xf32> -> vector<8x8xf32>
    %260 = arith.truncf %259 : vector<8x8xf32> to vector<8x8xbf16>
    %261 = vector.extract_strided_slice %177 {offsets = [16, 0], sizes = [8, 32], strides = [1, 1]} : vector<32x32xbf16> to vector<8x32xbf16>
    %cst_98 = arith.constant dense<0.000000e+00> : vector<8x32xf32>
    %262 = tpu.matmul %260, %261, %cst_98 {dimension_numbers = #tpu.dot_dimension_numbers<[1], [0], [0], [1], [0, 0, 1, 1], [], []>} : vector<8x8xbf16>, vector<8x32xbf16>, vector<8x32xf32> -> vector<8x32xf32>
    %263 = arith.addf %239, %262 : vector<8x32xf32>
    %264 = vector.extract_strided_slice %183 {offsets = [0, 24], sizes = [8, 8], strides = [1, 1]} : vector<8x32xf32> to vector<8x8xf32>
    %265 = arith.truncf %264 : vector<8x8xf32> to vector<8x8xbf16>
    %266 = vector.extract_strided_slice %186 {offsets = [0, 24], sizes = [8, 8], strides = [1, 1]} : vector<8x32xf32> to vector<8x8xf32>
    %267 = arith.truncf %266 : vector<8x8xf32> to vector<8x8xbf16>
    %268 = vector.extract_strided_slice %189 {offsets = [0, 24], sizes = [8, 8], strides = [1, 1]} : vector<8x32xf32> to vector<8x8xf32>
    %269 = arith.truncf %268 : vector<8x8xf32> to vector<8x8xbf16>
    %cst_99 = arith.constant dense<0.000000e+00> : vector<8x8xf32>
    %270 = tpu.matmul %265, %267, %cst_99 {dimension_numbers = #tpu.dot_dimension_numbers<[1], [1], [0], [0], [0, 0, 1, 0], [], []>} : vector<8x8xbf16>, vector<8x8xbf16>, vector<8x8xf32> -> vector<8x8xf32>
    %271 = arith.addf %270, %170 : vector<8x8xf32>
    %cst_100 = arith.constant dense<0xFF800000> : vector<8xf32>
    %272 = vector.multi_reduction <maximumf>, %271, %cst_100 [1] : vector<8x8xf32> to vector<8xf32>
    %273 = vector.shape_cast %272 : vector<8xf32> to vector<8x1xf32>
    %274 = vector.broadcast %273 : vector<8x1xf32> to vector<8x8xf32>
    %275 = arith.subf %271, %274 : vector<8x8xf32>
    %276 = math.exp %275 : vector<8x8xf32>
    %cst_101 = arith.constant dense<0.000000e+00> : vector<8xf32>
    %277 = vector.multi_reduction <add>, %276, %cst_101 [1] : vector<8x8xf32> to vector<8xf32>
    %278 = vector.shape_cast %277 : vector<8xf32> to vector<8x1xf32>
    %279 = tpu.reciprocal %278 {approx = true} : vector<8x1xf32> -> vector<8x1xf32>
    %280 = vector.broadcast %279 : vector<8x1xf32> to vector<8x8xf32>
    %281 = arith.mulf %276, %280 : vector<8x8xf32>
    %282 = arith.truncf %281 : vector<8x8xf32> to vector<8x8xbf16>
    %cst_102 = arith.constant dense<0.000000e+00> : vector<8x8xf32>
    %283 = tpu.matmul %282, %269, %cst_102 {dimension_numbers = #tpu.dot_dimension_numbers<[1], [0], [0], [1], [0, 0, 1, 1], [], []>} : vector<8x8xbf16>, vector<8x8xbf16>, vector<8x8xf32> -> vector<8x8xf32>
    %284 = arith.truncf %283 : vector<8x8xf32> to vector<8x8xbf16>
    %285 = vector.extract_strided_slice %177 {offsets = [24, 0], sizes = [8, 32], strides = [1, 1]} : vector<32x32xbf16> to vector<8x32xbf16>
    %cst_103 = arith.constant dense<0.000000e+00> : vector<8x32xf32>
    %286 = tpu.matmul %284, %285, %cst_103 {dimension_numbers = #tpu.dot_dimension_numbers<[1], [0], [0], [1], [0, 0, 1, 1], [], []>} : vector<8x8xbf16>, vector<8x32xbf16>, vector<8x32xf32> -> vector<8x32xf32>
    %287 = arith.addf %263, %286 : vector<8x32xf32>
    %c0_104 = arith.constant 0 : index
    %c0_105 = arith.constant 0 : index
    %288 = vector.load %arg25[%c0_104, %c0_105] : memref<1x32xf32, #tpu.memory_space<vmem>>, vector<1x32xf32>
    %c0_106 = arith.constant 0 : index
    %c0_107 = arith.constant 0 : index
    %289 = vector.load %arg26[%c0_106, %c0_107] : memref<1x32xf32, #tpu.memory_space<vmem>>, vector<1x32xf32>
    %cst_108 = arith.constant dense<0.000000e+00> : vector<8xf32>
    %290 = vector.multi_reduction <add>, %287, %cst_108 [1] : vector<8x32xf32> to vector<8xf32>
    %291 = vector.shape_cast %290 : vector<8xf32> to vector<8x1xf32>
    %cst_109 = arith.constant 3.200000e+01 : f32
    %292 = vector.broadcast %cst_109 : f32 to vector<8x1xf32>
    %293 = arith.divf %291, %292 : vector<8x1xf32>
    %294 = vector.broadcast %293 : vector<8x1xf32> to vector<8x32xf32>
    %295 = arith.subf %287, %294 : vector<8x32xf32>
    %296 = arith.mulf %295, %295 : vector<8x32xf32>
    %cst_110 = arith.constant dense<0.000000e+00> : vector<8xf32>
    %297 = vector.multi_reduction <add>, %296, %cst_110 [1] : vector<8x32xf32> to vector<8xf32>
    %298 = vector.shape_cast %297 : vector<8xf32> to vector<8x1xf32>
    %cst_111 = arith.constant 3.200000e+01 : f32
    %299 = vector.broadcast %cst_111 : f32 to vector<8x1xf32>
    %300 = arith.divf %298, %299 : vector<8x1xf32>
    %301 = vector.broadcast %293 : vector<8x1xf32> to vector<8x32xf32>
    %302 = arith.subf %287, %301 : vector<8x32xf32>
    %cst_112 = arith.constant 9.99999997E-7 : f32
    %303 = vector.broadcast %cst_112 : f32 to vector<8x1xf32>
    %304 = arith.addf %300, %303 : vector<8x1xf32>
    %305 = math.rsqrt %304 : vector<8x1xf32>
    %306 = vector.broadcast %305 : vector<8x1xf32> to vector<8x32xf32>
    %307 = arith.mulf %302, %306 : vector<8x32xf32>
    %308 = vector.broadcast %288 : vector<1x32xf32> to vector<8x32xf32>
    %309 = arith.mulf %307, %308 : vector<8x32xf32>
    %310 = vector.broadcast %289 : vector<1x32xf32> to vector<8x32xf32>
    %311 = arith.addf %309, %310 : vector<8x32xf32>
    %312 = arith.truncf %311 : vector<8x32xf32> to vector<8x32xbf16>
    %c0_113 = arith.constant 0 : index
    %c0_114 = arith.constant 0 : index
    %313 = vector.load %arg27[%c0_113, %c0_114] : memref<32x64xbf16, #tpu.memory_space<vmem>>, vector<32x64xbf16>
    %cst_115 = arith.constant dense<0.000000e+00> : vector<8x64xf32>
    %314 = tpu.matmul %312, %313, %cst_115 {dimension_numbers = #tpu.dot_dimension_numbers<[1], [0], [0], [1], [0, 0, 1, 1], [], []>} : vector<8x32xbf16>, vector<32x64xbf16>, vector<8x64xf32> -> vector<8x64xf32>
    %c0_116 = arith.constant 0 : index
    %c0_117 = arith.constant 0 : index
    %315 = vector.load %arg28[%c0_116, %c0_117] : memref<1x64xf32, #tpu.memory_space<vmem>>, vector<1x64xf32>
    %316 = vector.broadcast %315 : vector<1x64xf32> to vector<8x64xf32>
    %317 = arith.addf %314, %316 : vector<8x64xf32>
    %cst_118 = arith.constant 0.000000e+00 : f32
    %318 = vector.broadcast %cst_118 : f32 to vector<8x64xf32>
    %319 = arith.maximumf %317, %318 : vector<8x64xf32>
    %320 = arith.truncf %319 : vector<8x64xf32> to vector<8x64xbf16>
    %c0_119 = arith.constant 0 : index
    %c0_120 = arith.constant 0 : index
    %321 = vector.load %arg29[%c0_119, %c0_120] : memref<64x32xbf16, #tpu.memory_space<vmem>>, vector<64x32xbf16>
    %cst_121 = arith.constant dense<0.000000e+00> : vector<8x32xf32>
    %322 = tpu.matmul %320, %321, %cst_121 {dimension_numbers = #tpu.dot_dimension_numbers<[1], [0], [0], [1], [0, 0, 1, 1], [], []>} : vector<8x64xbf16>, vector<64x32xbf16>, vector<8x32xf32> -> vector<8x32xf32>
    %c0_122 = arith.constant 0 : index
    %c0_123 = arith.constant 0 : index
    %323 = vector.load %arg30[%c0_122, %c0_123] : memref<1x32xf32, #tpu.memory_space<vmem>>, vector<1x32xf32>
    %324 = vector.broadcast %323 : vector<1x32xf32> to vector<8x32xf32>
    %325 = arith.addf %322, %324 : vector<8x32xf32>
    %326 = arith.addf %287, %325 : vector<8x32xf32>
    %c0_124 = arith.constant 0 : index
    %c0_125 = arith.constant 0 : index
    %c0_126 = arith.constant 0 : index
    %327 = vector.load %arg33[%c0_124, %c0_125, %c0_126] : memref<1x8x32xf32, #tpu.memory_space<vmem>>, vector<1x8x32xf32>
    %328 = vector.shape_cast %327 : vector<1x8x32xf32> to vector<8x32xf32>
    %329 = vector.shape_cast %326 : vector<8x32xf32> to vector<1x8x32xf32>
    tpu.vector_store %arg33[%c0_124, %c0_125, %c0_126], %329 {strides = array<i32>} : memref<1x8x32xf32, #tpu.memory_space<vmem>>, vector<1x8x32xf32>,
    return
  }
  func.func @transform_0(%arg0: i32) -> (i32, i32, i32) {
    %c0_i32 = arith.constant 0 : i32
    %c0_i32_0 = arith.constant 0 : i32
    %c0_i32_1 = arith.constant 0 : i32
    return %arg0, %c0_i32, %c0_i32_0 : i32, i32, i32
  }
  func.func @transform_1(%arg0: i32) -> (i32, i32, i32) {
    %c0_i32 = arith.constant 0 : i32
    %c0_i32_0 = arith.constant 0 : i32
    %c0_i32_1 = arith.constant 0 : i32
    return %arg0, %c0_i32, %c0_i32_0 : i32, i32, i32
  }
  func.func @transform_2(%arg0: i32) -> (i32, i32) {
    %c0_i32 = arith.constant 0 : i32
    %c0_i32_0 = arith.constant 0 : i32
    %c0_i32_1 = arith.constant 0 : i32
    return %c0_i32, %c0_i32_0 : i32, i32
  }
  func.func @transform_3(%arg0: i32) -> (i32, i32) {
    %c0_i32 = arith.constant 0 : i32
    %c0_i32_0 = arith.constant 0 : i32
    %c0_i32_1 = arith.constant 0 : i32
    return %c0_i32, %c0_i32_0 : i32, i32
  }
  func.func @transform_4(%arg0: i32) -> (i32, i32) {
    %c0_i32 = arith.constant 0 : i32
    %c0_i32_0 = arith.constant 0 : i32
    %c0_i32_1 = arith.constant 0 : i32
    return %c0_i32, %c0_i32_0 : i32, i32
  }
  func.func @transform_5(%arg0: i32) -> (i32, i32) {
    %c0_i32 = arith.constant 0 : i32
    %c0_i32_0 = arith.constant 0 : i32
    %c0_i32_1 = arith.constant 0 : i32
    return %c0_i32, %c0_i32_0 : i32, i32
  }
  func.func @transform_6(%arg0: i32) -> (i32, i32) {
    %c0_i32 = arith.constant 0 : i32
    %c0_i32_0 = arith.constant 0 : i32
    %c0_i32_1 = arith.constant 0 : i32
    return %c0_i32, %c0_i32_0 : i32, i32
  }
  func.func @transform_7(%arg0: i32) -> (i32, i32) {
    %c0_i32 = arith.constant 0 : i32
    %c0_i32_0 = arith.constant 0 : i32
    %c0_i32_1 = arith.constant 0 : i32
    return %c0_i32, %c0_i32_0 : i32, i32
  }
  func.func @transform_8(%arg0: i32) -> (i32, i32) {
    %c0_i32 = arith.constant 0 : i32
    %c0_i32_0 = arith.constant 0 : i32
    %c0_i32_1 = arith.constant 0 : i32
    return %c0_i32, %c0_i32_0 : i32, i32
  }
  func.func @transform_9(%arg0: i32) -> (i32, i32) {
    %c0_i32 = arith.constant 0 : i32
    %c0_i32_0 = arith.constant 0 : i32
    %c0_i32_1 = arith.constant 0 : i32
    return %c0_i32, %c0_i32_0 : i32, i32
  }
  func.func @transform_10(%arg0: i32) -> (i32, i32) {
    %c0_i32 = arith.constant 0 : i32
    %c0_i32_0 = arith.constant 0 : i32
    %c0_i32_1 = arith.constant 0 : i32
    return %c0_i32, %c0_i32_0 : i32, i32
  }
  func.func @transform_11(%arg0: i32) -> (i32, i32) {
    %c0_i32 = arith.constant 0 : i32
    %c0_i32_0 = arith.constant 0 : i32
    %c0_i32_1 = arith.constant 0 : i32
    return %c0_i32, %c0_i32_0 : i32, i32
  }
  func.func @transform_12(%arg0: i32) -> (i32, i32) {
    %c0_i32 = arith.constant 0 : i32
    %c0_i32_0 = arith.constant 0 : i32
    %c0_i32_1 = arith.constant 0 : i32
    return %c0_i32, %c0_i32_0 : i32, i32
  }
  func.func @transform_13(%arg0: i32) -> (i32, i32) {
    %c0_i32 = arith.constant 0 : i32
    %c0_i32_0 = arith.constant 0 : i32
    %c0_i32_1 = arith.constant 0 : i32
    return %c0_i32, %c0_i32_0 : i32, i32
  }
  func.func @transform_14(%arg0: i32) -> (i32, i32) {
    %c0_i32 = arith.constant 0 : i32
    %c0_i32_0 = arith.constant 0 : i32
    %c0_i32_1 = arith.constant 0 : i32
    return %c0_i32, %c0_i32_0 : i32, i32
  }
  func.func @transform_15(%arg0: i32) -> (i32, i32) {
    %c0_i32 = arith.constant 0 : i32
    %c0_i32_0 = arith.constant 0 : i32
    %c0_i32_1 = arith.constant 0 : i32
    return %c0_i32, %c0_i32_0 : i32, i32
  }
  func.func @transform_16(%arg0: i32) -> (i32, i32) {
    %c0_i32 = arith.constant 0 : i32
    %c0_i32_0 = arith.constant 0 : i32
    %c0_i32_1 = arith.constant 0 : i32
    return %c0_i32, %c0_i32_0 : i32, i32
  }
  func.func @transform_17(%arg0: i32) -> (i32, i32) {
    %c0_i32 = arith.constant 0 : i32
    %c0_i32_0 = arith.constant 0 : i32
    %c0_i32_1 = arith.constant 0 : i32
    return %c0_i32, %c0_i32_0 : i32, i32
  }
  func.func @transform_18(%arg0: i32) -> (i32, i32) {
    %c0_i32 = arith.constant 0 : i32
    %c0_i32_0 = arith.constant 0 : i32
    %c0_i32_1 = arith.constant 0 : i32
    return %c0_i32, %c0_i32_0 : i32, i32
  }
  func.func @transform_19(%arg0: i32) -> (i32, i32) {
    %c0_i32 = arith.constant 0 : i32
    %c0_i32_0 = arith.constant 0 : i32
    %c0_i32_1 = arith.constant 0 : i32
    return %c0_i32, %c0_i32_0 : i32, i32
  }
  func.func @transform_20(%arg0: i32) -> (i32, i32) {
    %c0_i32 = arith.constant 0 : i32
    %c0_i32_0 = arith.constant 0 : i32
    %c0_i32_1 = arith.constant 0 : i32
    return %c0_i32, %c0_i32_0 : i32, i32
  }
  func.func @transform_21(%arg0: i32) -> (i32, i32) {
    %c0_i32 = arith.constant 0 : i32
    %c0_i32_0 = arith.constant 0 : i32
    %c0_i32_1 = arith.constant 0 : i32
    return %c0_i32, %c0_i32_0 : i32, i32
  }
  func.func @transform_22(%arg0: i32) -> (i32, i32) {
    %c0_i32 = arith.constant 0 : i32
    %c0_i32_0 = arith.constant 0 : i32
    %c0_i32_1 = arith.constant 0 : i32
    return %c0_i32, %c0_i32_0 : i32, i32
  }
  func.func @transform_23(%arg0: i32) -> (i32, i32) {
    %c0_i32 = arith.constant 0 : i32
    %c0_i32_0 = arith.constant 0 : i32
    %c0_i32_1 = arith.constant 0 : i32
    return %c0_i32, %c0_i32_0 : i32, i32
  }
  func.func @transform_24(%arg0: i32) -> (i32, i32) {
    %c0_i32 = arith.constant 0 : i32
    %c0_i32_0 = arith.constant 0 : i32
    %c0_i32_1 = arith.constant 0 : i32
    return %c0_i32, %c0_i32_0 : i32, i32
  }
  func.func @transform_25(%arg0: i32) -> (i32, i32) {
    %c0_i32 = arith.constant 0 : i32
    %c0_i32_0 = arith.constant 0 : i32
    %c0_i32_1 = arith.constant 0 : i32
    return %c0_i32, %c0_i32_0 : i32, i32
  }
  func.func @transform_26(%arg0: i32) -> (i32, i32) {
    %c0_i32 = arith.constant 0 : i32
    %c0_i32_0 = arith.constant 0 : i32
    %c0_i32_1 = arith.constant 0 : i32
    return %c0_i32, %c0_i32_0 : i32, i32
  }
  func.func @transform_27(%arg0: i32) -> (i32, i32) {
    %c0_i32 = arith.constant 0 : i32
    %c0_i32_0 = arith.constant 0 : i32
    %c0_i32_1 = arith.constant 0 : i32
    return %c0_i32, %c0_i32_0 : i32, i32
  }
  func.func @transform_28(%arg0: i32) -> (i32, i32) {
    %c0_i32 = arith.constant 0 : i32
    %c0_i32_0 = arith.constant 0 : i32
    %c0_i32_1 = arith.constant 0 : i32
    return %c0_i32, %c0_i32_0 : i32, i32
  }
  func.func @transform_29(%arg0: i32) -> (i32, i32) {
    %c0_i32 = arith.constant 0 : i32
    %c0_i32_0 = arith.constant 0 : i32
    %c0_i32_1 = arith.constant 0 : i32
    return %c0_i32, %c0_i32_0 : i32, i32
  }
  func.func @transform_30(%arg0: i32) -> (i32, i32) {
    %c0_i32 = arith.constant 0 : i32
    %c0_i32_0 = arith.constant 0 : i32
    %c0_i32_1 = arith.constant 0 : i32
    return %c0_i32, %c0_i32_0 : i32, i32
  }
  func.func @transform_31(%arg0: i32) -> (i32, i32) {
    %c0_i32 = arith.constant 0 : i32
    %c0_i32_0 = arith.constant 0 : i32
    %c0_i32_1 = arith.constant 0 : i32
    return %c0_i32, %c0_i32_0 : i32, i32
  }
  func.func @transform_32(%arg0: i32) -> (i32, i32, i32) {
    %c0_i32 = arith.constant 0 : i32
    %c0_i32_0 = arith.constant 0 : i32
    %c0_i32_1 = arith.constant 0 : i32
    return %arg0, %c0_i32, %c0_i32_0 : i32, i32, i32
  }
}

module attributes {stable_mosaic.version = 11 : i64} {
  func.func @_decoder_layer_kernel(%arg0: i32, %arg1: memref<1x8x32xf32, #tpu.memory_space<vmem>>, %arg2: memref<1x8x32xf32, #tpu.memory_space<vmem>>, %arg3: memref<8x8xf32, #tpu.memory_space<vmem>>, %arg4: memref<8x8xf32, #tpu.memory_space<vmem>>, %arg5: memref<1x32xf32, #tpu.memory_space<vmem>>, %arg6: memref<1x32xf32, #tpu.memory_space<vmem>>, %arg7: memref<32x32xbf16, #tpu.memory_space<vmem>>, %arg8: memref<1x32xf32, #tpu.memory_space<vmem>>, %arg9: memref<32x32xbf16, #tpu.memory_space<vmem>>, %arg10: memref<1x32xf32, #tpu.memory_space<vmem>>, %arg11: memref<32x32xbf16, #tpu.memory_space<vmem>>, %arg12: memref<1x32xf32, #tpu.memory_space<vmem>>, %arg13: memref<32x32xbf16, #tpu.memory_space<vmem>>, %arg14: memref<1x32xf32, #tpu.memory_space<vmem>>, %arg15: memref<1x32xf32, #tpu.memory_space<vmem>>, %arg16: memref<1x32xf32, #tpu.memory_space<vmem>>, %arg17: memref<32x32xbf16, #tpu.memory_space<vmem>>, %arg18: memref<1x32xf32, #tpu.memory_space<vmem>>, %arg19: memref<32x32xbf16, #tpu.memory_space<vmem>>, %arg20: memref<1x32xf32, #tpu.memory_space<vmem>>, %arg21: memref<32x32xbf16, #tpu.memory_space<vmem>>, %arg22: memref<1x32xf32, #tpu.memory_space<vmem>>, %arg23: memref<32x32xbf16, #tpu.memory_space<vmem>>, %arg24: memref<1x32xf32, #tpu.memory_space<vmem>>, %arg25: memref<1x32xf32, #tpu.memory_space<vmem>>, %arg26: memref<1x32xf32, #tpu.memory_space<vmem>>, %arg27: memref<32x64xbf16, #tpu.memory_space<vmem>>, %arg28: memref<1x64xf32, #tpu.memory_space<vmem>>, %arg29: memref<64x32xbf16, #tpu.memory_space<vmem>>, %arg30: memref<1x32xf32, #tpu.memory_space<vmem>>, %arg31: memref<1x32xf32, #tpu.memory_space<vmem>>, %arg32: memref<1x32xf32, #tpu.memory_space<vmem>>, %arg33: memref<1x8x32xf32, #tpu.memory_space<vmem>>) attributes {dimension_semantics = [#tpu.dimension_semantics<parallel>], iteration_bounds = array<i64: 2>, scalar_prefetch = 0 : i64, scratch_operands = 0 : i64, tpu.core_type = #tpu.core_type<tc>, window_params = [{transform_indices = @transform_0, window_bounds = array<i64: 1, 8, 32>}, {transform_indices = @transform_1, window_bounds = array<i64: 1, 8, 32>}, {pipeline_mode = #tpu.pipeline_mode<synchronous>, transform_indices = @transform_2, window_bounds = array<i64: 8, 8>}, {pipeline_mode = #tpu.pipeline_mode<synchronous>, transform_indices = @transform_3, window_bounds = array<i64: 8, 8>}, {pipeline_mode = #tpu.pipeline_mode<synchronous>, transform_indices = @transform_4, window_bounds = array<i64: 1, 32>}, {pipeline_mode = #tpu.pipeline_mode<synchronous>, transform_indices = @transform_5, window_bounds = array<i64: 1, 32>}, {pipeline_mode = #tpu.pipeline_mode<synchronous>, transform_indices = @transform_6, window_bounds = array<i64: 32, 32>}, {pipeline_mode = #tpu.pipeline_mode<synchronous>, transform_indices = @transform_7, window_bounds = array<i64: 1, 32>}, {pipeline_mode = #tpu.pipeline_mode<synchronous>, transform_indices = @transform_8, window_bounds = array<i64: 32, 32>}, {pipeline_mode = #tpu.pipeline_mode<synchronous>, transform_indices = @transform_9, window_bounds = array<i64: 1, 32>}, {pipeline_mode = #tpu.pipeline_mode<synchronous>, transform_indices = @transform_10, window_bounds = array<i64: 32, 32>}, {pipeline_mode = #tpu.pipeline_mode<synchronous>, transform_indices = @transform_11, window_bounds = array<i64: 1, 32>}, {pipeline_mode = #tpu.pipeline_mode<synchronous>, transform_indices = @transform_12, window_bounds = array<i64: 32, 32>}, {pipeline_mode = #tpu.pipeline_mode<synchronous>, transform_indices = @transform_13, window_bounds = array<i64: 1, 32>}, {pipeline_mode = #tpu.pipeline_mode<synchronous>, transform_indices = @transform_14, window_bounds = array<i64: 1, 32>}, {pipeline_mode = #tpu.pipeline_mode<synchronous>, transform_indices = @transform_15, window_bounds = array<i64: 1, 32>}, {pipeline_mode = #tpu.pipeline_mode<synchronous>, transform_indices = @transform_16, window_bounds = array<i64: 32, 32>}, {pipeline_mode = #tpu.pipeline_mode<synchronous>, transform_indices = @transform_17, window_bounds = array<i64: 1, 32>}, {pipeline_mode = #tpu.pipeline_mode<synchronous>, transform_indices = @transform_18, window_bounds = array<i64: 32, 32>}, {pipeline_mode = #tpu.pipeline_mode<synchronous>, transform_indices = @transform_19, window_bounds = array<i64: 1, 32>}, {pipeline_mode = #tpu.pipeline_mode<synchronous>, transform_indices = @transform_20, window_bounds = array<i64: 32, 32>}, {pipeline_mode = #tpu.pipeline_mode<synchronous>, transform_indices = @transform_21, window_bounds = array<i64: 1, 32>}, {pipeline_mode = #tpu.pipeline_mode<synchronous>, transform_indices = @transform_22, window_bounds = array<i64: 32, 32>}, {pipeline_mode = #tpu.pipeline_mode<synchronous>, transform_indices = @transform_23, window_bounds = array<i64: 1, 32>}, {pipeline_mode = #tpu.pipeline_mode<synchronous>, transform_indices = @transform_24, window_bounds = array<i64: 1, 32>}, {pipeline_mode = #tpu.pipeline_mode<synchronous>, transform_indices = @transform_25, window_bounds = array<i64: 1, 32>}, {pipeline_mode = #tpu.pipeline_mode<synchronous>, transform_indices = @transform_26, window_bounds = array<i64: 32, 64>}, {pipeline_mode = #tpu.pipeline_mode<synchronous>, transform_indices = @transform_27, window_bounds = array<i64: 1, 64>}, {pipeline_mode = #tpu.pipeline_mode<synchronous>, transform_indices = @transform_28, window_bounds = array<i64: 64, 32>}, {pipeline_mode = #tpu.pipeline_mode<synchronous>, transform_indices = @transform_29, window_bounds = array<i64: 1, 32>}, {pipeline_mode = #tpu.pipeline_mode<synchronous>, transform_indices = @transform_30, window_bounds = array<i64: 1, 32>}, {pipeline_mode = #tpu.pipeline_mode<synchronous>, transform_indices = @transform_31, window_bounds = array<i64: 1, 32>}, {transform_indices = @transform_32, window_bounds = array<i64: 1, 8, 32>}]} {
    %c0 = arith.constant 0 : index
    %c0_0 = arith.constant 0 : index
    %c0_1 = arith.constant 0 : index
    %0 = vector.load %arg1[%c0, %c0_0, %c0_1] : memref<1x8x32xf32, #tpu.memory_space<vmem>>, vector<1x8x32xf32>
    %1 = vector.shape_cast %0 : vector<1x8x32xf32> to vector<8x32xf32>
    %c0_2 = arith.constant 0 : index
    %c0_3 = arith.constant 0 : index
    %c0_4 = arith.constant 0 : index
    %2 = vector.load %arg2[%c0_2, %c0_3, %c0_4] : memref<1x8x32xf32, #tpu.memory_space<vmem>>, vector<1x8x32xf32>
    %3 = vector.shape_cast %2 : vector<1x8x32xf32> to vector<8x32xf32>
    %c0_5 = arith.constant 0 : index
    %c0_6 = arith.constant 0 : index
    %4 = vector.load %arg5[%c0_5, %c0_6] : memref<1x32xf32, #tpu.memory_space<vmem>>, vector<1x32xf32>
    %c0_7 = arith.constant 0 : index
    %c0_8 = arith.constant 0 : index
    %5 = vector.load %arg6[%c0_7, %c0_8] : memref<1x32xf32, #tpu.memory_space<vmem>>, vector<1x32xf32>
    %cst = arith.constant dense<0.000000e+00> : vector<8xf32>
    %6 = vector.multi_reduction <add>, %1, %cst [1] : vector<8x32xf32> to vector<8xf32>
    %7 = vector.shape_cast %6 : vector<8xf32> to vector<8x1xf32>
    %cst_9 = arith.constant 3.200000e+01 : f32
    %8 = vector.broadcast %cst_9 : f32 to vector<8x1xf32>
    %9 = arith.divf %7, %8 : vector<8x1xf32>
    %10 = vector.broadcast %9 : vector<8x1xf32> to vector<8x32xf32>
    %11 = arith.subf %1, %10 : vector<8x32xf32>
    %12 = arith.mulf %11, %11 : vector<8x32xf32>
    %cst_10 = arith.constant dense<0.000000e+00> : vector<8xf32>
    %13 = vector.multi_reduction <add>, %12, %cst_10 [1] : vector<8x32xf32> to vector<8xf32>
    %14 = vector.shape_cast %13 : vector<8xf32> to vector<8x1xf32>
    %cst_11 = arith.constant 3.200000e+01 : f32
    %15 = vector.broadcast %cst_11 : f32 to vector<8x1xf32>
    %16 = arith.divf %14, %15 : vector<8x1xf32>
    %17 = vector.broadcast %9 : vector<8x1xf32> to vector<8x32xf32>
    %18 = arith.subf %1, %17 : vector<8x32xf32>
    %cst_12 = arith.constant 9.99999997E-7 : f32
    %19 = vector.broadcast %cst_12 : f32 to vector<8x1xf32>
    %20 = arith.addf %16, %19 : vector<8x1xf32>
    %21 = math.rsqrt %20 : vector<8x1xf32>
    %22 = vector.broadcast %21 : vector<8x1xf32> to vector<8x32xf32>
    %23 = arith.mulf %18, %22 : vector<8x32xf32>
    %24 = vector.broadcast %4 : vector<1x32xf32> to vector<8x32xf32>
    %25 = arith.mulf %23, %24 : vector<8x32xf32>
    %26 = vector.broadcast %5 : vector<1x32xf32> to vector<8x32xf32>
    %27 = arith.addf %25, %26 : vector<8x32xf32>
    %c0_13 = arith.constant 0 : index
    %c0_14 = arith.constant 0 : index
    %28 = vector.load %arg3[%c0_13, %c0_14] : memref<8x8xf32, #tpu.memory_space<vmem>>, vector<8x8xf32>
    %c0_15 = arith.constant 0 : index
    %c0_16 = arith.constant 0 : index
    %29 = vector.load %arg7[%c0_15, %c0_16] : memref<32x32xbf16, #tpu.memory_space<vmem>>, vector<32x32xbf16>
    %c0_17 = arith.constant 0 : index
    %c0_18 = arith.constant 0 : index
    %30 = vector.load %arg8[%c0_17, %c0_18] : memref<1x32xf32, #tpu.memory_space<vmem>>, vector<1x32xf32>
    %c0_19 = arith.constant 0 : index
    %c0_20 = arith.constant 0 : index
    %31 = vector.load %arg9[%c0_19, %c0_20] : memref<32x32xbf16, #tpu.memory_space<vmem>>, vector<32x32xbf16>
    %c0_21 = arith.constant 0 : index
    %c0_22 = arith.constant 0 : index
    %32 = vector.load %arg10[%c0_21, %c0_22] : memref<1x32xf32, #tpu.memory_space<vmem>>, vector<1x32xf32>
    %c0_23 = arith.constant 0 : index
    %c0_24 = arith.constant 0 : index
    %33 = vector.load %arg11[%c0_23, %c0_24] : memref<32x32xbf16, #tpu.memory_space<vmem>>, vector<32x32xbf16>
    %c0_25 = arith.constant 0 : index
    %c0_26 = arith.constant 0 : index
    %34 = vector.load %arg12[%c0_25, %c0_26] : memref<1x32xf32, #tpu.memory_space<vmem>>, vector<1x32xf32>
    %c0_27 = arith.constant 0 : index
    %c0_28 = arith.constant 0 : index
    %35 = vector.load %arg13[%c0_27, %c0_28] : memref<32x32xbf16, #tpu.memory_space<vmem>>, vector<32x32xbf16>
    %c0_29 = arith.constant 0 : index
    %c0_30 = arith.constant 0 : index
    %36 = vector.load %arg14[%c0_29, %c0_30] : memref<1x32xf32, #tpu.memory_space<vmem>>, vector<1x32xf32>
    %37 = arith.truncf %27 : vector<8x32xf32> to vector<8x32xbf16>
    %38 = arith.truncf %27 : vector<8x32xf32> to vector<8x32xbf16>
    %cst_31 = arith.constant dense<0.000000e+00> : vector<8x32xf32>
    %39 = tpu.matmul %37, %29, %cst_31 {dimension_numbers = #tpu.dot_dimension_numbers<[1], [0], [0], [1], [0, 0, 1, 1], [], []>} : vector<8x32xbf16>, vector<32x32xbf16>, vector<8x32xf32> -> vector<8x32xf32>
    %40 = vector.broadcast %30 : vector<1x32xf32> to vector<8x32xf32>
    %41 = arith.addf %39, %40 : vector<8x32xf32>
    %cst_32 = arith.constant dense<0.000000e+00> : vector<8x32xf32>
    %42 = tpu.matmul %38, %31, %cst_32 {dimension_numbers = #tpu.dot_dimension_numbers<[1], [0], [0], [1], [0, 0, 1, 1], [], []>} : vector<8x32xbf16>, vector<32x32xbf16>, vector<8x32xf32> -> vector<8x32xf32>
    %43 = vector.broadcast %32 : vector<1x32xf32> to vector<8x32xf32>
    %44 = arith.addf %42, %43 : vector<8x32xf32>
    %cst_33 = arith.constant dense<0.000000e+00> : vector<8x32xf32>
    %45 = tpu.matmul %38, %33, %cst_33 {dimension_numbers = #tpu.dot_dimension_numbers<[1], [0], [0], [1], [0, 0, 1, 1], [], []>} : vector<8x32xbf16>, vector<32x32xbf16>, vector<8x32xf32> -> vector<8x32xf32>
    %46 = vector.broadcast %34 : vector<1x32xf32> to vector<8x32xf32>
    %47 = arith.addf %45, %46 : vector<8x32xf32>
    %48 = vector.broadcast %36 : vector<1x32xf32> to vector<8x32xf32>
    %49 = arith.addf %1, %48 : vector<8x32xf32>
    %50 = vector.extract_strided_slice %41 {offsets = [0, 0], sizes = [8, 8], strides = [1, 1]} : vector<8x32xf32> to vector<8x8xf32>
    %51 = arith.truncf %50 : vector<8x8xf32> to vector<8x8xbf16>
    %52 = vector.extract_strided_slice %44 {offsets = [0, 0], sizes = [8, 8], strides = [1, 1]} : vector<8x32xf32> to vector<8x8xf32>
    %53 = arith.truncf %52 : vector<8x8xf32> to vector<8x8xbf16>
    %54 = vector.extract_strided_slice %47 {offsets = [0, 0], sizes = [8, 8], strides = [1, 1]} : vector<8x32xf32> to vector<8x8xf32>
    %55 = arith.truncf %54 : vector<8x8xf32> to vector<8x8xbf16>
    %cst_34 = arith.constant dense<0.000000e+00> : vector<8x8xf32>
    %56 = tpu.matmul %51, %53, %cst_34 {dimension_numbers = #tpu.dot_dimension_numbers<[1], [1], [0], [0], [0, 0, 1, 0], [], []>} : vector<8x8xbf16>, vector<8x8xbf16>, vector<8x8xf32> -> vector<8x8xf32>
    %57 = arith.addf %56, %28 : vector<8x8xf32>
    %cst_35 = arith.constant dense<0xFF800000> : vector<8xf32>
    %58 = vector.multi_reduction <maximumf>, %57, %cst_35 [1] : vector<8x8xf32> to vector<8xf32>
    %59 = vector.shape_cast %58 : vector<8xf32> to vector<8x1xf32>
    %60 = vector.broadcast %59 : vector<8x1xf32> to vector<8x8xf32>
    %61 = arith.subf %57, %60 : vector<8x8xf32>
    %62 = math.exp %61 : vector<8x8xf32>
    %cst_36 = arith.constant dense<0.000000e+00> : vector<8xf32>
    %63 = vector.multi_reduction <add>, %62, %cst_36 [1] : vector<8x8xf32> to vector<8xf32>
    %64 = vector.shape_cast %63 : vector<8xf32> to vector<8x1xf32>
    %65 = tpu.reciprocal %64 {approx = true} : vector<8x1xf32> -> vector<8x1xf32>
    %66 = vector.broadcast %65 : vector<8x1xf32> to vector<8x8xf32>
    %67 = arith.mulf %62, %66 : vector<8x8xf32>
    %68 = arith.truncf %67 : vector<8x8xf32> to vector<8x8xbf16>
    %cst_37 = arith.constant dense<0.000000e+00> : vector<8x8xf32>
    %69 = tpu.matmul %68, %55, %cst_37 {dimension_numbers = #tpu.dot_dimension_numbers<[1], [0], [0], [1], [0, 0, 1, 1], [], []>} : vector<8x8xbf16>, vector<8x8xbf16>, vector<8x8xf32> -> vector<8x8xf32>
    %70 = arith.truncf %69 : vector<8x8xf32> to vector<8x8xbf16>
    %71 = vector.extract_strided_slice %35 {offsets = [0, 0], sizes = [8, 32], strides = [1, 1]} : vector<32x32xbf16> to vector<8x32xbf16>
    %cst_38 = arith.constant dense<0.000000e+00> : vector<8x32xf32>
    %72 = tpu.matmul %70, %71, %cst_38 {dimension_numbers = #tpu.dot_dimension_numbers<[1], [0], [0], [1], [0, 0, 1, 1], [], []>} : vector<8x8xbf16>, vector<8x32xbf16>, vector<8x32xf32> -> vector<8x32xf32>
    %73 = arith.addf %49, %72 : vector<8x32xf32>
    %74 = vector.extract_strided_slice %41 {offsets = [0, 8], sizes = [8, 8], strides = [1, 1]} : vector<8x32xf32> to vector<8x8xf32>
    %75 = arith.truncf %74 : vector<8x8xf32> to vector<8x8xbf16>
    %76 = vector.extract_strided_slice %44 {offsets = [0, 8], sizes = [8, 8], strides = [1, 1]} : vector<8x32xf32> to vector<8x8xf32>
    %77 = arith.truncf %76 : vector<8x8xf32> to vector<8x8xbf16>
    %78 = vector.extract_strided_slice %47 {offsets = [0, 8], sizes = [8, 8], strides = [1, 1]} : vector<8x32xf32> to vector<8x8xf32>
    %79 = arith.truncf %78 : vector<8x8xf32> to vector<8x8xbf16>
    %cst_39 = arith.constant dense<0.000000e+00> : vector<8x8xf32>
    %80 = tpu.matmul %75, %77, %cst_39 {dimension_numbers = #tpu.dot_dimension_numbers<[1], [1], [0], [0], [0, 0, 1, 0], [], []>} : vector<8x8xbf16>, vector<8x8xbf16>, vector<8x8xf32> -> vector<8x8xf32>
    %81 = arith.addf %80, %28 : vector<8x8xf32>
    %cst_40 = arith.constant dense<0xFF800000> : vector<8xf32>
    %82 = vector.multi_reduction <maximumf>, %81, %cst_40 [1] : vector<8x8xf32> to vector<8xf32>
    %83 = vector.shape_cast %82 : vector<8xf32> to vector<8x1xf32>
    %84 = vector.broadcast %83 : vector<8x1xf32> to vector<8x8xf32>
    %85 = arith.subf %81, %84 : vector<8x8xf32>
    %86 = math.exp %85 : vector<8x8xf32>
    %cst_41 = arith.constant dense<0.000000e+00> : vector<8xf32>
    %87 = vector.multi_reduction <add>, %86, %cst_41 [1] : vector<8x8xf32> to vector<8xf32>
    %88 = vector.shape_cast %87 : vector<8xf32> to vector<8x1xf32>
    %89 = tpu.reciprocal %88 {approx = true} : vector<8x1xf32> -> vector<8x1xf32>
    %90 = vector.broadcast %89 : vector<8x1xf32> to vector<8x8xf32>
    %91 = arith.mulf %86, %90 : vector<8x8xf32>
    %92 = arith.truncf %91 : vector<8x8xf32> to vector<8x8xbf16>
    %cst_42 = arith.constant dense<0.000000e+00> : vector<8x8xf32>
    %93 = tpu.matmul %92, %79, %cst_42 {dimension_numbers = #tpu.dot_dimension_numbers<[1], [0], [0], [1], [0, 0, 1, 1], [], []>} : vector<8x8xbf16>, vector<8x8xbf16>, vector<8x8xf32> -> vector<8x8xf32>
    %94 = arith.truncf %93 : vector<8x8xf32> to vector<8x8xbf16>
    %95 = vector.extract_strided_slice %35 {offsets = [8, 0], sizes = [8, 32], strides = [1, 1]} : vector<32x32xbf16> to vector<8x32xbf16>
    %cst_43 = arith.constant dense<0.000000e+00> : vector<8x32xf32>
    %96 = tpu.matmul %94, %95, %cst_43 {dimension_numbers = #tpu.dot_dimension_numbers<[1], [0], [0], [1], [0, 0, 1, 1], [], []>} : vector<8x8xbf16>, vector<8x32xbf16>, vector<8x32xf32> -> vector<8x32xf32>
    %97 = arith.addf %73, %96 : vector<8x32xf32>
    %98 = vector.extract_strided_slice %41 {offsets = [0, 16], sizes = [8, 8], strides = [1, 1]} : vector<8x32xf32> to vector<8x8xf32>
    %99 = arith.truncf %98 : vector<8x8xf32> to vector<8x8xbf16>
    %100 = vector.extract_strided_slice %44 {offsets = [0, 16], sizes = [8, 8], strides = [1, 1]} : vector<8x32xf32> to vector<8x8xf32>
    %101 = arith.truncf %100 : vector<8x8xf32> to vector<8x8xbf16>
    %102 = vector.extract_strided_slice %47 {offsets = [0, 16], sizes = [8, 8], strides = [1, 1]} : vector<8x32xf32> to vector<8x8xf32>
    %103 = arith.truncf %102 : vector<8x8xf32> to vector<8x8xbf16>
    %cst_44 = arith.constant dense<0.000000e+00> : vector<8x8xf32>
    %104 = tpu.matmul %99, %101, %cst_44 {dimension_numbers = #tpu.dot_dimension_numbers<[1], [1], [0], [0], [0, 0, 1, 0], [], []>} : vector<8x8xbf16>, vector<8x8xbf16>, vector<8x8xf32> -> vector<8x8xf32>
    %105 = arith.addf %104, %28 : vector<8x8xf32>
    %cst_45 = arith.constant dense<0xFF800000> : vector<8xf32>
    %106 = vector.multi_reduction <maximumf>, %105, %cst_45 [1] : vector<8x8xf32> to vector<8xf32>
    %107 = vector.shape_cast %106 : vector<8xf32> to vector<8x1xf32>
    %108 = vector.broadcast %107 : vector<8x1xf32> to vector<8x8xf32>
    %109 = arith.subf %105, %108 : vector<8x8xf32>
    %110 = math.exp %109 : vector<8x8xf32>
    %cst_46 = arith.constant dense<0.000000e+00> : vector<8xf32>
    %111 = vector.multi_reduction <add>, %110, %cst_46 [1] : vector<8x8xf32> to vector<8xf32>
    %112 = vector.shape_cast %111 : vector<8xf32> to vector<8x1xf32>
    %113 = tpu.reciprocal %112 {approx = true} : vector<8x1xf32> -> vector<8x1xf32>
    %114 = vector.broadcast %113 : vector<8x1xf32> to vector<8x8xf32>
    %115 = arith.mulf %110, %114 : vector<8x8xf32>
    %116 = arith.truncf %115 : vector<8x8xf32> to vector<8x8xbf16>
    %cst_47 = arith.constant dense<0.000000e+00> : vector<8x8xf32>
    %117 = tpu.matmul %116, %103, %cst_47 {dimension_numbers = #tpu.dot_dimension_numbers<[1], [0], [0], [1], [0, 0, 1, 1], [], []>} : vector<8x8xbf16>, vector<8x8xbf16>, vector<8x8xf32> -> vector<8x8xf32>
    %118 = arith.truncf %117 : vector<8x8xf32> to vector<8x8xbf16>
    %119 = vector.extract_strided_slice %35 {offsets = [16, 0], sizes = [8, 32], strides = [1, 1]} : vector<32x32xbf16> to vector<8x32xbf16>
    %cst_48 = arith.constant dense<0.000000e+00> : vector<8x32xf32>
    %120 = tpu.matmul %118, %119, %cst_48 {dimension_numbers = #tpu.dot_dimension_numbers<[1], [0], [0], [1], [0, 0, 1, 1], [], []>} : vector<8x8xbf16>, vector<8x32xbf16>, vector<8x32xf32> -> vector<8x32xf32>
    %121 = arith.addf %97, %120 : vector<8x32xf32>
    %122 = vector.extract_strided_slice %41 {offsets = [0, 24], sizes = [8, 8], strides = [1, 1]} : vector<8x32xf32> to vector<8x8xf32>
    %123 = arith.truncf %122 : vector<8x8xf32> to vector<8x8xbf16>
    %124 = vector.extract_strided_slice %44 {offsets = [0, 24], sizes = [8, 8], strides = [1, 1]} : vector<8x32xf32> to vector<8x8xf32>
    %125 = arith.truncf %124 : vector<8x8xf32> to vector<8x8xbf16>
    %126 = vector.extract_strided_slice %47 {offsets = [0, 24], sizes = [8, 8], strides = [1, 1]} : vector<8x32xf32> to vector<8x8xf32>
    %127 = arith.truncf %126 : vector<8x8xf32> to vector<8x8xbf16>
    %cst_49 = arith.constant dense<0.000000e+00> : vector<8x8xf32>
    %128 = tpu.matmul %123, %125, %cst_49 {dimension_numbers = #tpu.dot_dimension_numbers<[1], [1], [0], [0], [0, 0, 1, 0], [], []>} : vector<8x8xbf16>, vector<8x8xbf16>, vector<8x8xf32> -> vector<8x8xf32>
    %129 = arith.addf %128, %28 : vector<8x8xf32>
    %cst_50 = arith.constant dense<0xFF800000> : vector<8xf32>
    %130 = vector.multi_reduction <maximumf>, %129, %cst_50 [1] : vector<8x8xf32> to vector<8xf32>
    %131 = vector.shape_cast %130 : vector<8xf32> to vector<8x1xf32>
    %132 = vector.broadcast %131 : vector<8x1xf32> to vector<8x8xf32>
    %133 = arith.subf %129, %132 : vector<8x8xf32>
    %134 = math.exp %133 : vector<8x8xf32>
    %cst_51 = arith.constant dense<0.000000e+00> : vector<8xf32>
    %135 = vector.multi_reduction <add>, %134, %cst_51 [1] : vector<8x8xf32> to vector<8xf32>
    %136 = vector.shape_cast %135 : vector<8xf32> to vector<8x1xf32>
    %137 = tpu.reciprocal %136 {approx = true} : vector<8x1xf32> -> vector<8x1xf32>
    %138 = vector.broadcast %137 : vector<8x1xf32> to vector<8x8xf32>
    %139 = arith.mulf %134, %138 : vector<8x8xf32>
    %140 = arith.truncf %139 : vector<8x8xf32> to vector<8x8xbf16>
    %cst_52 = arith.constant dense<0.000000e+00> : vector<8x8xf32>
    %141 = tpu.matmul %140, %127, %cst_52 {dimension_numbers = #tpu.dot_dimension_numbers<[1], [0], [0], [1], [0, 0, 1, 1], [], []>} : vector<8x8xbf16>, vector<8x8xbf16>, vector<8x8xf32> -> vector<8x8xf32>
    %142 = arith.truncf %141 : vector<8x8xf32> to vector<8x8xbf16>
    %143 = vector.extract_strided_slice %35 {offsets = [24, 0], sizes = [8, 32], strides = [1, 1]} : vector<32x32xbf16> to vector<8x32xbf16>
    %cst_53 = arith.constant dense<0.000000e+00> : vector<8x32xf32>
    %144 = tpu.matmul %142, %143, %cst_53 {dimension_numbers = #tpu.dot_dimension_numbers<[1], [0], [0], [1], [0, 0, 1, 1], [], []>} : vector<8x8xbf16>, vector<8x32xbf16>, vector<8x32xf32> -> vector<8x32xf32>
    %145 = arith.addf %121, %144 : vector<8x32xf32>
    %c0_54 = arith.constant 0 : index
    %c0_55 = arith.constant 0 : index
    %146 = vector.load %arg15[%c0_54, %c0_55] : memref<1x32xf32, #tpu.memory_space<vmem>>, vector<1x32xf32>
    %c0_56 = arith.constant 0 : index
    %c0_57 = arith.constant 0 : index
    %147 = vector.load %arg16[%c0_56, %c0_57] : memref<1x32xf32, #tpu.memory_space<vmem>>, vector<1x32xf32>
    %cst_58 = arith.constant dense<0.000000e+00> : vector<8xf32>
    %148 = vector.multi_reduction <add>, %145, %cst_58 [1] : vector<8x32xf32> to vector<8xf32>
    %149 = vector.shape_cast %148 : vector<8xf32> to vector<8x1xf32>
    %cst_59 = arith.constant 3.200000e+01 : f32
    %150 = vector.broadcast %cst_59 : f32 to vector<8x1xf32>
    %151 = arith.divf %149, %150 : vector<8x1xf32>
    %152 = vector.broadcast %151 : vector<8x1xf32> to vector<8x32xf32>
    %153 = arith.subf %145, %152 : vector<8x32xf32>
    %154 = arith.mulf %153, %153 : vector<8x32xf32>
    %cst_60 = arith.constant dense<0.000000e+00> : vector<8xf32>
    %155 = vector.multi_reduction <add>, %154, %cst_60 [1] : vector<8x32xf32> to vector<8xf32>
    %156 = vector.shape_cast %155 : vector<8xf32> to vector<8x1xf32>
    %cst_61 = arith.constant 3.200000e+01 : f32
    %157 = vector.broadcast %cst_61 : f32 to vector<8x1xf32>
    %158 = arith.divf %156, %157 : vector<8x1xf32>
    %159 = vector.broadcast %151 : vector<8x1xf32> to vector<8x32xf32>
    %160 = arith.subf %145, %159 : vector<8x32xf32>
    %cst_62 = arith.constant 9.99999997E-7 : f32
    %161 = vector.broadcast %cst_62 : f32 to vector<8x1xf32>
    %162 = arith.addf %158, %161 : vector<8x1xf32>
    %163 = math.rsqrt %162 : vector<8x1xf32>
    %164 = vector.broadcast %163 : vector<8x1xf32> to vector<8x32xf32>
    %165 = arith.mulf %160, %164 : vector<8x32xf32>
    %166 = vector.broadcast %146 : vector<1x32xf32> to vector<8x32xf32>
    %167 = arith.mulf %165, %166 : vector<8x32xf32>
    %168 = vector.broadcast %147 : vector<1x32xf32> to vector<8x32xf32>
    %169 = arith.addf %167, %168 : vector<8x32xf32>
    %c0_63 = arith.constant 0 : index
    %c0_64 = arith.constant 0 : index
    %170 = vector.load %arg4[%c0_63, %c0_64] : memref<8x8xf32, #tpu.memory_space<vmem>>, vector<8x8xf32>
    %c0_65 = arith.constant 0 : index
    %c0_66 = arith.constant 0 : index
    %171 = vector.load %arg17[%c0_65, %c0_66] : memref<32x32xbf16, #tpu.memory_space<vmem>>, vector<32x32xbf16>
    %c0_67 = arith.constant 0 : index
    %c0_68 = arith.constant 0 : index
    %172 = vector.load %arg18[%c0_67, %c0_68] : memref<1x32xf32, #tpu.memory_space<vmem>>, vector<1x32xf32>
    %c0_69 = arith.constant 0 : index
    %c0_70 = arith.constant 0 : index
    %173 = vector.load %arg19[%c0_69, %c0_70] : memref<32x32xbf16, #tpu.memory_space<vmem>>, vector<32x32xbf16>
    %c0_71 = arith.constant 0 : index
    %c0_72 = arith.constant 0 : index
    %174 = vector.load %arg20[%c0_71, %c0_72] : memref<1x32xf32, #tpu.memory_space<vmem>>, vector<1x32xf32>
    %c0_73 = arith.constant 0 : index
    %c0_74 = arith.constant 0 : index
    %175 = vector.load %arg21[%c0_73, %c0_74] : memref<32x32xbf16, #tpu.memory_space<vmem>>, vector<32x32xbf16>
    %c0_75 = arith.constant 0 : index
    %c0_76 = arith.constant 0 : index
    %176 = vector.load %arg22[%c0_75, %c0_76] : memref<1x32xf32, #tpu.memory_space<vmem>>, vector<1x32xf32>
    %c0_77 = arith.constant 0 : index
    %c0_78 = arith.constant 0 : index
    %177 = vector.load %arg23[%c0_77, %c0_78] : memref<32x32xbf16, #tpu.memory_space<vmem>>, vector<32x32xbf16>
    %c0_79 = arith.constant 0 : index
    %c0_80 = arith.constant 0 : index
    %178 = vector.load %arg24[%c0_79, %c0_80] : memref<1x32xf32, #tpu.memory_space<vmem>>, vector<1x32xf32>
    %179 = arith.truncf %169 : vector<8x32xf32> to vector<8x32xbf16>
    %180 = arith.truncf %3 : vector<8x32xf32> to vector<8x32xbf16>
    %cst_81 = arith.constant dense<0.000000e+00> : vector<8x32xf32>
    %181 = tpu.matmul %179, %171, %cst_81 {dimension_numbers = #tpu.dot_dimension_numbers<[1], [0], [0], [1], [0, 0, 1, 1], [], []>} : vector<8x32xbf16>, vector<32x32xbf16>, vector<8x32xf32> -> vector<8x32xf32>
    %182 = vector.broadcast %172 : vector<1x32xf32> to vector<8x32xf32>
    %183 = arith.addf %181, %182 : vector<8x32xf32>
    %cst_82 = arith.constant dense<0.000000e+00> : vector<8x32xf32>
    %184 = tpu.matmul %180, %173, %cst_82 {dimension_numbers = #tpu.dot_dimension_numbers<[1], [0], [0], [1], [0, 0, 1, 1], [], []>} : vector<8x32xbf16>, vector<32x32xbf16>, vector<8x32xf32> -> vector<8x32xf32>
    %185 = vector.broadcast %174 : vector<1x32xf32> to vector<8x32xf32>
    %186 = arith.addf %184, %185 : vector<8x32xf32>
    %cst_83 = arith.constant dense<0.000000e+00> : vector<8x32xf32>
    %187 = tpu.matmul %180, %175, %cst_83 {dimension_numbers = #tpu.dot_dimension_numbers<[1], [0], [0], [1], [0, 0, 1, 1], [], []>} : vector<8x32xbf16>, vector<32x32xbf16>, vector<8x32xf32> -> vector<8x32xf32>
    %188 = vector.broadcast %176 : vector<1x32xf32> to vector<8x32xf32>
    %189 = arith.addf %187, %188 : vector<8x32xf32>
    %190 = vector.broadcast %178 : vector<1x32xf32> to vector<8x32xf32>
    %191 = arith.addf %145, %190 : vector<8x32xf32>
    %192 = vector.extract_strided_slice %183 {offsets = [0, 0], sizes = [8, 8], strides = [1, 1]} : vector<8x32xf32> to vector<8x8xf32>
    %193 = arith.truncf %192 : vector<8x8xf32> to vector<8x8xbf16>
    %194 = vector.extract_strided_slice %186 {offsets = [0, 0], sizes = [8, 8], strides = [1, 1]} : vector<8x32xf32> to vector<8x8xf32>
    %195 = arith.truncf %194 : vector<8x8xf32> to vector<8x8xbf16>
    %196 = vector.extract_strided_slice %189 {offsets = [0, 0], sizes = [8, 8], strides = [1, 1]} : vector<8x32xf32> to vector<8x8xf32>
    %197 = arith.truncf %196 : vector<8x8xf32> to vector<8x8xbf16>
    %cst_84 = arith.constant dense<0.000000e+00> : vector<8x8xf32>
    %198 = tpu.matmul %193, %195, %cst_84 {dimension_numbers = #tpu.dot_dimension_numbers<[1], [1], [0], [0], [0, 0, 1, 0], [], []>} : vector<8x8xbf16>, vector<8x8xbf16>, vector<8x8xf32> -> vector<8x8xf32>
    %199 = arith.addf %198, %170 : vector<8x8xf32>
    %cst_85 = arith.constant dense<0xFF800000> : vector<8xf32>
    %200 = vector.multi_reduction <maximumf>, %199, %cst_85 [1] : vector<8x8xf32> to vector<8xf32>
    %201 = vector.shape_cast %200 : vector<8xf32> to vector<8x1xf32>
    %202 = vector.broadcast %201 : vector<8x1xf32> to vector<8x8xf32>
    %203 = arith.subf %199, %202 : vector<8x8xf32>
    %204 = math.exp %203 : vector<8x8xf32>
    %cst_86 = arith.constant dense<0.000000e+00> : vector<8xf32>
    %205 = vector.multi_reduction <add>, %204, %cst_86 [1] : vector<8x8xf32> to vector<8xf32>
    %206 = vector.shape_cast %205 : vector<8xf32> to vector<8x1xf32>
    %207 = tpu.reciprocal %206 {approx = true} : vector<8x1xf32> -> vector<8x1xf32>
    %208 = vector.broadcast %207 : vector<8x1xf32> to vector<8x8xf32>
    %209 = arith.mulf %204, %208 : vector<8x8xf32>
    %210 = arith.truncf %209 : vector<8x8xf32> to vector<8x8xbf16>
    %cst_87 = arith.constant dense<0.000000e+00> : vector<8x8xf32>
    %211 = tpu.matmul %210, %197, %cst_87 {dimension_numbers = #tpu.dot_dimension_numbers<[1], [0], [0], [1], [0, 0, 1, 1], [], []>} : vector<8x8xbf16>, vector<8x8xbf16>, vector<8x8xf32> -> vector<8x8xf32>
    %212 = arith.truncf %211 : vector<8x8xf32> to vector<8x8xbf16>
    %213 = vector.extract_strided_slice %177 {offsets = [0, 0], sizes = [8, 32], strides = [1, 1]} : vector<32x32xbf16> to vector<8x32xbf16>
    %cst_88 = arith.constant dense<0.000000e+00> : vector<8x32xf32>
    %214 = tpu.matmul %212, %213, %cst_88 {dimension_numbers = #tpu.dot_dimension_numbers<[1], [0], [0], [1], [0, 0, 1, 1], [], []>} : vector<8x8xbf16>, vector<8x32xbf16>, vector<8x32xf32> -> vector<8x32xf32>
    %215 = arith.addf %191, %214 : vector<8x32xf32>
    %216 = vector.extract_strided_slice %183 {offsets = [0, 8], sizes = [8, 8], strides = [1, 1]} : vector<8x32xf32> to vector<8x8xf32>
    %217 = arith.truncf %216 : vector<8x8xf32> to vector<8x8xbf16>
    %218 = vector.extract_strided_slice %186 {offsets = [0, 8], sizes = [8, 8], strides = [1, 1]} : vector<8x32xf32> to vector<8x8xf32>
    %219 = arith.truncf %218 : vector<8x8xf32> to vector<8x8xbf16>
    %220 = vector.extract_strided_slice %189 {offsets = [0, 8], sizes = [8, 8], strides = [1, 1]} : vector<8x32xf32> to vector<8x8xf32>
    %221 = arith.truncf %220 : vector<8x8xf32> to vector<8x8xbf16>
    %cst_89 = arith.constant dense<0.000000e+00> : vector<8x8xf32>
    %222 = tpu.matmul %217, %219, %cst_89 {dimension_numbers = #tpu.dot_dimension_numbers<[1], [1], [0], [0], [0, 0, 1, 0], [], []>} : vector<8x8xbf16>, vector<8x8xbf16>, vector<8x8xf32> -> vector<8x8xf32>
    %223 = arith.addf %222, %170 : vector<8x8xf32>
    %cst_90 = arith.constant dense<0xFF800000> : vector<8xf32>
    %224 = vector.multi_reduction <maximumf>, %223, %cst_90 [1] : vector<8x8xf32> to vector<8xf32>
    %225 = vector.shape_cast %224 : vector<8xf32> to vector<8x1xf32>
    %226 = vector.broadcast %225 : vector<8x1xf32> to vector<8x8xf32>
    %227 = arith.subf %223, %226 : vector<8x8xf32>
    %228 = math.exp %227 : vector<8x8xf32>
    %cst_91 = arith.constant dense<0.000000e+00> : vector<8xf32>
    %229 = vector.multi_reduction <add>, %228, %cst_91 [1] : vector<8x8xf32> to vector<8xf32>
    %230 = vector.shape_cast %229 : vector<8xf32> to vector<8x1xf32>
    %231 = tpu.reciprocal %230 {approx = true} : vector<8x1xf32> -> vector<8x1xf32>
    %232 = vector.broadcast %231 : vector<8x1xf32> to vector<8x8xf32>
    %233 = arith.mulf %228, %232 : vector<8x8xf32>
    %234 = arith.truncf %233 : vector<8x8xf32> to vector<8x8xbf16>
    %cst_92 = arith.constant dense<0.000000e+00> : vector<8x8xf32>
    %235 = tpu.matmul %234, %221, %cst_92 {dimension_numbers = #tpu.dot_dimension_numbers<[1], [0], [0], [1], [0, 0, 1, 1], [], []>} : vector<8x8xbf16>, vector<8x8xbf16>, vector<8x8xf32> -> vector<8x8xf32>
    %236 = arith.truncf %235 : vector<8x8xf32> to vector<8x8xbf16>
    %237 = vector.extract_strided_slice %177 {offsets = [8, 0], sizes = [8, 32], strides = [1, 1]} : vector<32x32xbf16> to vector<8x32xbf16>
    %cst_93 = arith.constant dense<0.000000e+00> : vector<8x32xf32>
    %238 = tpu.matmul %236, %237, %cst_93 {dimension_numbers = #tpu.dot_dimension_numbers<[1], [0], [0], [1], [0, 0, 1, 1], [], []>} : vector<8x8xbf16>, vector<8x32xbf16>, vector<8x32xf32> -> vector<8x32xf32>
    %239 = arith.addf %215, %238 : vector<8x32xf32>
    %240 = vector.extract_strided_slice %183 {offsets = [0, 16], sizes = [8, 8], strides = [1, 1]} : vector<8x32xf32> to vector<8x8xf32>
    %241 = arith.truncf %240 : vector<8x8xf32> to vector<8x8xbf16>
    %242 = vector.extract_strided_slice %186 {offsets = [0, 16], sizes = [8, 8], strides = [1, 1]} : vector<8x32xf32> to vector<8x8xf32>
    %243 = arith.truncf %242 : vector<8x8xf32> to vector<8x8xbf16>
    %244 = vector.extract_strided_slice %189 {offsets = [0, 16], sizes = [8, 8], strides = [1, 1]} : vector<8x32xf32> to vector<8x8xf32>
    %245 = arith.truncf %244 : vector<8x8xf32> to vector<8x8xbf16>
    %cst_94 = arith.constant dense<0.000000e+00> : vector<8x8xf32>
    %246 = tpu.matmul %241, %243, %cst_94 {dimension_numbers = #tpu.dot_dimension_numbers<[1], [1], [0], [0], [0, 0, 1, 0], [], []>} : vector<8x8xbf16>, vector<8x8xbf16>, vector<8x8xf32> -> vector<8x8xf32>
    %247 = arith.addf %246, %170 : vector<8x8xf32>
    %cst_95 = arith.constant dense<0xFF800000> : vector<8xf32>
    %248 = vector.multi_reduction <maximumf>, %247, %cst_95 [1] : vector<8x8xf32> to vector<8xf32>
    %249 = vector.shape_cast %248 : vector<8xf32> to vector<8x1xf32>
    %250 = vector.broadcast %249 : vector<8x1xf32> to vector<8x8xf32>
    %251 = arith.subf %247, %250 : vector<8x8xf32>
    %252 = math.exp %251 : vector<8x8xf32>
    %cst_96 = arith.constant dense<0.000000e+00> : vector<8xf32>
    %253 = vector.multi_reduction <add>, %252, %cst_96 [1] : vector<8x8xf32> to vector<8xf32>
    %254 = vector.shape_cast %253 : vector<8xf32> to vector<8x1xf32>
    %255 = tpu.reciprocal %254 {approx = true} : vector<8x1xf32> -> vector<8x1xf32>
    %256 = vector.broadcast %255 : vector<8x1xf32> to vector<8x8xf32>
    %257 = arith.mulf %252, %256 : vector<8x8xf32>
    %258 = arith.truncf %257 : vector<8x8xf32> to vector<8x8xbf16>
    %cst_97 = arith.constant dense<0.000000e+00> : vector<8x8xf32>
    %259 = tpu.matmul %258, %245, %cst_97 {dimension_numbers = #tpu.dot_dimension_numbers<[1], [0], [0], [1], [0, 0, 1, 1], [], []>} : vector<8x8xbf16>, vector<8x8xbf16>, vector<8x8xf32> -> vector<8x8xf32>
    %260 = arith.truncf %259 : vector<8x8xf32> to vector<8x8xbf16>
    %261 = vector.extract_strided_slice %177 {offsets = [16, 0], sizes = [8, 32], strides = [1, 1]} : vector<32x32xbf16> to vector<8x32xbf16>
    %cst_98 = arith.constant dense<0.000000e+00> : vector<8x32xf32>
    %262 = tpu.matmul %260, %261, %cst_98 {dimension_numbers = #tpu.dot_dimension_numbers<[1], [0], [0], [1], [0, 0, 1, 1], [], []>} : vector<8x8xbf16>, vector<8x32xbf16>, vector<8x32xf32> -> vector<8x32xf32>
    %263 = arith.addf %239, %262 : vector<8x32xf32>
    %264 = vector.extract_strided_slice %183 {offsets = [0, 24], sizes = [8, 8], strides = [1, 1]} : vector<8x32xf32> to vector<8x8xf32>
    %265 = arith.truncf %264 : vector<8x8xf32> to vector<8x8xbf16>
    %266 = vector.extract_strided_slice %186 {offsets = [0, 24], sizes = [8, 8], strides = [1, 1]} : vector<8x32xf32> to vector<8x8xf32>
    %267 = arith.truncf %266 : vector<8x8xf32> to vector<8x8xbf16>
    %268 = vector.extract_strided_slice %189 {offsets = [0, 24], sizes = [8, 8], strides = [1, 1]} : vector<8x32xf32> to vector<8x8xf32>
    %269 = arith.truncf %268 : vector<8x8xf32> to vector<8x8xbf16>
    %cst_99 = arith.constant dense<0.000000e+00> : vector<8x8xf32>
    %270 = tpu.matmul %265, %267, %cst_99 {dimension_numbers = #tpu.dot_dimension_numbers<[1], [1], [0], [0], [0, 0, 1, 0], [], []>} : vector<8x8xbf16>, vector<8x8xbf16>, vector<8x8xf32> -> vector<8x8xf32>
    %271 = arith.addf %270, %170 : vector<8x8xf32>
    %cst_100 = arith.constant dense<0xFF800000> : vector<8xf32>
    %272 = vector.multi_reduction <maximumf>, %271, %cst_100 [1] : vector<8x8xf32> to vector<8xf32>
    %273 = vector.shape_cast %272 : vector<8xf32> to vector<8x1xf32>
    %274 = vector.broadcast %273 : vector<8x1xf32> to vector<8x8xf32>
    %275 = arith.subf %271, %274 : vector<8x8xf32>
    %276 = math.exp %275 : vector<8x8xf32>
    %cst_101 = arith.constant dense<0.000000e+00> : vector<8xf32>
    %277 = vector.multi_reduction <add>, %276, %cst_101 [1] : vector<8x8xf32> to vector<8xf32>
    %278 = vector.shape_cast %277 : vector<8xf32> to vector<8x1xf32>
    %279 = tpu.reciprocal %278 {approx = true} : vector<8x1xf32> -> vector<8x1xf32>
    %280 = vector.broadcast %279 : vector<8x1xf32> to vector<8x8xf32>
    %281 = arith.mulf %276, %280 : vector<8x8xf32>
    %282 = arith.truncf %281 : vector<8x8xf32> to vector<8x8xbf16>
    %cst_102 = arith.constant dense<0.000000e+00> : vector<8x8xf32>
    %283 = tpu.matmul %282, %269, %cst_102 {dimension_numbers = #tpu.dot_dimension_numbers<[1], [0], [0], [1], [0, 0, 1, 1], [], []>} : vector<8x8xbf16>, vector<8x8xbf16>, vector<8x8xf32> -> vector<8x8xf32>
    %284 = arith.truncf %283 : vector<8x8xf32> to vector<8x8xbf16>
    %285 = vector.extract_strided_slice %177 {offsets = [24, 0], sizes = [8, 32], strides = [1, 1]} : vector<32x32xbf16> to vector<8x32xbf16>
    %cst_103 = arith.constant dense<0.000000e+00> : vector<8x32xf32>
    %286 = tpu.matmul %284, %285, %cst_103 {dimension_numbers = #tpu.dot_dimension_numbers<[1], [0], [0], [1], [0, 0, 1, 1], [], []>} : vector<8x8xbf16>, vector<8x32xbf16>, vector<8x32xf32> -> vector<8x32xf32>
    %287 = arith.addf %263, %286 : vector<8x32xf32>
    %c0_104 = arith.constant 0 : index
    %c0_105 = arith.constant 0 : index
    %288 = vector.load %arg25[%c0_104, %c0_105] : memref<1x32xf32, #tpu.memory_space<vmem>>, vector<1x32xf32>
    %c0_106 = arith.constant 0 : index
    %c0_107 = arith.constant 0 : index
    %289 = vector.load %arg26[%c0_106, %c0_107] : memref<1x32xf32, #tpu.memory_space<vmem>>, vector<1x32xf32>
    %cst_108 = arith.constant dense<0.000000e+00> : vector<8xf32>
    %290 = vector.multi_reduction <add>, %287, %cst_108 [1] : vector<8x32xf32> to vector<8xf32>
    %291 = vector.shape_cast %290 : vector<8xf32> to vector<8x1xf32>
    %cst_109 = arith.constant 3.200000e+01 : f32
    %292 = vector.broadcast %cst_109 : f32 to vector<8x1xf32>
    %293 = arith.divf %291, %292 : vector<8x1xf32>
    %294 = vector.broadcast %293 : vector<8x1xf32> to vector<8x32xf32>
    %295 = arith.subf %287, %294 : vector<8x32xf32>
    %296 = arith.mulf %295, %295 : vector<8x32xf32>
    %cst_110 = arith.constant dense<0.000000e+00> : vector<8xf32>
    %297 = vector.multi_reduction <add>, %296, %cst_110 [1] : vector<8x32xf32> to vector<8xf32>
    %298 = vector.shape_cast %297 : vector<8xf32> to vector<8x1xf32>
    %cst_111 = arith.constant 3.200000e+01 : f32
    %299 = vector.broadcast %cst_111 : f32 to vector<8x1xf32>
    %300 = arith.divf %298, %299 : vector<8x1xf32>
    %301 = vector.broadcast %293 : vector<8x1xf32> to vector<8x32xf32>
    %302 = arith.subf %287, %301 : vector<8x32xf32>
    %cst_112 = arith.constant 9.99999997E-7 : f32
    %303 = vector.broadcast %cst_112 : f32 to vector<8x1xf32>
    %304 = arith.addf %300, %303 : vector<8x1xf32>
    %305 = math.rsqrt %304 : vector<8x1xf32>
    %306 = vector.broadcast %305 : vector<8x1xf32> to vector<8x32xf32>
    %307 = arith.mulf %302, %306 : vector<8x32xf32>
    %308 = vector.broadcast %288 : vector<1x32xf32> to vector<8x32xf32>
    %309 = arith.mulf %307, %308 : vector<8x32xf32>
    %310 = vector.broadcast %289 : vector<1x32xf32> to vector<8x32xf32>
    %311 = arith.addf %309, %310 : vector<8x32xf32>
    %312 = arith.truncf %311 : vector<8x32xf32> to vector<8x32xbf16>
    %c0_113 = arith.constant 0 : index
    %c0_114 = arith.constant 0 : index
    %313 = vector.load %arg27[%c0_113, %c0_114] : memref<32x64xbf16, #tpu.memory_space<vmem>>, vector<32x64xbf16>
    %cst_115 = arith.constant dense<0.000000e+00> : vector<8x64xf32>
    %314 = tpu.matmul %312, %313, %cst_115 {dimension_numbers = #tpu.dot_dimension_numbers<[1], [0], [0], [1], [0, 0, 1, 1], [], []>} : vector<8x32xbf16>, vector<32x64xbf16>, vector<8x64xf32> -> vector<8x64xf32>
    %c0_116 = arith.constant 0 : index
    %c0_117 = arith.constant 0 : index
    %315 = vector.load %arg28[%c0_116, %c0_117] : memref<1x64xf32, #tpu.memory_space<vmem>>, vector<1x64xf32>
    %316 = vector.broadcast %315 : vector<1x64xf32> to vector<8x64xf32>
    %317 = arith.addf %314, %316 : vector<8x64xf32>
    %cst_118 = arith.constant 0.000000e+00 : f32
    %318 = vector.broadcast %cst_118 : f32 to vector<8x64xf32>
    %319 = arith.maximumf %317, %318 : vector<8x64xf32>
    %320 = arith.truncf %319 : vector<8x64xf32> to vector<8x64xbf16>
    %c0_119 = arith.constant 0 : index
    %c0_120 = arith.constant 0 : index
    %321 = vector.load %arg29[%c0_119, %c0_120] : memref<64x32xbf16, #tpu.memory_space<vmem>>, vector<64x32xbf16>
    %cst_121 = arith.constant dense<0.000000e+00> : vector<8x32xf32>
    %322 = tpu.matmul %320, %321, %cst_121 {dimension_numbers = #tpu.dot_dimension_numbers<[1], [0], [0], [1], [0, 0, 1, 1], [], []>} : vector<8x64xbf16>, vector<64x32xbf16>, vector<8x32xf32> -> vector<8x32xf32>
    %c0_122 = arith.constant 0 : index
    %c0_123 = arith.constant 0 : index
    %323 = vector.load %arg30[%c0_122, %c0_123] : memref<1x32xf32, #tpu.memory_space<vmem>>, vector<1x32xf32>
    %324 = vector.broadcast %323 : vector<1x32xf32> to vector<8x32xf32>
    %325 = arith.addf %322, %324 : vector<8x32xf32>
    %326 = arith.addf %287, %325 : vector<8x32xf32>
    %c0_124 = arith.constant 0 : index
    %c0_125 = arith.constant 0 : index
    %327 = vector.load %arg31[%c0_124, %c0_125] : memref<1x32xf32, #tpu.memory_space<vmem>>, vector<1x32xf32>
    %c0_126 = arith.constant 0 : index
    %c0_127 = arith.constant 0 : index
    %328 = vector.load %arg32[%c0_126, %c0_127] : memref<1x32xf32, #tpu.memory_space<vmem>>, vector<1x32xf32>
    %cst_128 = arith.constant dense<0.000000e+00> : vector<8xf32>
    %329 = vector.multi_reduction <add>, %326, %cst_128 [1] : vector<8x32xf32> to vector<8xf32>
    %330 = vector.shape_cast %329 : vector<8xf32> to vector<8x1xf32>
    %cst_129 = arith.constant 3.200000e+01 : f32
    %331 = vector.broadcast %cst_129 : f32 to vector<8x1xf32>
    %332 = arith.divf %330, %331 : vector<8x1xf32>
    %333 = vector.broadcast %332 : vector<8x1xf32> to vector<8x32xf32>
    %334 = arith.subf %326, %333 : vector<8x32xf32>
    %335 = arith.mulf %334, %334 : vector<8x32xf32>
    %cst_130 = arith.constant dense<0.000000e+00> : vector<8xf32>
    %336 = vector.multi_reduction <add>, %335, %cst_130 [1] : vector<8x32xf32> to vector<8xf32>
    %337 = vector.shape_cast %336 : vector<8xf32> to vector<8x1xf32>
    %cst_131 = arith.constant 3.200000e+01 : f32
    %338 = vector.broadcast %cst_131 : f32 to vector<8x1xf32>
    %339 = arith.divf %337, %338 : vector<8x1xf32>
    %340 = vector.broadcast %332 : vector<8x1xf32> to vector<8x32xf32>
    %341 = arith.subf %326, %340 : vector<8x32xf32>
    %cst_132 = arith.constant 9.99999997E-7 : f32
    %342 = vector.broadcast %cst_132 : f32 to vector<8x1xf32>
    %343 = arith.addf %339, %342 : vector<8x1xf32>
    %344 = math.rsqrt %343 : vector<8x1xf32>
    %345 = vector.broadcast %344 : vector<8x1xf32> to vector<8x32xf32>
    %346 = arith.mulf %341, %345 : vector<8x32xf32>
    %347 = vector.broadcast %327 : vector<1x32xf32> to vector<8x32xf32>
    %348 = arith.mulf %346, %347 : vector<8x32xf32>
    %349 = vector.broadcast %328 : vector<1x32xf32> to vector<8x32xf32>
    %350 = arith.addf %348, %349 : vector<8x32xf32>
    %c0_133 = arith.constant 0 : index
    %c0_134 = arith.constant 0 : index
    %c0_135 = arith.constant 0 : index
    %351 = vector.load %arg33[%c0_133, %c0_134, %c0_135] : memref<1x8x32xf32, #tpu.memory_space<vmem>>, vector<1x8x32xf32>
    %352 = vector.shape_cast %351 : vector<1x8x32xf32> to vector<8x32xf32>
    %353 = vector.shape_cast %350 : vector<8x32xf32> to vector<1x8x32xf32>
    tpu.vector_store %arg33[%c0_133, %c0_134, %c0_135], %353 {strides = array<i32>} : memref<1x8x32xf32, #tpu.memory_space<vmem>>, vector<1x8x32xf32>,
    return
  }
  func.func @transform_0(%arg0: i32) -> (i32, i32, i32) {
    %c0_i32 = arith.constant 0 : i32
    %c0_i32_0 = arith.constant 0 : i32
    %c0_i32_1 = arith.constant 0 : i32
    return %arg0, %c0_i32, %c0_i32_0 : i32, i32, i32
  }
  func.func @transform_1(%arg0: i32) -> (i32, i32, i32) {
    %c0_i32 = arith.constant 0 : i32
    %c0_i32_0 = arith.constant 0 : i32
    %c0_i32_1 = arith.constant 0 : i32
    return %arg0, %c0_i32, %c0_i32_0 : i32, i32, i32
  }
  func.func @transform_2(%arg0: i32) -> (i32, i32) {
    %c0_i32 = arith.constant 0 : i32
    %c0_i32_0 = arith.constant 0 : i32
    %c0_i32_1 = arith.constant 0 : i32
    return %c0_i32, %c0_i32_0 : i32, i32
  }
  func.func @transform_3(%arg0: i32) -> (i32, i32) {
    %c0_i32 = arith.constant 0 : i32
    %c0_i32_0 = arith.constant 0 : i32
    %c0_i32_1 = arith.constant 0 : i32
    return %c0_i32, %c0_i32_0 : i32, i32
  }
  func.func @transform_4(%arg0: i32) -> (i32, i32) {
    %c0_i32 = arith.constant 0 : i32
    %c0_i32_0 = arith.constant 0 : i32
    %c0_i32_1 = arith.constant 0 : i32
    return %c0_i32, %c0_i32_0 : i32, i32
  }
  func.func @transform_5(%arg0: i32) -> (i32, i32) {
    %c0_i32 = arith.constant 0 : i32
    %c0_i32_0 = arith.constant 0 : i32
    %c0_i32_1 = arith.constant 0 : i32
    return %c0_i32, %c0_i32_0 : i32, i32
  }
  func.func @transform_6(%arg0: i32) -> (i32, i32) {
    %c0_i32 = arith.constant 0 : i32
    %c0_i32_0 = arith.constant 0 : i32
    %c0_i32_1 = arith.constant 0 : i32
    return %c0_i32, %c0_i32_0 : i32, i32
  }
  func.func @transform_7(%arg0: i32) -> (i32, i32) {
    %c0_i32 = arith.constant 0 : i32
    %c0_i32_0 = arith.constant 0 : i32
    %c0_i32_1 = arith.constant 0 : i32
    return %c0_i32, %c0_i32_0 : i32, i32
  }
  func.func @transform_8(%arg0: i32) -> (i32, i32) {
    %c0_i32 = arith.constant 0 : i32
    %c0_i32_0 = arith.constant 0 : i32
    %c0_i32_1 = arith.constant 0 : i32
    return %c0_i32, %c0_i32_0 : i32, i32
  }
  func.func @transform_9(%arg0: i32) -> (i32, i32) {
    %c0_i32 = arith.constant 0 : i32
    %c0_i32_0 = arith.constant 0 : i32
    %c0_i32_1 = arith.constant 0 : i32
    return %c0_i32, %c0_i32_0 : i32, i32
  }
  func.func @transform_10(%arg0: i32) -> (i32, i32) {
    %c0_i32 = arith.constant 0 : i32
    %c0_i32_0 = arith.constant 0 : i32
    %c0_i32_1 = arith.constant 0 : i32
    return %c0_i32, %c0_i32_0 : i32, i32
  }
  func.func @transform_11(%arg0: i32) -> (i32, i32) {
    %c0_i32 = arith.constant 0 : i32
    %c0_i32_0 = arith.constant 0 : i32
    %c0_i32_1 = arith.constant 0 : i32
    return %c0_i32, %c0_i32_0 : i32, i32
  }
  func.func @transform_12(%arg0: i32) -> (i32, i32) {
    %c0_i32 = arith.constant 0 : i32
    %c0_i32_0 = arith.constant 0 : i32
    %c0_i32_1 = arith.constant 0 : i32
    return %c0_i32, %c0_i32_0 : i32, i32
  }
  func.func @transform_13(%arg0: i32) -> (i32, i32) {
    %c0_i32 = arith.constant 0 : i32
    %c0_i32_0 = arith.constant 0 : i32
    %c0_i32_1 = arith.constant 0 : i32
    return %c0_i32, %c0_i32_0 : i32, i32
  }
  func.func @transform_14(%arg0: i32) -> (i32, i32) {
    %c0_i32 = arith.constant 0 : i32
    %c0_i32_0 = arith.constant 0 : i32
    %c0_i32_1 = arith.constant 0 : i32
    return %c0_i32, %c0_i32_0 : i32, i32
  }
  func.func @transform_15(%arg0: i32) -> (i32, i32) {
    %c0_i32 = arith.constant 0 : i32
    %c0_i32_0 = arith.constant 0 : i32
    %c0_i32_1 = arith.constant 0 : i32
    return %c0_i32, %c0_i32_0 : i32, i32
  }
  func.func @transform_16(%arg0: i32) -> (i32, i32) {
    %c0_i32 = arith.constant 0 : i32
    %c0_i32_0 = arith.constant 0 : i32
    %c0_i32_1 = arith.constant 0 : i32
    return %c0_i32, %c0_i32_0 : i32, i32
  }
  func.func @transform_17(%arg0: i32) -> (i32, i32) {
    %c0_i32 = arith.constant 0 : i32
    %c0_i32_0 = arith.constant 0 : i32
    %c0_i32_1 = arith.constant 0 : i32
    return %c0_i32, %c0_i32_0 : i32, i32
  }
  func.func @transform_18(%arg0: i32) -> (i32, i32) {
    %c0_i32 = arith.constant 0 : i32
    %c0_i32_0 = arith.constant 0 : i32
    %c0_i32_1 = arith.constant 0 : i32
    return %c0_i32, %c0_i32_0 : i32, i32
  }
  func.func @transform_19(%arg0: i32) -> (i32, i32) {
    %c0_i32 = arith.constant 0 : i32
    %c0_i32_0 = arith.constant 0 : i32
    %c0_i32_1 = arith.constant 0 : i32
    return %c0_i32, %c0_i32_0 : i32, i32
  }
  func.func @transform_20(%arg0: i32) -> (i32, i32) {
    %c0_i32 = arith.constant 0 : i32
    %c0_i32_0 = arith.constant 0 : i32
    %c0_i32_1 = arith.constant 0 : i32
    return %c0_i32, %c0_i32_0 : i32, i32
  }
  func.func @transform_21(%arg0: i32) -> (i32, i32) {
    %c0_i32 = arith.constant 0 : i32
    %c0_i32_0 = arith.constant 0 : i32
    %c0_i32_1 = arith.constant 0 : i32
    return %c0_i32, %c0_i32_0 : i32, i32
  }
  func.func @transform_22(%arg0: i32) -> (i32, i32) {
    %c0_i32 = arith.constant 0 : i32
    %c0_i32_0 = arith.constant 0 : i32
    %c0_i32_1 = arith.constant 0 : i32
    return %c0_i32, %c0_i32_0 : i32, i32
  }
  func.func @transform_23(%arg0: i32) -> (i32, i32) {
    %c0_i32 = arith.constant 0 : i32
    %c0_i32_0 = arith.constant 0 : i32
    %c0_i32_1 = arith.constant 0 : i32
    return %c0_i32, %c0_i32_0 : i32, i32
  }
  func.func @transform_24(%arg0: i32) -> (i32, i32) {
    %c0_i32 = arith.constant 0 : i32
    %c0_i32_0 = arith.constant 0 : i32
    %c0_i32_1 = arith.constant 0 : i32
    return %c0_i32, %c0_i32_0 : i32, i32
  }
  func.func @transform_25(%arg0: i32) -> (i32, i32) {
    %c0_i32 = arith.constant 0 : i32
    %c0_i32_0 = arith.constant 0 : i32
    %c0_i32_1 = arith.constant 0 : i32
    return %c0_i32, %c0_i32_0 : i32, i32
  }
  func.func @transform_26(%arg0: i32) -> (i32, i32) {
    %c0_i32 = arith.constant 0 : i32
    %c0_i32_0 = arith.constant 0 : i32
    %c0_i32_1 = arith.constant 0 : i32
    return %c0_i32, %c0_i32_0 : i32, i32
  }
  func.func @transform_27(%arg0: i32) -> (i32, i32) {
    %c0_i32 = arith.constant 0 : i32
    %c0_i32_0 = arith.constant 0 : i32
    %c0_i32_1 = arith.constant 0 : i32
    return %c0_i32, %c0_i32_0 : i32, i32
  }
  func.func @transform_28(%arg0: i32) -> (i32, i32) {
    %c0_i32 = arith.constant 0 : i32
    %c0_i32_0 = arith.constant 0 : i32
    %c0_i32_1 = arith.constant 0 : i32
    return %c0_i32, %c0_i32_0 : i32, i32
  }
  func.func @transform_29(%arg0: i32) -> (i32, i32) {
    %c0_i32 = arith.constant 0 : i32
    %c0_i32_0 = arith.constant 0 : i32
    %c0_i32_1 = arith.constant 0 : i32
    return %c0_i32, %c0_i32_0 : i32, i32
  }
  func.func @transform_30(%arg0: i32) -> (i32, i32) {
    %c0_i32 = arith.constant 0 : i32
    %c0_i32_0 = arith.constant 0 : i32
    %c0_i32_1 = arith.constant 0 : i32
    return %c0_i32, %c0_i32_0 : i32, i32
  }
  func.func @transform_31(%arg0: i32) -> (i32, i32) {
    %c0_i32 = arith.constant 0 : i32
    %c0_i32_0 = arith.constant 0 : i32
    %c0_i32_1 = arith.constant 0 : i32
    return %c0_i32, %c0_i32_0 : i32, i32
  }
  func.func @transform_32(%arg0: i32) -> (i32, i32, i32) {
    %c0_i32 = arith.constant 0 : i32
    %c0_i32_0 = arith.constant 0 : i32
    %c0_i32_1 = arith.constant 0 : i32
    return %arg0, %c0_i32, %c0_i32_0 : i32, i32, i32
  }
}

</mosaic_0001>

<bundles_post_ra>
// kernel: decoder_forward.2
= control target key start
LH: loop header
LB: loop body
LE: loop exit
PB: predicated region body
PF: predicated region fallthrough
CT: control target
= control target key end

     0   :  { %s3517_s6 = smov 1   ;;  %s3518_s10 = smov 2   ;;  %s4035_s0 = inlined_call_operand.smem [shape: u32[33], index: -1, kind: input, shape index: {}] }
   0x1   :  { %s3560_s5 = sld [smem:[%s4035_s0]]   ;;  %s3519_s14 = smov 3  }
   0x2   :  { %s3565_s9 = sld [smem:[%s4035_s0 + %s3517_s6]]   ;;  %s3520_s18 = smov 4  }
   0x3   :  { %s3570_s13 = sld [smem:[%s4035_s0 + %s3518_s10]]   ;;  %s3521_s22 = smov 5  }
   0x4   :  { %s3575_s17 = sld [smem:[%s4035_s0 + %s3519_s14]]   ;;  %s3522_s26 = smov 6  }
   0x5   :  { %s3580_s21 = sld [smem:[%s4035_s0 + %s3520_s18]]   ;;  %s3523_s30 = smov 7  }
   0x6   :  { %s3585_s25 = sld [smem:[%s4035_s0 + %s3521_s22]]   ;;  %s3524_s4 = smov 8  }
   0x7   :  { %s3590_s29 = sld [smem:[%s4035_s0 + %s3522_s26]]   ;;  %s3525_s10 = smov 9  }
   0x8   :  { %4040 = sst [smem:[#allocation2_spill]] %s3565_s9  ;;  %s3526_s15 = smov 10  }
   0x9   :  { %s3595_s3 = sld [smem:[%s4035_s0 + %s3523_s30]]   ;;  %s3527_s20 = smov 11  }
   0xa   :  { %4041 = sst [smem:[#allocation3_spill]] %s3575_s17  ;;  %s3528_s26 = smov 12  }
   0xb   :  { %s3600_s8 = sld [smem:[%s4035_s0 + %s3524_s4]]   ;;  %s3529_s1 = smov 13  }
   0xc   :  { %s3605_s14 = sld [smem:[%s4035_s0 + %s3525_s10]]   ;;  %s3530_s7 = smov 14  }
   0xd   :  { %s3610_s19 = sld [smem:[%s4035_s0 + %s3526_s15]]   ;;  %s3531_s15 = smov 15  }
   0xe   :  { %s3615_s24 = sld [smem:[%s4035_s0 + %s3527_s20]]   ;;  %s3532_s22 = smov 16  }
   0xf   :  { %s3620_s30 = sld [smem:[%s4035_s0 + %s3528_s26]]   ;;  %s3533_s28 = smov 17  }
  0x10   :  { %s3625_s6 = sld [smem:[%s4035_s0 + %s3529_s1]]  }
  0x11   :  { %s3630_s12 = sld [smem:[%s4035_s0 + %s3530_s7]]   ;;  %s3534_s7 = smov 18  }
  0x12   :  { %s3635_s20 = sld [smem:[%s4035_s0 + %s3531_s15]]   ;;  %s3535_s15 = smov 19  }
  0x13   :  { %s3640_s27 = sld [smem:[%s4035_s0 + %s3532_s22]]   ;;  %s3536_s22 = smov 20  }
  0x14   :  { %s3645_s4 = sld [smem:[%s4035_s0 + %s3533_s28]]   ;;  %s3537_s28 = smov 21  }
  0x15   :  { %s3650_s17 = sld [smem:[%s4035_s0 + %s3534_s7]]   ;;  %s3538_s7 = smov 22  }
  0x16   :  { %s3655_s9 = sld [smem:[%s4035_s0 + %s3535_s15]]   ;;  %s3539_s15 = smov 23  }
  0x18   :  { %4042 = sst [smem:[#allocation4_spill]] %s3635_s20 }
  0x19   :  { %s3660_s20 = sld [smem:[%s4035_s0 + %s3536_s22]]   ;;  %s3540_s22 = smov 24  }
  0x1a   :  { %4043 = sst [smem:[#allocation5_spill]] %s3645_s4 }
  0x1b   :  { %4044 = sst [smem:[#allocation6_spill]] %s3650_s17 }
  0x1c   :  { %4045 = sst [smem:[#allocation7_spill]] %s3655_s9 }
  0x1d   :  { %s3665_s4 = sld [smem:[%s4035_s0 + %s3537_s28]]   ;;  %s3541_s28 = smov 25  }
  0x1e   :  { %s3670_s17 = sld [smem:[%s4035_s0 + %s3538_s7]]   ;;  %s3542_s7 = smov 26  }
  0x1f   :  { %4046 = sst [smem:[#allocation8_spill]] %s3660_s20 }
  0x20   :  { %s3675_s9 = sld [smem:[%s4035_s0 + %s3539_s15]]   ;;  %s3543_s15 = smov 27  }
  0x21   :  { %s3680_s20 = sld [smem:[%s4035_s0 + %s3540_s22]]   ;;  %s3544_s22 = smov 28  }
  0x23   :  { %4047 = sst [smem:[#allocation9_spill]] %s3665_s4 }
  0x24   :  { %4048 = sst [smem:[#allocation10_spill]] %s3670_s17 }
  0x25   :  { %s3685_s4 = sld [smem:[%s4035_s0 + %s3541_s28]]   ;;  %s3545_s28 = smov 29  }
  0x26   :  { %4049 = sst [smem:[#allocation11_spill]] %s3675_s9 }
  0x27   :  { %4050 = sst [smem:[#allocation12_spill]] %s3680_s20 }
  0x28   :  { %s3690_s17 = sld [smem:[%s4035_s0 + %s3542_s7]]   ;;  %s3546_s7 = smov 32  }
  0x29   :  { %s3695_s9 = sld [smem:[%s4035_s0 + %s3543_s15]]   ;;  %s3712_s15 = smov 0  }
  0x2a   :  { %s3700_s20 = sld [smem:[%s4035_s0 + %s3544_s22]]  }
  0x2b   :  { %4051 = sst [smem:[#allocation13_spill]] %s3685_s4 }
  0x2c   :  { %s3705_s4 = sld [smem:[%s4035_s0 + %s3545_s28]]  }
  0x2e   :  { %4052 = sst [smem:[#allocation14_spill]] %s3690_s17 }
  0x2f   :  { %s3710_s17 = sld [smem:[%s4035_s0 + %s3546_s7]]  }
  0x30 LB: > { %s3022_s16 = sadd.s32 4294967295, %s3515_s15   ;;  %p3026_p0 = scmp.ge.s32.totalorder %s3515_s15, 1  ;;  %s3515_s15 = sphi %s3712_s15, %s75_s15  }
  0x31   : > { %p903_p1 = scmp.lt.s32.totalorder %s3515_s15, 3 }
  0x33   : > { %p904_p2 = pnand %p3026_p0, %p903_p1 }
  0x34   : > { %p987_p3 = scmp.lt.s32.totalorder (!%p904_p2), %s3022_s16, 1  ;;  %vm1004_vm0 = vcmask (!%p904_p2), 261120   ;;  %v3453_v7 = vld [vmem:[%s3590_s29] sm:$0xff] (!%p904_p2)   ;;  %v3547_v9 = vmov (!%p904_p2), 0.0   ;;  %v3455_v10 = vld [vmem:[%s3590_s29 + $0x8] sm:$0xff] (!%p904_p2)   ;;  %vm3548_vm1 = vmmov (!%p904_p2), 0  }
  0x35   : > { %907 = sbr.rel (%p904_p2) target bundleno = 5984 (0x1760), region = 148  ;;  %v3454_v8 = vld [vmem:[%s3600_s8] sm:$0xff] (!%p904_p2)   ;;  %3172 = vmatprep.subr.bf16.mxu0 (!%p904_p2), %v3547_v9  ;;  %3180 = vmatprep.subr.bf16.mxu1 (!%p904_p2), %v3547_v9  ;;  %v3456_v11 = vld [vmem:[%s3600_s8 + $0x8] sm:$0xff] (!%p904_p2)   ;;  %vm1242_vm2 = vcmask (!%p904_p2), 64512   ;;  %s3549_s22 = smov (!%p904_p2), 120   ;;  %vm1304_vm3 = vcmask (!%p904_p2), 1043456  }
  0x36   : > { %3173 = vmatpush3.bf16.msra.mxu0 (!%p904_p2), %v3453_v7  ;;  %3181 = vmatpush3.bf16.msra.mxu1 (!%p904_p2), %v3454_v8  ;;  %v3030_v16 = vld [vmem:[%s3580_s21] ss:$0 sm:$0xff] (!%p904_p2)  ;;  %v3458_v23 = vld [vmem:[%s3610_s19 + $0x8] sm:$0xff] (!%p904_p2)   ;;  %s3550_s23 = smov (!%p904_p2), 112   ;;  %s3551_s26 = smov (!%p904_p2), 104   ;;  %vm2881_vm4 = vcmask (!%p904_p2), 523264  }
  0x37   : > { %3174 = vmatprep.subr.bf16.mxu0 (!%p904_p2), %v3547_v9  ;;  %3182 = vmatprep.subr.bf16.mxu1 (!%p904_p2), %v3547_v9  ;;  %v3031_v18 = vld [vmem:[%s3585_s25] ss:$0 sm:$0xff] (!%p904_p2)  ;;  %s4053_s28 = sld [smem:[#allocation4_spill]] (!%p904_p2)  ;;  %s4054_s1 = sld [smem:[#allocation6_spill]] (!%p904_p2) }
  0x38   : > { %3176 = vmatprep.mubr.msk.bf16.mxu0 (!%p904_p2), %vm3548_vm1, %v3547_v9  ;;  %3184 = vmatprep.mubr.msk.bf16.mxu1 (!%p904_p2), %vm3548_vm1, %v3547_v9  ;;  %v3457_v21 = vld [vmem:[%s3610_s19] sm:$0xff] (!%p904_p2)   ;;  %s4055_s2 = sld [smem:[#allocation2_spill]] (!%p904_p2)  ;;  %s4056_s7 = sld [smem:[#allocation5_spill]] (!%p904_p2) }
  0x39   : > { %v3036_v24 = vld [vmem:[%s3605_s14] ss:$0 sm:$0xff] (!%p904_p2)  ;;  %s4057_s11 = sld [smem:[#allocation7_spill]] (!%p904_p2) }
  0x3a   : > { %3175 = vmatpush3.bf16.msra.mxu0 (!%p904_p2), %v3455_v10  ;;  %3183 = vmatpush3.bf16.msra.mxu1 (!%p904_p2), %v3456_v11  ;;  %v3032_v35 = vld [vmem:[%s3595_s3] ss:$0 sm:$0xff] (!%p904_p2) }
  0x3b   : > { %3188 = vmatprep.subr.bf16.mxu0 (!%p904_p2), %v3547_v9  ;;  %3196 = vmatprep.subr.bf16.mxu1 (!%p904_p2), %v3547_v9  ;;  %v3040_v37 = vld [vmem:[%s3615_s24] ss:$0 sm:$0xff] (!%p904_p2) }
  0x3c   : > { %s4067_s16 = smov (!%p987_p3, %s3022_s16), 1  ;;  %v3781_v47 = vld [vmem:[%s3570_s13] sm:$0xff] }
  0x3d   : > { %s3720_s0 = sshll.u32 %s4067_s16, 3  ;;  %s4058_s16 = sld [smem:[#allocation8_spill]] }
  0x3e   : > { %s990_s18 = scalar_lea.vmem %s3560_s5, %s3720_s0  ;;  %s994_s10 = scalar_lea.vmem %s4055_s2, %s3720_s0 }
  0x3f   : > { %v3724_v0 = vld [vmem:[%s990_s18] sm:$0xff]  ;;  %s4059_s18 = sld [smem:[#allocation3_spill]]  ;;  %s4061_s2 = sld [smem:[#allocation10_spill]] }
  0x40   : > { %v1005_v1 = vsel %vm1004_vm0, %v3724_v0, 0.0 }
  0x41   : > { %1006 = vadd.xlane.f32.xlu0 %v1005_v1 }
  0xce   : > { %v1007_v2 = vpop.xlane.xlu0 %1006 }
  0xcf   : > { %v1009_v3 = vmul.f32 0.03125, %v1007_v2 }
  0xd1   : > { %v1010_v4 = vsub.f32 %v3724_v0, %v1009_v3 }
  0xd3   : > { %v1011_v5 = vmul.f32 %v1010_v4, %v1010_v4 }
  0xd5   : > { %v1012_v6 = vsel %vm1004_vm0, %v1011_v5, 0.0 }
  0xd6   : > { %1013 = vadd.xlane.f32.xlu0 %v1012_v6  ;;  %v1049_v6 = vld [vmem:[%s3620_s30] sm:$0xf] }
  0xd7   : > { %v1353_v7 = vsel %vm1304_vm3, %v1049_v6, 0  ;;  %v1051_v6 = vld [vmem:[%s3620_s30 + $0x8] sm:$0xf] }
 0x163   : > { %v1014_v12 = vpop.xlane.xlu0 %1013 }
 0x164   : > { %v1015_v13 = vmul.f32 0.03125, %v1014_v12 }
 0x166   : > { %v1016_v14 = vadd.f32 1e-06, %v1015_v13 }
 0x168   : > { %3471 = vrsqrt.f32 %v1016_v14 }
 0x172   : > { %v3472_v15 = vpop.eup %3471 }
 0x173   : > { %v1018_v17 = vmul.f32 %v3472_v15, %v1010_v4 }
 0x175   : > { %v1025_v19 = vmul.f32 %v3030_v16, %v1018_v17 }
 0x177   : > { %v1032_v20 = vadd.f32 %v3031_v18, %v1025_v19 }
 0x179   : > { %v1054_v22 = vpack.c.bf16 %v1032_v20, %v1032_v20 }
 0x17b   : > { %3177 = vmatmul.mubr.msk.bf16.vlgmr.msra.gmra.mrb[0].mxu0 %vm1004_vm0, %v1054_v22  ;;  %3185 = vmatmul.mubr.msk.bf16.vlgmr.msra.gmra.mrb[0].mxu1 %vm1004_vm0, %v1054_v22 }
 0x17c   : > { %3189 = vmatpush3.bf16.msra.mxu0 %v3457_v21  ;;  %3192 = vmatprep.mubr.msk.bf16.mxu0 %vm3548_vm1, %v3547_v9 }
 0x17d   : > { %3190 = vmatprep.subr.bf16.mxu0 %v3547_v9  ;;  %3198 = vmatprep.mubr.msk.bf16.mxu1 %vm3548_vm1, %v3547_v9 }
 0x180   : > { %3191 = vmatpush3.bf16.msra.mxu0 %v3458_v23 }
 0x181   : > { %3202 = vmatprep.subr.bf16.mxu0 %v3547_v9 }
 0x183   : > { %3193 = vmatmul.mubr.msk.bf16.vlgmr.msra.gmra.mrb[4].mxu0 %vm1004_vm0, %v1054_v22 }
 0x184   : > { %3204 = vmatprep.mubr.msk.bf16.mxu0 %vm3548_vm1, %v3547_v9 }
 0x24e   : > { %v1110_v25 = vpop.f32.mrb[0].mxu0  ;;  %v1168_v26 = vpop.f32.mrb[0].mxu1 }
 0x24f   : > { %v1169_v27 = vadd.f32 %v3036_v24, %v1168_v26  ;;  %v3178_v28 = vpop.f32.mrb[1].mxu0  ;;  %v3186_v29 = vpop.f32.mrb[1].mxu1  ;;  %v1111_v38 = vadd.f32 %v3032_v35, %v1110_v25 }
 0x250   : > { %v1113_v30 = vpop.f32.mrb[2].mxu0  ;;  %v1171_v31 = vpop.f32.mrb[2].mxu1 }
 0x251   : > { %v3760_v32 = vpack.c.bf16 %v1169_v27, %v1169_v27  ;;  %v3179_v33 = vpop.f32.mrb[3].mxu0  ;;  %v3187_v34 = vpop.f32.mrb[3].mxu1  ;;  %v3769_v43 = vpack.c.bf16 %v1111_v38, %v1111_v38 }
 0x253   : > { %1400 = vrot.lane.b32.xlu0 %v3760_v32, %s3549_s22  ;;  %v1247_v36 = vsel %vm1242_vm2, %v3760_v32, 0 }
 0x254   : > { %3197 = vmatpush3.bf16.xpose.msra.mxu1 %v1247_v36 }
 0x255   : > { %3208 = vmatprep.subr.bf16.mxu1 %v3547_v9 }
 0x256   : > { %v1226_v39 = vpop.f32.mrb[4].mxu0 }
 0x257   : > { %v1227_v40 = vadd.f32 %v3040_v37, %v1226_v39  ;;  %v3194_v41 = vpop.f32.mrb[5].mxu0 }
 0x258   : > { %v1229_v42 = vpop.f32.mrb[6].mxu0 }
 0x259   : > { %v3771_v44 = vpack.c.bf16 %v1227_v40, %v1227_v40  ;;  %v3195_v45 = vpop.f32.mrb[7].mxu0 }
 0x25b   : > { %3199 = vmatmul.mubr.msk.bf16.vlgmr.msra.gmra.mrb[4].mxu1 %vm1242_vm2, %v3769_v43  ;;  %v1306_v46 = vsel %vm1304_vm3, %v3771_v44, 0 }
 0x25c   : > { %3203 = vmatpush3.bf16.msra.mxu0 %v1306_v46  ;;  %3210 = vmatprep.mubr.msk.bf16.mxu1 %vm3548_vm1, %v3547_v9 }
 0x25d   : > { %3214 = vmatprep.subr.bf16.mxu0 %v3547_v9  ;;  %3209 = vmatpush3.bf16.msra.mxu1 %v1353_v7 }
 0x25e   : > { %3220 = vmatprep.subr.bf16.mxu1 %v3547_v9 }
 0x2c5   : > { %v1401_v62 = vpop.permute.xlu0 %1400 }
 0x2c6   : > { %v1406_v2 = vsel %vm1242_vm2, %v1401_v62, 0 }
 0x32e   : > { %v1283_v48 = vpop.f32.mrb[4].mxu1 }
 0x32f   : > { %v1284_v49 = vadd.f32 %v1283_v48, %v3781_v47  ;;  %v3200_v50 = vpop.f32.mrb[5].mxu1 }
 0x330   : > { %v1286_v51 = vpop.f32.mrb[6].mxu1 }
 0x331   : > { %v3201_v52 = vpop.f32.mrb[7].mxu1  ;;  %v1289_v53 = vsel %vm1242_vm2, %v1284_v49, -inf }
 0x332   : > { %1290 = vmax.xlane.f32.xlu1 %v1289_v53 }
 0x3bf   : > { %v1291_v54 = vpop.xlane.xlu1 %1290 }
 0x3c0   : > { %v1292_v55 = vsub.f32 %v1284_v49, %v1291_v54 }
 0x3c2   : > { %v1293_v56 = vmul.f32 1.442695, %v1292_v55 }
 0x3c4   : > { %3473 = vpow2.f32 %v1293_v56 }
 0x3ce   : > { %v3474_v57 = vpop.eup %3473 }
 0x3cf   : > { %v1295_v58 = vsel %vm1242_vm2, %v3474_v57, 0.0 }
 0x3d0   : > { %1296 = vadd.xlane.f32.xlu1 %v1295_v58 }
 0x3e1   : > { %1397 = vrot.lane.b32.xlu1 %v3769_v43, %s3549_s22 }
 0x3e5   : > { %1559 = vrot.lane.b32.xlu1 %v3760_v32, %s3550_s23 }
 0x3e9   : > { %1557 = vrot.lane.b32.xlu1 %v3769_v43, %s3550_s23 }
 0x45d   : > { %v1297_v59 = vpop.xlane.xlu1 %1296 }
 0x45e   : > { %3475 = vrcp.f32 %v1297_v59 }
 0x461   : > { %v1398_v1 = vpop.permute.xlu1 %1397 }
 0x465   : > { %v1560_v3 = vpop.permute.xlu1 %1559 }
 0x466   : > { %v1565_v4 = vsel %vm1242_vm2, %v1560_v3, 0 }
 0x468   : > { %v3476_v60 = vpop.eup %3475 }
 0x469   : > { %v1299_v61 = vmul.f32 %v3476_v60, %v3474_v57  ;;  %v1558_v5 = vpop.permute.xlu1 %1557 }
 0x46b   : > { %v1300_v63 = vpack.c.bf16 %v1299_v61, %v1299_v61 }
 0x46d   : > { %3205 = vmatmul.mubr.msk.bf16.vlgmr.msra.gmra.mrb[8].mxu0 %vm1242_vm2, %v1300_v63  ;;  %v1050_v63 = vld [vmem:[%s3620_s30 + $0x4] sm:$0xf] }
 0x46e   : > { %3215 = vmatpush3.bf16.xpose.msra.mxu0 %v1406_v2  ;;  %3216 = vmatprep.mubr.msk.bf16.mxu0 %vm3548_vm1, %v3547_v9 }
 0x46f   : > { %3232 = vmatprep.subr.bf16.mxu0 %v3547_v9 }
 0x475   : > { %3217 = vmatmul.mubr.msk.bf16.vlgmr.msra.gmra.mrb[12].mxu0 %vm1242_vm2, %v1398_v1  ;;  %v1514_v1 = vsel %vm1304_vm3, %v1050_v63, 0 }
 0x476   : > { %3233 = vmatpush3.bf16.xpose.msra.mxu0 %v1565_v4  ;;  %3234 = vmatprep.mubr.msk.bf16.mxu0 %vm3548_vm1, %v3547_v9 }
 0x477   : > { %3238 = vmatprep.subr.bf16.mxu0 %v3547_v9 }
 0x47d   : > { %3235 = vmatmul.mubr.msk.bf16.vlgmr.msra.gmra.mrb[16].mxu0 %vm1242_vm2, %v1558_v5 }
 0x47e   : > { %3240 = vmatprep.mubr.msk.bf16.mxu0 %vm3548_vm1, %v3547_v9 }
 0x540   : > { %v1342_v8 = vpop.f32.mrb[8].mxu0 }
 0x541   : > { %v1348_v10 = vpack.c.bf16 %v1342_v8, %v1342_v8  ;;  %v3206_v11 = vpop.f32.mrb[9].mxu0 }
 0x542   : > { %v1345_v12 = vpop.f32.mrb[10].mxu0  ;;  %v1672_v11 = vsel %vm1304_vm3, %v1051_v6, 0 }
 0x543   : > { %v3207_v13 = vpop.f32.mrb[11].mxu0  ;;  %3211 = vmatmul.mubr.msk.bf16.vlgmr.msra.gmra.mrb[8].mxu1 %vm1242_vm2, %v1348_v10 }
 0x544   : > { %3222 = vmatprep.mubr.msk.bf16.mxu1 %vm3548_vm1, %v3547_v9 }
 0x548   : > { %v1442_v14 = vpop.f32.mrb[12].mxu0 }
 0x549   : > { %v3218_v15 = vpop.f32.mrb[13].mxu0  ;;  %v1443_v31 = vadd.f32 %v1442_v14, %v3781_v47 }
 0x54a   : > { %v1445_v16 = vpop.f32.mrb[14].mxu0 }
 0x54b   : > { %v3219_v17 = vpop.f32.mrb[15].mxu0  ;;  %v1448_v33 = vsel %vm1242_vm2, %v1443_v31, -inf }
 0x550   : > { %v1601_v18 = vpop.f32.mrb[16].mxu0 }
 0x551   : > { %v1602_v19 = vadd.f32 %v1601_v18, %v3781_v47  ;;  %v3236_v20 = vpop.f32.mrb[17].mxu0  ;;  %v1052_v18 = vld [vmem:[%s3620_s30 + $0xc] sm:$0xf] }
 0x552   : > { %v1604_v21 = vpop.f32.mrb[18].mxu0 }
 0x553   : > { %v3237_v22 = vpop.f32.mrb[19].mxu0  ;;  %v1607_v23 = vsel %vm1242_vm2, %v1602_v19, -inf  ;;  %v1830_v21 = vsel %vm1304_vm3, %v1052_v18, 0 }
 0x554   : > { %1608 = vmax.xlane.f32.xlu0 %v1607_v23 }
 0x56a   : > { %1619 = vrot.lane.b32.xlu0 %v3771_v44, %s3550_s23 }
 0x56e   : > { %1715 = vrot.lane.b32.xlu0 %v3769_v43, %s3551_s26 }
 0x5e1   : > { %v1609_v24 = vpop.xlane.xlu0 %1608 }
 0x5e2   : > { %v1610_v25 = vsub.f32 %v1602_v19, %v1609_v24 }
 0x5e4   : > { %v1611_v26 = vmul.f32 1.442695, %v1610_v25 }
 0x5e5   : > { %v1620_v27 = vpop.permute.xlu0 %1619 }
 0x5e6   : > { %3477 = vpow2.f32 %v1611_v26  ;;  %v1625_v28 = vsel %vm1304_vm3, %v1620_v27, 0  ;;  %v3044_v27 = vld [vmem:[%s3625_s6] ss:$0 sm:$0xff] }
 0x5e7   : > { %3239 = vmatpush3.bf16.msra.mxu0 %v1625_v28  ;;  %v1238_v28 = vadd.f32 %v3044_v27, %v3724_v0 }
 0x5e8   : > { %3250 = vmatprep.subr.bf16.mxu0 %v3547_v9 }
 0x5f0   : > { %v3478_v29 = vpop.eup %3477 }
 0x5f1   : > { %v1613_v30 = vsel %vm1242_vm2, %v3478_v29, 0.0 }
 0x5f2   : > { %1614 = vadd.xlane.f32.xlu1 %v1613_v30 }
 0x603   : > { %1717 = vrot.lane.b32.xlu1 %v3760_v32, %s3551_s26  ;;  %v1716_v32 = vpop.permute.xlu0 %1715 }
 0x627   : > { %1449 = vmax.xlane.f32.xlu1 %v1448_v33 }
 0x67f   : > { %v1615_v34 = vpop.xlane.xlu1 %1614 }
 0x680   : > { %3479 = vrcp.f32 %v1615_v34 }
 0x683   : > { %v1718_v37 = vpop.permute.xlu1 %1717 }
 0x684   : > { %v1723_v39 = vsel %vm1242_vm2, %v1718_v37, 0 }
 0x68a   : > { %v3480_v35 = vpop.eup %3479 }
 0x68b   : > { %v1617_v36 = vmul.f32 %v3480_v35, %v3478_v29 }
 0x68d   : > { %v1618_v38 = vpack.c.bf16 %v1617_v36, %v1617_v36 }
 0x68f   : > { %3241 = vmatmul.mubr.msk.bf16.vlgmr.msra.gmra.mrb[20].mxu0 %vm1242_vm2, %v1618_v38 }
 0x690   : > { %3251 = vmatpush3.bf16.xpose.msra.mxu0 %v1723_v39  ;;  %3252 = vmatprep.mubr.msk.bf16.mxu0 %vm3548_vm1, %v3547_v9 }
 0x691   : > { %3268 = vmatprep.subr.bf16.mxu0 %v3547_v9 }
 0x697   : > { %3253 = vmatmul.mubr.msk.bf16.vlgmr.msra.gmra.mrb[24].mxu0 %vm1242_vm2, %v1716_v32  ;;  %v3459_v32 = vld [vmem:[%s3640_s27] sm:$0xff]  }
 0x698   : > { %3272 = vmatprep.mubr.msk.bf16.mxu0 %vm3548_vm1, %v3547_v9  ;;  %3269 = vmatpush3.bf16.msra.mxu0 %v3459_v32 }
 0x699   : > { %3270 = vmatprep.subr.bf16.mxu0 %v3547_v9 }
 0x6b4   : > { %v1450_v40 = vpop.xlane.xlu1 %1449 }
 0x6b5   : > { %v1451_v41 = vsub.f32 %v1443_v31, %v1450_v40  ;;  %v3460_v40 = vld [vmem:[%s3640_s27 + $0x8] sm:$0xff]  }
 0x6b6   : > { %3271 = vmatpush3.bf16.msra.mxu0 %v3460_v40  ;;  %v1918_v40 = vld [vmem:[%s4061_s2] sm:$0xf] }
 0x6b7   : > { %v1452_v42 = vmul.f32 1.442695, %v1451_v41  ;;  %3276 = vmatprep.subr.bf16.mxu0 %v3547_v9 }
 0x6b9   : > { %3481 = vpow2.f32 %v1452_v42 }
 0x6c3   : > { %v3482_v43 = vpop.eup %3481 }
 0x6c4   : > { %v1454_v45 = vsel %vm1242_vm2, %v3482_v43, 0.0 }
 0x6c5   : > { %1455 = vadd.xlane.f32.xlu0 %v1454_v45 }
 0x6db   : > { %1461 = vrot.lane.b32.xlu0 %v3771_v44, %s3549_s22 }
 0x752   : > { %v1456_v46 = vpop.xlane.xlu0 %1455 }
 0x753   : > { %3483 = vrcp.f32 %v1456_v46  ;;  %v3057_v46 = vld [vmem:[%s3630_s12] ss:$0 sm:$0xff] }
 0x756   : > { %v1462_v48 = vpop.permute.xlu0 %1461 }
 0x757   : > { %v1467_v49 = vsel %vm1304_vm3, %v1462_v48, 0 }
 0x758   : > { %3221 = vmatpush3.bf16.msra.mxu1 %v1467_v49  ;;  %v3058_v49 = vld [vmem:[%s4053_s28] ss:$0 sm:$0xff]  ;;  %s4060_s28 = sld [smem:[#allocation9_spill]] }
 0x759   : > { %3226 = vmatprep.subr.bf16.mxu1 %v3547_v9 }
 0x75d   : > { %v3484_v50 = vpop.eup %3483 }
 0x75e   : > { %v1458_v51 = vmul.f32 %v3484_v50, %v3482_v43 }
 0x760   : > { %v1459_v52 = vpack.c.bf16 %v1458_v51, %v1458_v51 }
 0x762   : > { %3223 = vmatmul.mubr.msk.bf16.vlgmr.msra.gmra.mrb[12].mxu1 %vm1242_vm2, %v1459_v52  ;;  %v1661_v53 = vpop.f32.mrb[20].mxu0  ;;  %v3461_v52 = vld [vmem:[%s4054_s1] sm:$0xff]  }
 0x763   : > { %v3242_v54 = vpop.f32.mrb[21].mxu0  ;;  %3228 = vmatprep.mubr.msk.bf16.mxu1 %vm3548_vm1, %v3547_v9  ;;  %3227 = vmatpush3.bf16.msra.mxu1 %v1514_v1  ;;  %v1667_v14 = vpack.c.bf16 %v1661_v53, %v1661_v53  ;;  %v3063_v1 = vld [vmem:[%s4057_s11] ss:$0 sm:$0xff] }
 0x764   : > { %v1664_v55 = vpop.f32.mrb[22].mxu0  ;;  %3244 = vmatprep.subr.bf16.mxu1 %v3547_v9  ;;  %v1001_v54 = vld [vmem:[%s994_s10] sm:$0xff]  ;;  %s998_s10 = scalar_lea.vmem %s3710_s17, %s3720_s0 }
 0x765   : > { %v3243_v56 = vpop.f32.mrb[23].mxu0  ;;  %v3462_v55 = vld [vmem:[%s4054_s1 + $0x8] sm:$0xff]  }
 0x766   : > { %v1924_v56 = vpack.c.bf16 %v1001_v54, %v1001_v54 }
 0x76a   : > { %v1759_v57 = vpop.f32.mrb[24].mxu0 }
 0x76b   : > { %v1760_v58 = vadd.f32 %v1759_v57, %v3781_v47  ;;  %v3254_v59 = vpop.f32.mrb[25].mxu0  ;;  %v3059_v57 = vld [vmem:[%s4056_s7] ss:$0 sm:$0xff]  ;;  %s4065_s7 = sld [smem:[#allocation13_spill]] }
 0x76c   : > { %v1762_v60 = vpop.f32.mrb[26].mxu0 }
 0x76d   : > { %v3255_v61 = vpop.f32.mrb[27].mxu0  ;;  %v1765_v62 = vsel %vm1242_vm2, %v1760_v58, -inf }
 0x76e   : > { %1766 = vmax.xlane.f32.xlu1 %v1765_v62 }
 0x7fb   : > { %v1767_v2 = vpop.xlane.xlu1 %1766 }
 0x7fc   : > { %v1768_v3 = vsub.f32 %v1760_v58, %v1767_v2 }
 0x7fe   : > { %v1769_v4 = vmul.f32 1.442695, %v1768_v3 }
 0x800   : > { %3485 = vpow2.f32 %v1769_v4 }
 0x80a   : > { %v3486_v5 = vpop.eup %3485 }
 0x80b   : > { %v1771_v47 = vsel %vm1242_vm2, %v3486_v5, 0.0 }
 0x80c   : > { %1772 = vadd.xlane.f32.xlu1 %v1771_v47 }
 0x81d   : > { %1777 = vrot.lane.b32.xlu1 %v3771_v44, %s3551_s26 }
 0x835   : > { %v1503_v7 = vpop.f32.mrb[12].mxu1 }
 0x836   : > { %v1509_v8 = vpack.c.bf16 %v1503_v7, %v1503_v7  ;;  %v3224_v10 = vpop.f32.mrb[13].mxu1 }
 0x837   : > { %v1506_v12 = vpop.f32.mrb[14].mxu1  ;;  %v3464_v10 = vld [vmem:[%s4058_s16 + $0x8] sm:$0xff]  }
 0x838   : > { %v3225_v13 = vpop.f32.mrb[15].mxu1  ;;  %3229 = vmatmul.mubr.msk.bf16.vlgmr.msra.gmra.mrb[8].mxu1 %vm1242_vm2, %v1509_v8  ;;  %v3463_v8 = vld [vmem:[%s4058_s16] sm:$0xff]  }
 0x839   : > { %3245 = vmatpush3.bf16.msra.mxu1 %v1672_v11  ;;  %3246 = vmatprep.mubr.msk.bf16.mxu1 %vm3548_vm1, %v3547_v9  ;;  %v3919_v11 = vld [vmem:[%s4059_s18] sm:$0xff] }
 0x83a   : > { %3256 = vmatprep.subr.bf16.mxu1 %v3547_v9 }
 0x844   : > { %3247 = vmatmul.mubr.msk.bf16.vlgmr.msra.gmra.mrb[8].mxu1 %vm1242_vm2, %v1667_v14 }
 0x845   : > { %3258 = vmatprep.mubr.msk.bf16.mxu1 %vm3548_vm1, %v3547_v9 }
 0x899   : > { %v1773_v44 = vpop.xlane.xlu1 %1772 }
 0x89a   : > { %3487 = vrcp.f32 %v1773_v44 }
 0x89d   : > { %v1778_v15 = vpop.permute.xlu1 %1777 }
 0x89e   : > { %v1783_v16 = vsel %vm1304_vm3, %v1778_v15, 0 }
 0x89f   : > { %3257 = vmatpush3.bf16.msra.mxu1 %v1783_v16 }
 0x8a0   : > { %3262 = vmatprep.subr.bf16.mxu1 %v3547_v9 }
 0x8a4   : > { %v3488_v17 = vpop.eup %3487 }
 0x8a5   : > { %v1775_v19 = vmul.f32 %v3488_v17, %v3486_v5 }
 0x8a7   : > { %v1776_v20 = vpack.c.bf16 %v1775_v19, %v1775_v19 }
 0x8a9   : > { %3259 = vmatmul.mubr.msk.bf16.vlgmr.msra.gmra.mrb[16].mxu1 %vm1242_vm2, %v1776_v20 }
 0x8aa   : > { %3263 = vmatpush3.bf16.msra.mxu1 %v1830_v21  ;;  %3264 = vmatprep.mubr.msk.bf16.mxu1 %vm3548_vm1, %v3547_v9 }
 0x8ab   : > { %3284 = vmatprep.subr.bf16.mxu1 %v3547_v9 }
 0x97c   : > { %v1819_v22 = vpop.f32.mrb[16].mxu1 }
 0x97d   : > { %v1825_v23 = vpack.c.bf16 %v1819_v22, %v1819_v22  ;;  %v3260_v24 = vpop.f32.mrb[17].mxu1 }
 0x97e   : > { %v1822_v25 = vpop.f32.mrb[18].mxu1 }
 0x97f   : > { %v3261_v26 = vpop.f32.mrb[19].mxu1  ;;  %3265 = vmatmul.mubr.msk.bf16.vlgmr.msra.gmra.mrb[8].mxu1 %vm1242_vm2, %v1825_v23 }
 0x980   : > { %3288 = vmatprep.mubr.msk.bf16.mxu1 %vm3548_vm1, %v3547_v9  ;;  %3285 = vmatpush3.bf16.msra.mxu1 %v3463_v8  ;;  %v3067_v26 = vld [vmem:[%s4060_s28] ss:$0 sm:$0xff] }
 0x981   : > { %3286 = vmatprep.subr.bf16.mxu1 %v3547_v9 }
 0x984   : > { %3287 = vmatpush3.bf16.msra.mxu1 %v3464_v10 }
 0x985   : > { %3298 = vmatprep.subr.bf16.mxu1 %v3547_v9 }
 0x987   : > { %3289 = vmatmul.mubr.msk.bf16.vlgmr.msra.gmra.mrb[20].mxu1 %vm1004_vm0, %v1924_v56 }
 0x988   : > { %3300 = vmatprep.mubr.msk.bf16.mxu1 %vm3548_vm1, %v3547_v9 }
 0xa52   : > { %v1866_v29 = vpop.f32.mrb[8].mxu1 }
 0xa53   : > { %v3870_v30 = vadd.f32 %v1866_v29, %v1238_v28  ;;  %v3266_v31 = vpop.f32.mrb[9].mxu1 }
 0xa54   : > { %v1869_v33 = vpop.f32.mrb[10].mxu1 }
 0xa55   : > { %v3267_v34 = vpop.f32.mrb[11].mxu1  ;;  %v1875_v35 = vsel %vm1004_vm0, %v3870_v30, 0.0 }
 0xa56   : > { %1876 = vadd.xlane.f32.xlu0 %v1875_v35 }
 0xa5a   : > { %v2099_v17 = vpop.f32.mrb[20].mxu1 }
 0xa5b   : > { %v3290_v18 = vpop.f32.mrb[21].mxu1  ;;  %v2100_v27 = vadd.f32 %v3067_v26, %v2099_v17 }
 0xa5c   : > { %v2102_v19 = vpop.f32.mrb[22].mxu1 }
 0xa5d   : > { %v3291_v20 = vpop.f32.mrb[23].mxu1  ;;  %v3925_v28 = vpack.c.bf16 %v2100_v27, %v2100_v27 }
 0xa5f   : > { %v2177_v29 = vsel %vm1304_vm3, %v3925_v28, 0 }
 0xa60   : > { %3299 = vmatpush3.bf16.msra.mxu1 %v2177_v29 }
 0xa61   : > { %3310 = vmatprep.subr.bf16.mxu1 %v3547_v9 }
 0xae3   : > { %v1877_v36 = vpop.xlane.xlu0 %1876 }
 0xae4   : > { %v1878_v37 = vmul.f32 0.03125, %v1877_v36 }
 0xae6   : > { %v1879_v38 = vsub.f32 %v3870_v30, %v1878_v37 }
 0xae8   : > { %v1880_v39 = vmul.f32 %v1879_v38, %v1879_v38 }
 0xaea   : > { %v1881_v0 = vsel %vm1004_vm0, %v1880_v39, 0.0 }
 0xaeb   : > { %1882 = vadd.xlane.f32.xlu1 %v1881_v0 }
 0xb78   : > { %v1883_v41 = vpop.xlane.xlu1 %1882 }
 0xb79   : > { %v1884_v42 = vmul.f32 0.03125, %v1883_v41  ;;  %v2224_v41 = vsel %vm1304_vm3, %v1918_v40, 0  ;;  %v1920_v40 = vld [vmem:[%s4061_s2 + $0x8] sm:$0xf] }
 0xb7b   : > { %v1885_v43 = vadd.f32 1e-06, %v1884_v42 }
 0xb7d   : > { %3489 = vrsqrt.f32 %v1885_v43 }
 0xb87   : > { %v3490_v45 = vpop.eup %3489 }
 0xb88   : > { %v1887_v48 = vmul.f32 %v3490_v45, %v1879_v38 }
 0xb8a   : > { %v1894_v50 = vmul.f32 %v3057_v46, %v1887_v48 }
 0xb8c   : > { %v1901_v51 = vadd.f32 %v3058_v49, %v1894_v50 }
 0xb8e   : > { %v1923_v53 = vpack.c.bf16 %v1901_v51, %v1901_v51 }
 0xb90   : > { %3273 = vmatmul.mubr.msk.bf16.vlgmr.msra.gmra.mrb[28].mxu0 %vm1004_vm0, %v1923_v53 }
 0xb91   : > { %3277 = vmatpush3.bf16.msra.mxu0 %v3461_v52  ;;  %3280 = vmatprep.mubr.msk.bf16.mxu0 %vm3548_vm1, %v3547_v9 }
 0xb92   : > { %3278 = vmatprep.subr.bf16.mxu0 %v3547_v9 }
 0xb95   : > { %3279 = vmatpush3.bf16.msra.mxu0 %v3462_v55 }
 0xb96   : > { %3292 = vmatprep.subr.bf16.mxu0 %v3547_v9 }
 0xb98   : > { %3281 = vmatmul.mubr.msk.bf16.vlgmr.msra.gmra.mrb[32].mxu0 %vm1004_vm0, %v1924_v56 }
 0xb99   : > { %3294 = vmatprep.mubr.msk.bf16.mxu0 %vm3548_vm1, %v3547_v9 }
 0xc63   : > { %v1980_v58 = vpop.f32.mrb[28].mxu0 }
 0xc64   : > { %v1981_v59 = vadd.f32 %v3059_v57, %v1980_v58  ;;  %v3274_v60 = vpop.f32.mrb[29].mxu0 }
 0xc65   : > { %v1983_v61 = vpop.f32.mrb[30].mxu0 }
 0xc66   : > { %v3895_v62 = vpack.c.bf16 %v1981_v59, %v1981_v59  ;;  %v3275_v63 = vpop.f32.mrb[31].mxu0 }
 0xc68   : > { %2268 = vrot.lane.b32.xlu1 %v3895_v62, %s3549_s22 }
 0xc6b   : > { %v2041_v2 = vpop.f32.mrb[32].mxu0 }
 0xc6c   : > { %v2042_v3 = vadd.f32 %v3063_v1, %v2041_v2  ;;  %v3282_v4 = vpop.f32.mrb[33].mxu0 }
 0xc6d   : > { %v2044_v5 = vpop.f32.mrb[34].mxu0 }
 0xc6e   : > { %v3900_v47 = vpack.c.bf16 %v2042_v3, %v2042_v3  ;;  %v3283_v6 = vpop.f32.mrb[35].mxu0 }
 0xc70   : > { %2430 = vrot.lane.b32.xlu1 %v3900_v47, %s3550_s23  ;;  %v2119_v7 = vsel %vm1242_vm2, %v3900_v47, 0 }
 0xc71   : > { %3293 = vmatpush3.bf16.xpose.msra.mxu0 %v2119_v7 }
 0xc72   : > { %3304 = vmatprep.subr.bf16.mxu0 %v3547_v9 }
 0xc78   : > { %3295 = vmatmul.mubr.msk.bf16.vlgmr.msra.gmra.mrb[36].mxu0 %vm1242_vm2, %v3895_v62 }
 0xc79   : > { %3306 = vmatprep.mubr.msk.bf16.mxu0 %vm3548_vm1, %v3547_v9  ;;  %3305 = vmatpush3.bf16.msra.mxu0 %v2224_v41 }
 0xc7a   : > { %3316 = vmatprep.subr.bf16.mxu0 %v3547_v9 }
 0xcda   : > { %v2269_v38 = vpop.permute.xlu1 %2268 }
 0xce2   : > { %v2431_v39 = vpop.permute.xlu1 %2430 }
 0xce3   : > { %v2436_v0 = vsel %vm1242_vm2, %v2431_v39, 0 }
 0xd4b   : > { %v2155_v12 = vpop.f32.mrb[36].mxu0 }
 0xd4c   : > { %v2156_v13 = vadd.f32 %v2155_v12, %v3919_v11  ;;  %v3296_v14 = vpop.f32.mrb[37].mxu0 }
 0xd4d   : > { %v2158_v44 = vpop.f32.mrb[38].mxu0 }
 0xd4e   : > { %v3297_v15 = vpop.f32.mrb[39].mxu0  ;;  %v2161_v16 = vsel %vm1242_vm2, %v2156_v13, -inf }
 0xd4f   : > { %2162 = vmax.xlane.f32.xlu0 %v2161_v16 }
 0xddc   : > { %v2163_v21 = vpop.xlane.xlu0 %2162 }
 0xddd   : > { %v2164_v22 = vsub.f32 %v2156_v13, %v2163_v21 }
 0xddf   : > { %v2165_v23 = vmul.f32 1.442695, %v2164_v22 }
 0xde1   : > { %3491 = vpow2.f32 %v2165_v23 }
 0xdeb   : > { %v3492_v24 = vpop.eup %3491 }
 0xdec   : > { %v2167_v25 = vsel %vm1242_vm2, %v3492_v24, 0.0 }
 0xded   : > { %2168 = vadd.xlane.f32.xlu0 %v2167_v25 }
 0xe03   : > { %2271 = vrot.lane.b32.xlu0 %v3900_v47, %s3549_s22 }
 0xe07   : > { %2428 = vrot.lane.b32.xlu0 %v3895_v62, %s3550_s23 }
 0xe7a   : > { %v2169_v31 = vpop.xlane.xlu0 %2168 }
 0xe7b   : > { %3493 = vrcp.f32 %v2169_v31 }
 0xe7e   : > { %v2272_v35 = vpop.permute.xlu0 %2271 }
 0xe7f   : > { %v2277_v37 = vsel %vm1242_vm2, %v2272_v35, 0 }
 0xe82   : > { %v2429_v32 = vpop.permute.xlu0 %2428 }
 0xe85   : > { %v3494_v33 = vpop.eup %3493 }
 0xe86   : > { %v2171_v34 = vmul.f32 %v3494_v33, %v3492_v24 }
 0xe88   : > { %v2172_v36 = vpack.c.bf16 %v2171_v34, %v2171_v34 }
 0xe8a   : > { %3301 = vmatmul.mubr.msk.bf16.vlgmr.msra.gmra.mrb[24].mxu1 %vm1242_vm2, %v2172_v36  ;;  %v1919_v36 = vld [vmem:[%s4061_s2 + $0x4] sm:$0xf] }
 0xe8b   : > { %3311 = vmatpush3.bf16.xpose.msra.mxu1 %v2277_v37  ;;  %3312 = vmatprep.mubr.msk.bf16.mxu1 %vm3548_vm1, %v3547_v9  ;;  %v2385_v37 = vsel %vm1304_vm3, %v1919_v36, 0 }
 0xe8c   : > { %3328 = vmatprep.subr.bf16.mxu1 %v3547_v9 }
 0xe92   : > { %3313 = vmatmul.mubr.msk.bf16.vlgmr.msra.gmra.mrb[28].mxu1 %vm1242_vm2, %v2269_v38 }
 0xe93   : > { %3329 = vmatpush3.bf16.xpose.msra.mxu1 %v2436_v0  ;;  %3330 = vmatprep.mubr.msk.bf16.mxu1 %vm3548_vm1, %v3547_v9 }
 0xe94   : > { %3334 = vmatprep.subr.bf16.mxu1 %v3547_v9 }
 0xe9a   : > { %3331 = vmatmul.mubr.msk.bf16.vlgmr.msra.gmra.mrb[32].mxu1 %vm1242_vm2, %v2429_v32 }
 0xe9b   : > { %3336 = vmatprep.mubr.msk.bf16.mxu1 %vm3548_vm1, %v3547_v9 }
 0xf5d   : > { %v2213_v42 = vpop.f32.mrb[24].mxu1 }
 0xf5e   : > { %v2219_v43 = vpack.c.bf16 %v2213_v42, %v2213_v42  ;;  %v3302_v45 = vpop.f32.mrb[25].mxu1 }
 0xf5f   : > { %v2216_v46 = vpop.f32.mrb[26].mxu1  ;;  %v2543_v45 = vsel %vm1304_vm3, %v1920_v40, 0 }
 0xf60   : > { %v3303_v48 = vpop.f32.mrb[27].mxu1  ;;  %3307 = vmatmul.mubr.msk.bf16.vlgmr.msra.gmra.mrb[40].mxu0 %vm1242_vm2, %v2219_v43 }
 0xf61   : > { %3318 = vmatprep.mubr.msk.bf16.mxu0 %vm3548_vm1, %v3547_v9 }
 0xf65   : > { %v2313_v49 = vpop.f32.mrb[28].mxu1 }
 0xf66   : > { %v3314_v50 = vpop.f32.mrb[29].mxu1  ;;  %v2314_v2 = vadd.f32 %v2313_v49, %v3919_v11 }
 0xf67   : > { %v2316_v51 = vpop.f32.mrb[30].mxu1 }
 0xf68   : > { %v3315_v52 = vpop.f32.mrb[31].mxu1  ;;  %v2319_v3 = vsel %vm1242_vm2, %v2314_v2, -inf }
 0xf6d   : > { %v2472_v53 = vpop.f32.mrb[32].mxu1 }
 0xf6e   : > { %v2473_v54 = vadd.f32 %v2472_v53, %v3919_v11  ;;  %v3332_v55 = vpop.f32.mrb[33].mxu1  ;;  %v1921_v53 = vld [vmem:[%s4061_s2 + $0xc] sm:$0xf] }
 0xf6f   : > { %v2475_v56 = vpop.f32.mrb[34].mxu1 }
 0xf70   : > { %v3333_v57 = vpop.f32.mrb[35].mxu1  ;;  %v2478_v58 = vsel %vm1242_vm2, %v2473_v54, -inf  ;;  %v2701_v56 = vsel %vm1304_vm3, %v1921_v53, 0 }
 0xf71   : > { %2479 = vmax.xlane.f32.xlu1 %v2478_v58 }
 0xf82   : > { %2588 = vrot.lane.b32.xlu1 %v3900_v47, %s3551_s26 }
 0xf86   : > { %2586 = vrot.lane.b32.xlu1 %v3895_v62, %s3551_s26 }
 0xffe   : > { %v2480_v59 = vpop.xlane.xlu1 %2479 }
 0xfff   : > { %v2481_v60 = vsub.f32 %v2473_v54, %v2480_v59 }
0x1001   : > { %v2482_v61 = vmul.f32 1.442695, %v2481_v60 }
0x1002   : > { %v2589_v7 = vpop.permute.xlu1 %2588 }
0x1003   : > { %3495 = vpow2.f32 %v2482_v61  ;;  %v2594_v10 = vsel %vm1242_vm2, %v2589_v7, 0 }
0x1006   : > { %v2587_v12 = vpop.permute.xlu1 %2586 }
0x100d   : > { %v3496_v63 = vpop.eup %3495 }
0x100e   : > { %v2484_v1 = vsel %vm1242_vm2, %v3496_v63, 0.0 }
0x100f   : > { %2485 = vadd.xlane.f32.xlu0 %v2484_v1 }
0x1025   : > { %2490 = vrot.lane.b32.xlu0 %v3925_v28, %s3550_s23  ;;  %s4063_s23 = sld [smem:[#allocation14_spill]] }
0x1044   : > { %2320 = vmax.xlane.f32.xlu0 %v2319_v3 }
0x105a   : > { %2332 = vrot.lane.b32.xlu0 %v3925_v28, %s3549_s22  ;;  %s4062_s22 = sld [smem:[#allocation11_spill]] }
0x109c   : > { %v2486_v62 = vpop.xlane.xlu0 %2485 }
0x109d   : > { %3497 = vrcp.f32 %v2486_v62 }
0x10a0   : > { %v2491_v4 = vpop.permute.xlu0 %2490 }
0x10a1   : > { %v2496_v5 = vsel %vm1304_vm3, %v2491_v4, 0 }
0x10a2   : > { %3335 = vmatpush3.bf16.msra.mxu1 %v2496_v5 }
0x10a3   : > { %3346 = vmatprep.subr.bf16.mxu1 %v3547_v9 }
0x10a7   : > { %v3498_v47 = vpop.eup %3497 }
0x10a8   : > { %v2488_v6 = vmul.f32 %v3498_v47, %v3496_v63  ;;  %v3071_v63 = vld [vmem:[%s4062_s22] ss:$0 sm:$0xff] }
0x10a9   : > { %v2111_v1 = vadd.f32 %v3870_v30, %v3071_v63  ;;  %v3466_v30 = vld [vmem:[%s4063_s23 + $0x8] sm:$0xff]  }
0x10aa   : > { %v2489_v8 = vpack.c.bf16 %v2488_v6, %v2488_v6 }
0x10ac   : > { %3337 = vmatmul.mubr.msk.bf16.vlgmr.msra.gmra.mrb[36].mxu1 %vm1242_vm2, %v2489_v8 }
0x10ad   : > { %3347 = vmatpush3.bf16.xpose.msra.mxu1 %v2594_v10  ;;  %3348 = vmatprep.mubr.msk.bf16.mxu1 %vm3548_vm1, %v3547_v9 }
0x10ae   : > { %3364 = vmatprep.subr.bf16.mxu1 %v3547_v9 }
0x10b4   : > { %3349 = vmatmul.mubr.msk.bf16.vlgmr.msra.gmra.mrb[40].mxu1 %vm1242_vm2, %v2587_v12 }
0x10b5   : > { %3368 = vmatprep.mubr.msk.bf16.mxu1 %vm3548_vm1, %v3547_v9 }
0x10d1   : > { %v2321_v13 = vpop.xlane.xlu0 %2320 }
0x10d2   : > { %v2322_v14 = vsub.f32 %v2314_v2, %v2321_v13  ;;  %v3465_v13 = vld [vmem:[%s4063_s23] sm:$0xff]  }
0x10d3   : > { %3365 = vmatpush3.bf16.msra.mxu1 %v3465_v13 }
0x10d4   : > { %v2323_v44 = vmul.f32 1.442695, %v2322_v14  ;;  %3366 = vmatprep.subr.bf16.mxu1 %v3547_v9 }
0x10d5   : > { %v2333_v15 = vpop.permute.xlu0 %2332 }
0x10d6   : > { %3499 = vpow2.f32 %v2323_v44  ;;  %v2338_v16 = vsel %vm1304_vm3, %v2333_v15, 0 }
0x10d7   : > { %3317 = vmatpush3.bf16.msra.mxu0 %v2338_v16  ;;  %3367 = vmatpush3.bf16.msra.mxu1 %v3466_v30 }
0x10d8   : > { %3322 = vmatprep.subr.bf16.mxu0 %v3547_v9  ;;  %3372 = vmatprep.subr.bf16.mxu1 %v3547_v9 }
0x10e0   : > { %v3500_v17 = vpop.eup %3499 }
0x10e1   : > { %v2325_v18 = vsel %vm1242_vm2, %v3500_v17, 0.0 }
0x10e2   : > { %2326 = vadd.xlane.f32.xlu1 %v2325_v18 }
0x116f   : > { %v2327_v19 = vpop.xlane.xlu1 %2326 }
0x1170   : > { %3501 = vrcp.f32 %v2327_v19  ;;  %v3085_v19 = vld [vmem:[%s4065_s7] ss:$0 sm:$0xff] }
0x117a   : > { %v3502_v20 = vpop.eup %3501 }
0x117b   : > { %v2329_v21 = vmul.f32 %v3502_v20, %v3500_v17 }
0x117d   : > { %v2330_v22 = vpack.c.bf16 %v2329_v21, %v2329_v21 }
0x117f   : > { %3319 = vmatmul.mubr.msk.bf16.vlgmr.msra.gmra.mrb[44].mxu0 %vm1242_vm2, %v2330_v22  ;;  %v2532_v23 = vpop.f32.mrb[36].mxu1  ;;  %v3467_v22 = vld [vmem:[%s3700_s20] sm:$0xff]  }
0x1180   : > { %v3338_v24 = vpop.f32.mrb[37].mxu1  ;;  %3324 = vmatprep.mubr.msk.bf16.mxu0 %vm3548_vm1, %v3547_v9  ;;  %3323 = vmatpush3.bf16.msra.mxu0 %v2385_v37  ;;  %v2538_v49 = vpack.c.bf16 %v2532_v23, %v2532_v23 }
0x1181   : > { %v2535_v25 = vpop.f32.mrb[38].mxu1  ;;  %3340 = vmatprep.subr.bf16.mxu0 %v3547_v9  ;;  %v3468_v24 = vld [vmem:[%s3700_s20 + $0x8] sm:$0xff]  }
0x1182   : > { %v3339_v26 = vpop.f32.mrb[39].mxu1  ;;  %v3469_v25 = vld [vmem:[%s3700_s20 + $0x10] sm:$0xff]  }
0x1183   : > { %v3470_v26 = vld [vmem:[%s3700_s20 + $0x18] sm:$0xff]  }
0x1187   : > { %v2630_v27 = vpop.f32.mrb[40].mxu1 }
0x1188   : > { %v2631_v29 = vadd.f32 %v2630_v27, %v3919_v11  ;;  %v3350_v31 = vpop.f32.mrb[41].mxu1  ;;  %v3086_v27 = vld [vmem:[%s3695_s9] ss:$0 sm:$0xff] }
0x1189   : > { %v2633_v33 = vpop.f32.mrb[42].mxu1 }
0x118a   : > { %v3351_v34 = vpop.f32.mrb[43].mxu1  ;;  %v2636_v35 = vsel %vm1242_vm2, %v2631_v29, -inf }
0x118b   : > { %2637 = vmax.xlane.f32.xlu1 %v2636_v35 }
0x1218   : > { %v2638_v38 = vpop.xlane.xlu1 %2637 }
0x1219   : > { %v2639_v39 = vsub.f32 %v2631_v29, %v2638_v38  ;;  %v3090_v38 = vld [vmem:[%s3705_s4] ss:$0 sm:$0xff] }
0x121b   : > { %v2640_v0 = vmul.f32 1.442695, %v2639_v39 }
0x121d   : > { %3503 = vpow2.f32 %v2640_v0 }
0x1227   : > { %v3504_v32 = vpop.eup %3503 }
0x1228   : > { %v2642_v11 = vsel %vm1242_vm2, %v3504_v32, 0.0 }
0x1229   : > { %2643 = vadd.xlane.f32.xlu1 %v2642_v11 }
0x123a   : > { %2648 = vrot.lane.b32.xlu1 %v3925_v28, %s3551_s26  ;;  %s4064_s26 = sld [smem:[#allocation12_spill]] }
0x1240   : > { %v3084_v17 = vld [vmem:[%s4064_s26] ss:$0 sm:$0xff] }
0x1252   : > { %v2374_v41 = vpop.f32.mrb[44].mxu0 }
0x1253   : > { %v2380_v42 = vpack.c.bf16 %v2374_v41, %v2374_v41  ;;  %v3320_v43 = vpop.f32.mrb[45].mxu0 }
0x1254   : > { %v2377_v46 = vpop.f32.mrb[46].mxu0 }
0x1255   : > { %v3321_v48 = vpop.f32.mrb[47].mxu0  ;;  %3325 = vmatmul.mubr.msk.bf16.vlgmr.msra.gmra.mrb[40].mxu0 %vm1242_vm2, %v2380_v42 }
0x1256   : > { %3341 = vmatpush3.bf16.msra.mxu0 %v2543_v45  ;;  %3342 = vmatprep.mubr.msk.bf16.mxu0 %vm3548_vm1, %v3547_v9 }
0x1257   : > { %3352 = vmatprep.subr.bf16.mxu0 %v3547_v9 }
0x1261   : > { %3343 = vmatmul.mubr.msk.bf16.vlgmr.msra.gmra.mrb[40].mxu0 %vm1242_vm2, %v2538_v49 }
0x1262   : > { %3354 = vmatprep.mubr.msk.bf16.mxu0 %vm3548_vm1, %v3547_v9 }
0x12b6   : > { %v2644_v28 = vpop.xlane.xlu1 %2643 }
0x12b7   : > { %3505 = vrcp.f32 %v2644_v28 }
0x12ba   : > { %v2649_v50 = vpop.permute.xlu1 %2648 }
0x12bb   : > { %v2654_v51 = vsel %vm1304_vm3, %v2649_v50, 0 }
0x12bc   : > { %3353 = vmatpush3.bf16.msra.mxu0 %v2654_v51 }
0x12bd   : > { %3358 = vmatprep.subr.bf16.mxu0 %v3547_v9 }
0x12c1   : > { %v3506_v52 = vpop.eup %3505 }
0x12c2   : > { %v2646_v54 = vmul.f32 %v3506_v52, %v3504_v32 }
0x12c4   : > { %v2647_v55 = vpack.c.bf16 %v2646_v54, %v2646_v54 }
0x12c6   : > { %3355 = vmatmul.mubr.msk.bf16.vlgmr.msra.gmra.mrb[48].mxu0 %vm1242_vm2, %v2647_v55 }
0x12c7   : > { %3359 = vmatpush3.bf16.msra.mxu0 %v2701_v56  ;;  %3360 = vmatprep.mubr.msk.bf16.mxu0 %vm3548_vm1, %v3547_v9 }
0x1399   : > { %v2690_v57 = vpop.f32.mrb[48].mxu0 }
0x139a   : > { %v2696_v58 = vpack.c.bf16 %v2690_v57, %v2690_v57  ;;  %v3356_v59 = vpop.f32.mrb[49].mxu0 }
0x139b   : > { %v2693_v60 = vpop.f32.mrb[50].mxu0 }
0x139c   : > { %v3357_v61 = vpop.f32.mrb[51].mxu0  ;;  %3361 = vmatmul.mubr.msk.bf16.vlgmr.msra.gmra.mrb[40].mxu0 %vm1242_vm2, %v2696_v58 }
0x146f   : > { %v2737_v2 = vpop.f32.mrb[40].mxu0 }
0x1470   : > { %v3385_v3 = vadd.f32 %v2737_v2, %v2111_v1  ;;  %v3362_v62 = vpop.f32.mrb[41].mxu0 }
0x1471   : > { %v2740_v4 = vpop.f32.mrb[42].mxu0 }
0x1472   : > { %v3363_v5 = vpop.f32.mrb[43].mxu0  ;;  %v2746_v47 = vsel %vm1004_vm0, %v3385_v3, 0.0 }
0x1473   : > { %2747 = vadd.xlane.f32.xlu0 %v2746_v47 }
0x1500   : > { %v2748_v6 = vpop.xlane.xlu0 %2747 }
0x1501   : > { %v2749_v7 = vmul.f32 0.03125, %v2748_v6 }
0x1503   : > { %v2750_v8 = vsub.f32 %v3385_v3, %v2749_v7 }
0x1505   : > { %v2751_v10 = vmul.f32 %v2750_v8, %v2750_v8 }
0x1507   : > { %v2752_v12 = vsel %vm1004_vm0, %v2751_v10, 0.0 }
0x1508   : > { %2753 = vadd.xlane.f32.xlu1 %v2752_v12 }
0x1595   : > { %v2754_v14 = vpop.xlane.xlu1 %2753 }
0x1596   : > { %v2755_v44 = vmul.f32 0.03125, %v2754_v14 }
0x1598   : > { %v2756_v15 = vadd.f32 1e-06, %v2755_v44 }
0x159a   : > { %3507 = vrsqrt.f32 %v2756_v15 }
0x15a4   : > { %v3508_v16 = vpop.eup %3507 }
0x15a5   : > { %v2758_v18 = vmul.f32 %v3508_v16, %v2750_v8 }
0x15a7   : > { %v2765_v20 = vmul.f32 %v3084_v17, %v2758_v18 }
0x15a9   : > { %v2772_v21 = vadd.f32 %v3085_v19, %v2765_v20 }
0x15ab   : > { %v2773_v23 = vpack.c.bf16 %v2772_v21, %v2772_v21 }
0x15ad   : > { %3369 = vmatmul.mubr.msk.bf16.vlgmr.msra.gmra.mrb[44].mxu1 %vm1004_vm0, %v2773_v23 }
0x15ae   : > { %3373 = vmatpush3.bf16.msra.mxu1 %v3467_v22  ;;  %3380 = vmatprep.mubr.msk.bf16.mxu1 %vm3548_vm1, %v3547_v9 }
0x15af   : > { %3374 = vmatprep.subr.bf16.mxu1 %v3547_v9 }
0x15b2   : > { %3375 = vmatpush3.bf16.msra.mxu1 %v3468_v24 }
0x15b3   : > { %3376 = vmatprep.subr.bf16.mxu1 %v3547_v9 }
0x15b6   : > { %3377 = vmatpush3.bf16.msra.mxu1 %v3469_v25 }
0x15b7   : > { %3378 = vmatprep.subr.bf16.mxu1 %v3547_v9 }
0x15ba   : > { %3379 = vmatpush3.bf16.msra.mxu1 %v3470_v26 }
0x1680   : > { %v2834_v29 = vpop.f32.mrb[44].mxu1 }
0x1681   : > { %v2835_v31 = vadd.f32 %v3086_v27, %v2834_v29  ;;  %v3370_v33 = vpop.f32.mrb[45].mxu1 }
0x1682   : > { %v2837_v34 = vpop.f32.mrb[46].mxu1 }
0x1683   : > { %v2840_v35 = vmax.f32 %v2835_v31, 0.0  ;;  %v3371_v36 = vpop.f32.mrb[47].mxu1 }
0x1685   : > { %v2841_v37 = vpack.c.bf16 %v2840_v35, %v2840_v35 }
0x1687   : > { %3381 = vmatmul.mubr.msk.bf16.vlgmr.msra.gmra.mrb[48].mxu1 %vm2881_vm4, %v2841_v37 }
0x175a   : > { %v2919_v39 = vpop.f32.mrb[48].mxu1 }
0x175b   : > { %v2920_v0 = vadd.f32 %v3090_v38, %v2919_v39  ;;  %v3382_v32 = vpop.f32.mrb[49].mxu1 }
0x175c   : > { %v2922_v9 = vpop.f32.mrb[50].mxu1 }
0x175d   : > { %v2925_v11 = vadd.f32 %v3385_v3, %v2920_v0  ;;  %v3383_v40 = vpop.f32.mrb[51].mxu1 }
0x175f   : > { %2926 = vst.msk [vmem:[%s998_s10] sm:$0xff] %vm1004_vm0, %v2925_v11 }
0x1760 PF: > { %s75_s15 = sadd.s32 1, %s3515_s15  }
0x1761   : > { %p72_p4 = scmp.ge.s32.totalorder %s75_s15, 4  }
0x1763   :  { %74 = sbr.rel (!%p72_p4) target bundleno = 48 (0x30), region = 213 }

// kernel: decoder_forward.3
= control target key start
LH: loop header
LB: loop body
LE: loop exit
PB: predicated region body
PF: predicated region fallthrough
CT: control target
= control target key end

     0   :  { %s3662_s6 = smov 1   ;;  %s3663_s10 = smov 2   ;;  %s4278_s0 = inlined_call_operand.smem [shape: u32[33], index: -1, kind: input, shape index: {}] }
   0x1   :  { %s3708_s5 = sld [smem:[%s4278_s0]]   ;;  %s3664_s14 = smov 3  }
   0x2   :  { %s3713_s9 = sld [smem:[%s4278_s0 + %s3662_s6]]   ;;  %s3665_s18 = smov 4  }
   0x3   :  { %s3718_s13 = sld [smem:[%s4278_s0 + %s3663_s10]]   ;;  %s3666_s22 = smov 5  }
   0x4   :  { %s3723_s17 = sld [smem:[%s4278_s0 + %s3664_s14]]   ;;  %s3667_s26 = smov 6  }
   0x5   :  { %s3728_s21 = sld [smem:[%s4278_s0 + %s3665_s18]]   ;;  %s3668_s30 = smov 7  }
   0x6   :  { %s3733_s25 = sld [smem:[%s4278_s0 + %s3666_s22]]   ;;  %s3669_s4 = smov 8  }
   0x7   :  { %4295 = sst [smem:[#allocation5_spill]] %s3708_s5  ;;  %s3670_s10 = smov 9  }
   0x8   :  { %4296 = sst [smem:[#allocation6_spill]] %s3713_s9  ;;  %s3671_s15 = smov 10  }
   0x9   :  { %s3738_s29 = sld [smem:[%s4278_s0 + %s3667_s26]]   ;;  %s3672_s20 = smov 11  }
   0xa   :  { %4297 = sst [smem:[#allocation7_spill]] %s3723_s17  ;;  %s3673_s26 = smov 12  }
   0xb   :  { %s3743_s3 = sld [smem:[%s4278_s0 + %s3668_s30]]   ;;  %s3674_s1 = smov 13  }
   0xc   :  { %s3748_s8 = sld [smem:[%s4278_s0 + %s3669_s4]]   ;;  %s3675_s7 = smov 14  }
   0xd   :  { %s3753_s14 = sld [smem:[%s4278_s0 + %s3670_s10]]   ;;  %s3677_s22 = smov 16  }
   0xe   :  { %s3758_s19 = sld [smem:[%s4278_s0 + %s3671_s15]]   ;;  %s3676_s15 = smov 15  }
   0xf   :  { %s3763_s24 = sld [smem:[%s4278_s0 + %s3672_s20]]   ;;  %s3678_s28 = smov 17  }
  0x10   :  { %s3768_s30 = sld [smem:[%s4278_s0 + %s3673_s26]]  }
  0x11   :  { %4298 = sst [smem:[#allocation8_spill]] %s3743_s3 }
  0x12   :  { %4299 = sst [smem:[#allocation9_spill]] %s3748_s8 }
  0x13   :  { %s3773_s6 = sld [smem:[%s4278_s0 + %s3674_s1]]  }
  0x14   :  { %s3778_s12 = sld [smem:[%s4278_s0 + %s3675_s7]]   ;;  %s3679_s7 = smov 18  }
  0x15   :  { %s3783_s20 = sld [smem:[%s4278_s0 + %s3676_s15]]   ;;  %s3680_s15 = smov 19  }
  0x16   :  { %s3788_s27 = sld [smem:[%s4278_s0 + %s3677_s22]]   ;;  %s3681_s22 = smov 20  }
  0x17   :  { %s3793_s4 = sld [smem:[%s4278_s0 + %s3678_s28]]   ;;  %s3682_s28 = smov 21  }
  0x18   :  { %s3798_s17 = sld [smem:[%s4278_s0 + %s3679_s7]]   ;;  %s3683_s7 = smov 22  }
  0x19   :  { %4300 = sst [smem:[#allocation10_spill]] %s3773_s6 }
  0x1a   :  { %4301 = sst [smem:[#allocation11_spill]] %s3778_s12 }
  0x1b   :  { %4302 = sst [smem:[#allocation12_spill]] %s3783_s20 }
  0x1c   :  { %s3803_s9 = sld [smem:[%s4278_s0 + %s3680_s15]]   ;;  %s3684_s15 = smov 23  }
  0x1d   :  { %4303 = sst [smem:[#allocation13_spill]] %s3793_s4 }
  0x1e   :  { %4304 = sst [smem:[#allocation14_spill]] %s3798_s17 }
  0x1f   :  { %s3808_s20 = sld [smem:[%s4278_s0 + %s3681_s22]]   ;;  %s3685_s22 = smov 24  }
  0x20   :  { %s3813_s4 = sld [smem:[%s4278_s0 + %s3682_s28]]   ;;  %s3686_s28 = smov 25  }
  0x21   :  { %s3818_s17 = sld [smem:[%s4278_s0 + %s3683_s7]]   ;;  %s3687_s7 = smov 26  }
  0x22   :  { %4305 = sst [smem:[#allocation15_spill]] %s3803_s9 }
  0x23   :  { %s3823_s9 = sld [smem:[%s4278_s0 + %s3684_s15]]   ;;  %s3688_s15 = smov 27  }
  0x25   :  { %4306 = sst [smem:[#allocation16_spill]] %s3808_s20 }
  0x26   :  { %4307 = sst [smem:[#allocation17_spill]] %s3813_s4 }
  0x27   :  { %4308 = sst [smem:[#allocation18_spill]] %s3818_s17 }
  0x28   :  { %s3828_s20 = sld [smem:[%s4278_s0 + %s3685_s22]]   ;;  %s3689_s22 = smov 28  }
  0x29   :  { %4309 = sst [smem:[#allocation19_spill]] %s3823_s9 }
  0x2a   :  { %s3833_s4 = sld [smem:[%s4278_s0 + %s3686_s28]]   ;;  %s3690_s28 = smov 29  }
  0x2b   :  { %s3838_s17 = sld [smem:[%s4278_s0 + %s3687_s7]]   ;;  %s3691_s7 = smov 30  }
  0x2c   :  { %s3843_s9 = sld [smem:[%s4278_s0 + %s3688_s15]]   ;;  %s3692_s15 = smov 31  }
  0x2e   :  { %4310 = sst [smem:[#allocation20_spill]] %s3828_s20 }
  0x2f   :  { %s3848_s20 = sld [smem:[%s4278_s0 + %s3689_s22]]   ;;  %s3693_s22 = smov 32  }
  0x30   :  { %4311 = sst [smem:[#allocation21_spill]] %s3833_s4 }
  0x31   :  { %4312 = sst [smem:[#allocation22_spill]] %s3838_s17 }
  0x32   :  { %4313 = sst [smem:[#allocation23_spill]] %s3843_s9 }
  0x33   :  { %s3853_s4 = sld [smem:[%s4278_s0 + %s3690_s28]]  }
  0x34   :  { %s3858_s17 = sld [smem:[%s4278_s0 + %s3691_s7]]  }
  0x35   :  { %4314 = sst [smem:[#allocation24_spill]] %s3848_s20 }
  0x36   :  { %s3863_s9 = sld [smem:[%s4278_s0 + %s3692_s15]]  }
  0x37   :  { %s3868_s20 = sld [smem:[%s4278_s0 + %s3693_s22]]  }
  0x39   :  { %4315 = sst [smem:[#allocation25_spill]] %s3853_s4 }
  0x3c   :  { %4316 = sst [smem:[#allocation26_spill]] %s3863_s9 }
  0x3d   :  { %70 = vsyncpa [#allocation3], 0 }
  0x3e   :  { %72 = vsyncpa [#allocation3 + $0x1], 0  ;;  %s3870_s28 = smov 0   ;;  %s3872_s1 = smov 0  }
  0x3f   :  { %s3874_s2 = smov 0   ;;  %s3876_s7 = smov 0  }
  0x40 LB: > { %s4317_s8 = sld [smem:[#allocation9_spill]]  ;;  %s3891_s0 = sadd.s32 4294967295, %s3660_s7   ;;  %s3648_s28 = sphi %s3870_s28, %s4345_s28   ;;  %s3660_s7 = sphi %s3876_s7, %s4348_s7   ;;  %s3656_s2 = sphi %s3874_s2, %s4347_s2   ;;  %s3652_s1 = sphi %s3872_s1, %s4346_s1  }
  0x41   : > { %s3073_s10 = sadd.s32 4294967294, %s3660_s7   ;;  %s3895_s11 = sadd.s32 1, %s3660_s7  }
  0x42   : > { %s767_s15 = sadd.s32 1, %s3656_s2  ;;  %s764_s16 = ssub.s32 %s3660_s7, %s3895_s11 }
  0x43   : > { %p777_p0 = scmp.ne.s32.totalorder %s3656_s2, %s3652_s1  ;;  %p765_p1 = scmp.eq.s32.totalorder %s764_s16, 0 }
  0x44   : > { %p778_p2 = scmp.eq.s32.totalorder %s3891_s0, 1  ;;  %p783_p3 = scmp.ne.s32.totalorder %s3652_s1, %s3648_s28 }
  0x45   : > { %p784_p4 = scmp.eq.s32.totalorder %s3073_s10, 1  ;;  %p3076_p7 = scmp.ge.s32.totalorder %s3660_s7, 1 }
  0x46   : > { %s3906_s18 = scalar_select %p765_p1, %s3656_s2, %s767_s15  }
  0x47   : > { %p3908_p5 = por %p778_p2, %p777_p0  ;;  %p3912_p6 = por %p784_p4, %p783_p3 }
  0x48   : > { %p906_p8 = scmp.lt.s32.totalorder %s3660_s7, 3 }
  0x4a   : > { %p907_p9 = pnand %p3076_p7, %p906_p8 }
  0x4b   : > { %s4320_s5 = sld [smem:[#allocation5_spill]] (!%p907_p9)  ;;  %p991_p10 = scmp.lt.s32.totalorder (!%p907_p9), %s3891_s0, 1  ;;  %vm1004_vm0 = vcmask (!%p907_p9), 261120   ;;  %v3540_v7 = vld [vmem:[%s3738_s29] sm:$0xff] (!%p907_p9)   ;;  %v3694_v9 = vmov (!%p907_p9), 0.0   ;;  %v3542_v10 = vld [vmem:[%s3738_s29 + $0x8] sm:$0xff] (!%p907_p9)  }
  0x4c   : > { %910 = sbr.rel (%p907_p9) target bundleno = 6334 (0x18be), region = 148  ;;  %v3541_v8 = vld [vmem:[%s4317_s8] sm:$0xff] (!%p907_p9)   ;;  %3226 = vmatprep.subr.bf16.mxu0 (!%p907_p9), %v3694_v9  ;;  %3234 = vmatprep.subr.bf16.mxu1 (!%p907_p9), %v3694_v9  ;;  %v3543_v11 = vld [vmem:[%s4317_s8 + $0x8] sm:$0xff] (!%p907_p9)   ;;  %vm3695_vm1 = vmmov (!%p907_p9), 0   ;;  %s4321_s3 = sld [smem:[#allocation8_spill]] (!%p907_p9)  ;;  %vm1242_vm2 = vcmask (!%p907_p9), 64512  }
  0x4d   : > { %3227 = vmatpush3.bf16.msra.mxu0 (!%p907_p9), %v3540_v7  ;;  %3235 = vmatpush3.bf16.msra.mxu1 (!%p907_p9), %v3541_v8  ;;  %v3080_v16 = vld [vmem:[%s3728_s21] ss:$0 sm:$0xff] (!%p907_p9)  ;;  %v3545_v23 = vld [vmem:[%s3758_s19 + $0x8] sm:$0xff] (!%p907_p9)   ;;  %s4289_s16 = smov (!%p907_p9), 120   ;;  %vm1304_vm3 = vcmask (!%p907_p9), 1043456   ;;  %s4322_s6 = sld [smem:[#allocation10_spill]] (!%p907_p9) }
  0x4e   : > { %3228 = vmatprep.subr.bf16.mxu0 (!%p907_p9), %v3694_v9  ;;  %3236 = vmatprep.subr.bf16.mxu1 (!%p907_p9), %v3694_v9  ;;  %v3081_v18 = vld [vmem:[%s3733_s25] ss:$0 sm:$0xff] (!%p907_p9)  ;;  %s4323_s12 = sld [smem:[#allocation11_spill]] (!%p907_p9)  ;;  %s4329_s8 = sld [smem:[#allocation15_spill]] (!%p907_p9)  ;;  %vm2881_vm4 = vcmask (!%p907_p9), 523264  }
  0x4f   : > { %3230 = vmatprep.mubr.msk.bf16.mxu0 (!%p907_p9), %vm3695_vm1, %v3694_v9  ;;  %3238 = vmatprep.mubr.msk.bf16.mxu1 (!%p907_p9), %vm3695_vm1, %v3694_v9  ;;  %v3544_v21 = vld [vmem:[%s3758_s19] sm:$0xff] (!%p907_p9)   ;;  %s4343_s4 = sld [smem:[#allocation25_spill]] (!%p907_p9)  ;;  %s4344_s9 = sld [smem:[#allocation26_spill]] (!%p907_p9) }
  0x50   : > { %v3086_v24 = vld [vmem:[%s3753_s14] ss:$0 sm:$0xff] (!%p907_p9) }
  0x51   : > { %3229 = vmatpush3.bf16.msra.mxu0 (!%p907_p9), %v3542_v10  ;;  %3237 = vmatpush3.bf16.msra.mxu1 (!%p907_p9), %v3543_v11  ;;  %v3090_v37 = vld [vmem:[%s3763_s24] ss:$0 sm:$0xff] (!%p907_p9) }
  0x52   : > { %3242 = vmatprep.subr.bf16.mxu0 (!%p907_p9), %v3694_v9  ;;  %3250 = vmatprep.subr.bf16.mxu1 (!%p907_p9), %v3694_v9  ;;  %v3082_v35 = vld [vmem:[%s4321_s3] ss:$0 sm:$0xff] (!%p907_p9)  ;;  %s4327_s3 = sld [smem:[#allocation13_spill]] (!%p907_p9) }
  0x53   : > { %s3920_s26 = scalar_select %p991_p10, %s3891_s0, 1  ;;  %v3983_v47 = vld [vmem:[%s3718_s13] sm:$0xff] }
  0x55   : > { %s4284_s10 = sshll.u32 %s3920_s26, 3 }
  0x56   : > { %s994_s15 = scalar_lea.vmem %s4320_s5, %s4284_s10  ;;  %s4285_s10 = smov 104  }
  0x57   : > { %v3926_v0 = vld [vmem:[%s994_s15] sm:$0xff]  ;;  %s4287_s15 = smov 112   ;;  %s4328_s5 = sshll.u32 %s3920_s26, 3 }
  0x58   : > { %v1005_v1 = vsel %vm1004_vm0, %v3926_v0, 0.0  ;;  %s4333_s26 = smov 112  }
  0x59   : > { %1006 = vadd.xlane.f32.xlu0 %v1005_v1 }
  0xe6   : > { %v1007_v2 = vpop.xlane.xlu0 %1006 }
  0xe7   : > { %v1009_v3 = vmul.f32 0.03125, %v1007_v2 }
  0xe9   : > { %v1010_v4 = vsub.f32 %v3926_v0, %v1009_v3 }
  0xeb   : > { %v1011_v5 = vmul.f32 %v1010_v4, %v1010_v4 }
  0xed   : > { %v1012_v6 = vsel %vm1004_vm0, %v1011_v5, 0.0 }
  0xee   : > { %1013 = vadd.xlane.f32.xlu0 %v1012_v6  ;;  %v1049_v6 = vld [vmem:[%s3768_s30] sm:$0xf] }
  0xef   : > { %v1353_v7 = vsel %vm1304_vm3, %v1049_v6, 0  ;;  %v1051_v6 = vld [vmem:[%s3768_s30 + $0x8] sm:$0xf] }
 0x17b   : > { %v1014_v12 = vpop.xlane.xlu0 %1013 }
 0x17c   : > { %v1015_v13 = vmul.f32 0.03125, %v1014_v12 }
 0x17e   : > { %v1016_v14 = vadd.f32 1e-06, %v1015_v13 }
 0x180   : > { %3558 = vrsqrt.f32 %v1016_v14 }
 0x18a   : > { %v3559_v15 = vpop.eup %3558 }
 0x18b   : > { %v1018_v17 = vmul.f32 %v3559_v15, %v1010_v4 }
 0x18d   : > { %v1025_v19 = vmul.f32 %v3080_v16, %v1018_v17 }
 0x18f   : > { %v1032_v20 = vadd.f32 %v3081_v18, %v1025_v19 }
 0x191   : > { %v1054_v22 = vpack.c.bf16 %v1032_v20, %v1032_v20 }
 0x193   : > { %3231 = vmatmul.mubr.msk.bf16.vlgmr.msra.gmra.mrb[0].mxu0 %vm1004_vm0, %v1054_v22  ;;  %3239 = vmatmul.mubr.msk.bf16.vlgmr.msra.gmra.mrb[0].mxu1 %vm1004_vm0, %v1054_v22 }
 0x194   : > { %3243 = vmatpush3.bf16.msra.mxu0 %v3544_v21  ;;  %3246 = vmatprep.mubr.msk.bf16.mxu0 %vm3695_vm1, %v3694_v9 }
 0x195   : > { %3244 = vmatprep.subr.bf16.mxu0 %v3694_v9  ;;  %3252 = vmatprep.mubr.msk.bf16.mxu1 %vm3695_vm1, %v3694_v9 }
 0x198   : > { %3245 = vmatpush3.bf16.msra.mxu0 %v3545_v23 }
 0x199   : > { %3256 = vmatprep.subr.bf16.mxu0 %v3694_v9 }
 0x19b   : > { %3247 = vmatmul.mubr.msk.bf16.vlgmr.msra.gmra.mrb[4].mxu0 %vm1004_vm0, %v1054_v22 }
 0x19c   : > { %3258 = vmatprep.mubr.msk.bf16.mxu0 %vm3695_vm1, %v3694_v9 }
 0x266   : > { %v1110_v25 = vpop.f32.mrb[0].mxu0  ;;  %v1168_v26 = vpop.f32.mrb[0].mxu1 }
 0x267   : > { %v1169_v27 = vadd.f32 %v3086_v24, %v1168_v26  ;;  %v3232_v28 = vpop.f32.mrb[1].mxu0  ;;  %v3240_v29 = vpop.f32.mrb[1].mxu1  ;;  %v1111_v38 = vadd.f32 %v3082_v35, %v1110_v25 }
 0x268   : > { %v1113_v30 = vpop.f32.mrb[2].mxu0  ;;  %v1171_v31 = vpop.f32.mrb[2].mxu1 }
 0x269   : > { %v3962_v32 = vpack.c.bf16 %v1169_v27, %v1169_v27  ;;  %v3233_v33 = vpop.f32.mrb[3].mxu0  ;;  %v3241_v34 = vpop.f32.mrb[3].mxu1  ;;  %v3971_v43 = vpack.c.bf16 %v1111_v38, %v1111_v38 }
 0x26b   : > { %1400 = vrot.lane.b32.xlu0 %v3962_v32, %s4289_s16  ;;  %v1247_v36 = vsel %vm1242_vm2, %v3962_v32, 0 }
 0x26c   : > { %3251 = vmatpush3.bf16.xpose.msra.mxu1 %v1247_v36 }
 0x26d   : > { %3262 = vmatprep.subr.bf16.mxu1 %v3694_v9 }
 0x26e   : > { %v1226_v39 = vpop.f32.mrb[4].mxu0 }
 0x26f   : > { %v1227_v40 = vadd.f32 %v3090_v37, %v1226_v39  ;;  %v3248_v41 = vpop.f32.mrb[5].mxu0 }
 0x270   : > { %v1229_v42 = vpop.f32.mrb[6].mxu0 }
 0x271   : > { %v3973_v44 = vpack.c.bf16 %v1227_v40, %v1227_v40  ;;  %v3249_v45 = vpop.f32.mrb[7].mxu0 }
 0x273   : > { %3253 = vmatmul.mubr.msk.bf16.vlgmr.msra.gmra.mrb[4].mxu1 %vm1242_vm2, %v3971_v43  ;;  %v1306_v46 = vsel %vm1304_vm3, %v3973_v44, 0 }
 0x274   : > { %3257 = vmatpush3.bf16.msra.mxu0 %v1306_v46  ;;  %3264 = vmatprep.mubr.msk.bf16.mxu1 %vm3695_vm1, %v3694_v9 }
 0x275   : > { %3268 = vmatprep.subr.bf16.mxu0 %v3694_v9  ;;  %3263 = vmatpush3.bf16.msra.mxu1 %v1353_v7 }
 0x276   : > { %3274 = vmatprep.subr.bf16.mxu1 %v3694_v9 }
 0x2dd   : > { %v1401_v62 = vpop.permute.xlu0 %1400 }
 0x2de   : > { %v1406_v2 = vsel %vm1242_vm2, %v1401_v62, 0 }
 0x346   : > { %v1283_v48 = vpop.f32.mrb[4].mxu1 }
 0x347   : > { %v1284_v49 = vadd.f32 %v1283_v48, %v3983_v47  ;;  %v3254_v50 = vpop.f32.mrb[5].mxu1 }
 0x348   : > { %v1286_v51 = vpop.f32.mrb[6].mxu1 }
 0x349   : > { %v3255_v52 = vpop.f32.mrb[7].mxu1  ;;  %v1289_v53 = vsel %vm1242_vm2, %v1284_v49, -inf }
 0x34a   : > { %1290 = vmax.xlane.f32.xlu1 %v1289_v53 }
 0x3d7   : > { %v1291_v54 = vpop.xlane.xlu1 %1290 }
 0x3d8   : > { %v1292_v55 = vsub.f32 %v1284_v49, %v1291_v54 }
 0x3da   : > { %v1293_v56 = vmul.f32 1.442695, %v1292_v55 }
 0x3dc   : > { %3560 = vpow2.f32 %v1293_v56 }
 0x3e6   : > { %v3561_v57 = vpop.eup %3560 }
 0x3e7   : > { %v1295_v58 = vsel %vm1242_vm2, %v3561_v57, 0.0 }
 0x3e8   : > { %1296 = vadd.xlane.f32.xlu1 %v1295_v58 }
 0x3f9   : > { %1397 = vrot.lane.b32.xlu1 %v3971_v43, %s4289_s16 }
 0x3fd   : > { %1559 = vrot.lane.b32.xlu1 %v3962_v32, %s4287_s15 }
 0x401   : > { %1557 = vrot.lane.b32.xlu1 %v3971_v43, %s4287_s15 }
 0x475   : > { %v1297_v59 = vpop.xlane.xlu1 %1296 }
 0x476   : > { %3562 = vrcp.f32 %v1297_v59 }
 0x479   : > { %v1398_v1 = vpop.permute.xlu1 %1397 }
 0x47d   : > { %v1560_v3 = vpop.permute.xlu1 %1559 }
 0x47e   : > { %v1565_v4 = vsel %vm1242_vm2, %v1560_v3, 0 }
 0x480   : > { %v3563_v60 = vpop.eup %3562 }
 0x481   : > { %v1299_v61 = vmul.f32 %v3563_v60, %v3561_v57  ;;  %v1558_v5 = vpop.permute.xlu1 %1557 }
 0x483   : > { %v1300_v63 = vpack.c.bf16 %v1299_v61, %v1299_v61 }
 0x485   : > { %3259 = vmatmul.mubr.msk.bf16.vlgmr.msra.gmra.mrb[8].mxu0 %vm1242_vm2, %v1300_v63  ;;  %v1050_v63 = vld [vmem:[%s3768_s30 + $0x4] sm:$0xf] }
 0x486   : > { %3269 = vmatpush3.bf16.xpose.msra.mxu0 %v1406_v2  ;;  %3270 = vmatprep.mubr.msk.bf16.mxu0 %vm3695_vm1, %v3694_v9 }
 0x487   : > { %3286 = vmatprep.subr.bf16.mxu0 %v3694_v9 }
 0x48d   : > { %3271 = vmatmul.mubr.msk.bf16.vlgmr.msra.gmra.mrb[12].mxu0 %vm1242_vm2, %v1398_v1  ;;  %v1514_v1 = vsel %vm1304_vm3, %v1050_v63, 0 }
 0x48e   : > { %3287 = vmatpush3.bf16.xpose.msra.mxu0 %v1565_v4  ;;  %3288 = vmatprep.mubr.msk.bf16.mxu0 %vm3695_vm1, %v3694_v9 }
 0x48f   : > { %3292 = vmatprep.subr.bf16.mxu0 %v3694_v9 }
 0x495   : > { %3289 = vmatmul.mubr.msk.bf16.vlgmr.msra.gmra.mrb[16].mxu0 %vm1242_vm2, %v1558_v5 }
 0x496   : > { %3294 = vmatprep.mubr.msk.bf16.mxu0 %vm3695_vm1, %v3694_v9 }
 0x558   : > { %v1342_v8 = vpop.f32.mrb[8].mxu0 }
 0x559   : > { %v1348_v10 = vpack.c.bf16 %v1342_v8, %v1342_v8  ;;  %v3260_v11 = vpop.f32.mrb[9].mxu0 }
 0x55a   : > { %v1345_v12 = vpop.f32.mrb[10].mxu0  ;;  %v1672_v11 = vsel %vm1304_vm3, %v1051_v6, 0 }
 0x55b   : > { %v3261_v13 = vpop.f32.mrb[11].mxu0  ;;  %3265 = vmatmul.mubr.msk.bf16.vlgmr.msra.gmra.mrb[8].mxu1 %vm1242_vm2, %v1348_v10 }
 0x55c   : > { %3276 = vmatprep.mubr.msk.bf16.mxu1 %vm3695_vm1, %v3694_v9 }
 0x560   : > { %v1442_v14 = vpop.f32.mrb[12].mxu0 }
 0x561   : > { %v3272_v15 = vpop.f32.mrb[13].mxu0  ;;  %v1443_v31 = vadd.f32 %v1442_v14, %v3983_v47 }
 0x562   : > { %v1445_v16 = vpop.f32.mrb[14].mxu0 }
 0x563   : > { %v3273_v17 = vpop.f32.mrb[15].mxu0  ;;  %v1448_v33 = vsel %vm1242_vm2, %v1443_v31, -inf }
 0x568   : > { %v1601_v18 = vpop.f32.mrb[16].mxu0 }
 0x569   : > { %v1602_v19 = vadd.f32 %v1601_v18, %v3983_v47  ;;  %v3290_v20 = vpop.f32.mrb[17].mxu0  ;;  %v1052_v18 = vld [vmem:[%s3768_s30 + $0xc] sm:$0xf] }
 0x56a   : > { %v1604_v21 = vpop.f32.mrb[18].mxu0 }
 0x56b   : > { %v3291_v22 = vpop.f32.mrb[19].mxu0  ;;  %v1607_v23 = vsel %vm1242_vm2, %v1602_v19, -inf  ;;  %v1830_v21 = vsel %vm1304_vm3, %v1052_v18, 0 }
 0x56c   : > { %1608 = vmax.xlane.f32.xlu0 %v1607_v23 }
 0x582   : > { %1619 = vrot.lane.b32.xlu0 %v3973_v44, %s4287_s15  ;;  %s4325_s15 = sld [smem:[#allocation14_spill]] }
 0x586   : > { %1715 = vrot.lane.b32.xlu0 %v3971_v43, %s4285_s10 }
 0x5f9   : > { %v1609_v24 = vpop.xlane.xlu0 %1608 }
 0x5fa   : > { %v1610_v25 = vsub.f32 %v1602_v19, %v1609_v24 }
 0x5fc   : > { %v1611_v26 = vmul.f32 1.442695, %v1610_v25 }
 0x5fd   : > { %v1620_v27 = vpop.permute.xlu0 %1619 }
 0x5fe   : > { %3564 = vpow2.f32 %v1611_v26  ;;  %v1625_v28 = vsel %vm1304_vm3, %v1620_v27, 0  ;;  %v3094_v27 = vld [vmem:[%s4322_s6] ss:$0 sm:$0xff] }
 0x5ff   : > { %3293 = vmatpush3.bf16.msra.mxu0 %v1625_v28  ;;  %v1238_v28 = vadd.f32 %v3094_v27, %v3926_v0 }
 0x600   : > { %3304 = vmatprep.subr.bf16.mxu0 %v3694_v9 }
 0x608   : > { %v3565_v29 = vpop.eup %3564 }
 0x609   : > { %v1613_v30 = vsel %vm1242_vm2, %v3565_v29, 0.0 }
 0x60a   : > { %1614 = vadd.xlane.f32.xlu1 %v1613_v30 }
 0x61b   : > { %1717 = vrot.lane.b32.xlu1 %v3962_v32, %s4285_s10  ;;  %v1716_v32 = vpop.permute.xlu0 %1715 }
 0x63f   : > { %1449 = vmax.xlane.f32.xlu1 %v1448_v33 }
 0x697   : > { %v1615_v34 = vpop.xlane.xlu1 %1614 }
 0x698   : > { %3566 = vrcp.f32 %v1615_v34 }
 0x69b   : > { %v1718_v37 = vpop.permute.xlu1 %1717 }
 0x69c   : > { %v1723_v39 = vsel %vm1242_vm2, %v1718_v37, 0 }
 0x6a2   : > { %v3567_v35 = vpop.eup %3566 }
 0x6a3   : > { %v1617_v36 = vmul.f32 %v3567_v35, %v3565_v29 }
 0x6a5   : > { %v1618_v38 = vpack.c.bf16 %v1617_v36, %v1617_v36 }
 0x6a7   : > { %3295 = vmatmul.mubr.msk.bf16.vlgmr.msra.gmra.mrb[20].mxu0 %vm1242_vm2, %v1618_v38 }
 0x6a8   : > { %3305 = vmatpush3.bf16.xpose.msra.mxu0 %v1723_v39  ;;  %3306 = vmatprep.mubr.msk.bf16.mxu0 %vm3695_vm1, %v3694_v9 }
 0x6a9   : > { %3322 = vmatprep.subr.bf16.mxu0 %v3694_v9 }
 0x6af   : > { %3307 = vmatmul.mubr.msk.bf16.vlgmr.msra.gmra.mrb[24].mxu0 %vm1242_vm2, %v1716_v32  ;;  %v3546_v32 = vld [vmem:[%s3788_s27] sm:$0xff]  }
 0x6b0   : > { %3326 = vmatprep.mubr.msk.bf16.mxu0 %vm3695_vm1, %v3694_v9  ;;  %3323 = vmatpush3.bf16.msra.mxu0 %v3546_v32 }
 0x6b1   : > { %3324 = vmatprep.subr.bf16.mxu0 %v3694_v9 }
 0x6cc   : > { %v1450_v40 = vpop.xlane.xlu1 %1449 }
 0x6cd   : > { %v1451_v41 = vsub.f32 %v1443_v31, %v1450_v40  ;;  %v3547_v40 = vld [vmem:[%s3788_s27 + $0x8] sm:$0xff]  }
 0x6ce   : > { %3325 = vmatpush3.bf16.msra.mxu0 %v3547_v40 }
 0x6cf   : > { %v1452_v42 = vmul.f32 1.442695, %v1451_v41  ;;  %3330 = vmatprep.subr.bf16.mxu0 %v3694_v9 }
 0x6d1   : > { %3568 = vpow2.f32 %v1452_v42 }
 0x6db   : > { %v3569_v43 = vpop.eup %3568 }
 0x6dc   : > { %v1454_v45 = vsel %vm1242_vm2, %v3569_v43, 0.0 }
 0x6dd   : > { %1455 = vadd.xlane.f32.xlu0 %v1454_v45 }
 0x6f3   : > { %1461 = vrot.lane.b32.xlu0 %v3973_v44, %s4289_s16  ;;  %s4326_s16 = sld [smem:[#allocation6_spill]] }
 0x6f9   : > { %s998_s6 = scalar_lea.vmem %s4326_s16, %s4328_s5  ;;  %s4330_s5 = sld [smem:[#allocation16_spill]] }
 0x6fa   : > { %s4336_s16 = smov 104  }
 0x76a   : > { %v1456_v46 = vpop.xlane.xlu0 %1455 }
 0x76b   : > { %3570 = vrcp.f32 %v1456_v46  ;;  %v3107_v46 = vld [vmem:[%s4323_s12] ss:$0 sm:$0xff] }
 0x76e   : > { %v1462_v48 = vpop.permute.xlu0 %1461 }
 0x76f   : > { %v1467_v49 = vsel %vm1304_vm3, %v1462_v48, 0 }
 0x770   : > { %3275 = vmatpush3.bf16.msra.mxu1 %v1467_v49 }
 0x771   : > { %3280 = vmatprep.subr.bf16.mxu1 %v3694_v9 }
 0x775   : > { %v3571_v50 = vpop.eup %3570 }
 0x776   : > { %v1458_v51 = vmul.f32 %v3571_v50, %v3569_v43 }
 0x778   : > { %v1459_v52 = vpack.c.bf16 %v1458_v51, %v1458_v51 }
 0x77a   : > { %3277 = vmatmul.mubr.msk.bf16.vlgmr.msra.gmra.mrb[12].mxu1 %vm1242_vm2, %v1459_v52  ;;  %v1661_v53 = vpop.f32.mrb[20].mxu0  ;;  %v3548_v52 = vld [vmem:[%s4325_s15] sm:$0xff]  }
 0x77b   : > { %v3296_v54 = vpop.f32.mrb[21].mxu0  ;;  %3282 = vmatprep.mubr.msk.bf16.mxu1 %vm3695_vm1, %v3694_v9  ;;  %3281 = vmatpush3.bf16.msra.mxu1 %v1514_v1  ;;  %v1667_v14 = vpack.c.bf16 %v1661_v53, %v1661_v53  ;;  %v3113_v1 = vld [vmem:[%s4329_s8] ss:$0 sm:$0xff]  ;;  %s4334_s8 = sld [smem:[#allocation17_spill]] }
 0x77c   : > { %v1664_v55 = vpop.f32.mrb[22].mxu0  ;;  %3298 = vmatprep.subr.bf16.mxu1 %v3694_v9  ;;  %v1001_v54 = vld [vmem:[%s998_s6] sm:$0xff]  ;;  %s4331_s6 = smov 120  }
 0x77d   : > { %v3297_v56 = vpop.f32.mrb[23].mxu0  ;;  %v3549_v55 = vld [vmem:[%s4325_s15 + $0x8] sm:$0xff]  }
 0x77e   : > { %v1924_v56 = vpack.c.bf16 %v1001_v54, %v1001_v54 }
 0x782   : > { %v1759_v57 = vpop.f32.mrb[24].mxu0 }
 0x783   : > { %v1760_v58 = vadd.f32 %v1759_v57, %v3983_v47  ;;  %v3308_v59 = vpop.f32.mrb[25].mxu0  ;;  %v3109_v57 = vld [vmem:[%s4327_s3] ss:$0 sm:$0xff]  ;;  %s4332_s3 = sld [smem:[#allocation7_spill]] }
 0x784   : > { %v1762_v60 = vpop.f32.mrb[26].mxu0 }
 0x785   : > { %v3309_v61 = vpop.f32.mrb[27].mxu0  ;;  %v1765_v62 = vsel %vm1242_vm2, %v1760_v58, -inf }
 0x786   : > { %1766 = vmax.xlane.f32.xlu1 %v1765_v62 }
 0x813   : > { %v1767_v2 = vpop.xlane.xlu1 %1766 }
 0x814   : > { %v1768_v3 = vsub.f32 %v1760_v58, %v1767_v2 }
 0x816   : > { %v1769_v4 = vmul.f32 1.442695, %v1768_v3 }
 0x818   : > { %3572 = vpow2.f32 %v1769_v4 }
 0x822   : > { %v3573_v5 = vpop.eup %3572 }
 0x823   : > { %v1771_v47 = vsel %vm1242_vm2, %v3573_v5, 0.0 }
 0x824   : > { %1772 = vadd.xlane.f32.xlu1 %v1771_v47 }
 0x835   : > { %1777 = vrot.lane.b32.xlu1 %v3973_v44, %s4285_s10  ;;  %s4324_s10 = sld [smem:[#allocation12_spill]] }
 0x83b   : > { %v3108_v49 = vld [vmem:[%s4324_s10] ss:$0 sm:$0xff]  ;;  %s4335_s10 = sld [smem:[#allocation18_spill]] }
 0x841   : > { %v1918_v40 = vld [vmem:[%s4335_s10] sm:$0xf] }
 0x84d   : > { %v1503_v7 = vpop.f32.mrb[12].mxu1 }
 0x84e   : > { %v1509_v8 = vpack.c.bf16 %v1503_v7, %v1503_v7  ;;  %v3278_v10 = vpop.f32.mrb[13].mxu1 }
 0x84f   : > { %v1506_v12 = vpop.f32.mrb[14].mxu1  ;;  %v3551_v10 = vld [vmem:[%s4330_s5 + $0x8] sm:$0xff]  }
 0x850   : > { %v3279_v13 = vpop.f32.mrb[15].mxu1  ;;  %3283 = vmatmul.mubr.msk.bf16.vlgmr.msra.gmra.mrb[8].mxu1 %vm1242_vm2, %v1509_v8  ;;  %v3550_v8 = vld [vmem:[%s4330_s5] sm:$0xff]  }
 0x851   : > { %3299 = vmatpush3.bf16.msra.mxu1 %v1672_v11  ;;  %3300 = vmatprep.mubr.msk.bf16.mxu1 %vm3695_vm1, %v3694_v9  ;;  %v4122_v11 = vld [vmem:[%s4332_s3] sm:$0xff]  ;;  %s4338_s3 = sld [smem:[#allocation22_spill]] }
 0x852   : > { %3310 = vmatprep.subr.bf16.mxu1 %v3694_v9 }
 0x85c   : > { %3301 = vmatmul.mubr.msk.bf16.vlgmr.msra.gmra.mrb[8].mxu1 %vm1242_vm2, %v1667_v14 }
 0x85d   : > { %3312 = vmatprep.mubr.msk.bf16.mxu1 %vm3695_vm1, %v3694_v9 }
 0x8b1   : > { %v1773_v44 = vpop.xlane.xlu1 %1772 }
 0x8b2   : > { %3574 = vrcp.f32 %v1773_v44 }
 0x8b5   : > { %v1778_v15 = vpop.permute.xlu1 %1777 }
 0x8b6   : > { %v1783_v16 = vsel %vm1304_vm3, %v1778_v15, 0 }
 0x8b7   : > { %3311 = vmatpush3.bf16.msra.mxu1 %v1783_v16 }
 0x8b8   : > { %3316 = vmatprep.subr.bf16.mxu1 %v3694_v9 }
 0x8bc   : > { %v3575_v17 = vpop.eup %3574 }
 0x8bd   : > { %v1775_v19 = vmul.f32 %v3575_v17, %v3573_v5 }
 0x8bf   : > { %v1776_v20 = vpack.c.bf16 %v1775_v19, %v1775_v19 }
 0x8c1   : > { %3313 = vmatmul.mubr.msk.bf16.vlgmr.msra.gmra.mrb[16].mxu1 %vm1242_vm2, %v1776_v20 }
 0x8c2   : > { %3317 = vmatpush3.bf16.msra.mxu1 %v1830_v21  ;;  %3318 = vmatprep.mubr.msk.bf16.mxu1 %vm3695_vm1, %v3694_v9 }
 0x8c3   : > { %3338 = vmatprep.subr.bf16.mxu1 %v3694_v9 }
 0x994   : > { %v1819_v22 = vpop.f32.mrb[16].mxu1 }
 0x995   : > { %v1825_v23 = vpack.c.bf16 %v1819_v22, %v1819_v22  ;;  %v3314_v24 = vpop.f32.mrb[17].mxu1 }
 0x996   : > { %v1822_v25 = vpop.f32.mrb[18].mxu1 }
 0x997   : > { %v3315_v26 = vpop.f32.mrb[19].mxu1  ;;  %3319 = vmatmul.mubr.msk.bf16.vlgmr.msra.gmra.mrb[8].mxu1 %vm1242_vm2, %v1825_v23 }
 0x998   : > { %3342 = vmatprep.mubr.msk.bf16.mxu1 %vm3695_vm1, %v3694_v9  ;;  %3339 = vmatpush3.bf16.msra.mxu1 %v3550_v8  ;;  %v3117_v26 = vld [vmem:[%s4334_s8] ss:$0 sm:$0xff]  ;;  %s4340_s8 = sld [smem:[#allocation21_spill]] }
 0x999   : > { %3340 = vmatprep.subr.bf16.mxu1 %v3694_v9 }
 0x99c   : > { %3341 = vmatpush3.bf16.msra.mxu1 %v3551_v10 }
 0x99d   : > { %3352 = vmatprep.subr.bf16.mxu1 %v3694_v9 }
 0x99f   : > { %3343 = vmatmul.mubr.msk.bf16.vlgmr.msra.gmra.mrb[20].mxu1 %vm1004_vm0, %v1924_v56 }
 0x9a0   : > { %3354 = vmatprep.mubr.msk.bf16.mxu1 %vm3695_vm1, %v3694_v9 }
 0xa6a   : > { %v1866_v29 = vpop.f32.mrb[8].mxu1 }
 0xa6b   : > { %v4072_v30 = vadd.f32 %v1866_v29, %v1238_v28  ;;  %v3320_v31 = vpop.f32.mrb[9].mxu1 }
 0xa6c   : > { %v1869_v33 = vpop.f32.mrb[10].mxu1 }
 0xa6d   : > { %v3321_v34 = vpop.f32.mrb[11].mxu1  ;;  %v1875_v35 = vsel %vm1004_vm0, %v4072_v30, 0.0 }
 0xa6e   : > { %1876 = vadd.xlane.f32.xlu0 %v1875_v35 }
 0xa72   : > { %v2099_v17 = vpop.f32.mrb[20].mxu1 }
 0xa73   : > { %v3344_v18 = vpop.f32.mrb[21].mxu1  ;;  %v2100_v27 = vadd.f32 %v3117_v26, %v2099_v17 }
 0xa74   : > { %v2102_v19 = vpop.f32.mrb[22].mxu1 }
 0xa75   : > { %v3345_v20 = vpop.f32.mrb[23].mxu1  ;;  %v4128_v28 = vpack.c.bf16 %v2100_v27, %v2100_v27 }
 0xa77   : > { %v2177_v29 = vsel %vm1304_vm3, %v4128_v28, 0 }
 0xa78   : > { %3353 = vmatpush3.bf16.msra.mxu1 %v2177_v29 }
 0xa79   : > { %3364 = vmatprep.subr.bf16.mxu1 %v3694_v9 }
 0xafb   : > { %v1877_v36 = vpop.xlane.xlu0 %1876 }
 0xafc   : > { %v1878_v37 = vmul.f32 0.03125, %v1877_v36 }
 0xafe   : > { %v1879_v38 = vsub.f32 %v4072_v30, %v1878_v37 }
 0xb00   : > { %v1880_v39 = vmul.f32 %v1879_v38, %v1879_v38 }
 0xb02   : > { %v1881_v0 = vsel %vm1004_vm0, %v1880_v39, 0.0 }
 0xb03   : > { %1882 = vadd.xlane.f32.xlu1 %v1881_v0 }
 0xb90   : > { %v1883_v41 = vpop.xlane.xlu1 %1882 }
 0xb91   : > { %v1884_v42 = vmul.f32 0.03125, %v1883_v41  ;;  %v2224_v41 = vsel %vm1304_vm3, %v1918_v40, 0  ;;  %v1920_v40 = vld [vmem:[%s4335_s10 + $0x8] sm:$0xf] }
 0xb93   : > { %v1885_v43 = vadd.f32 1e-06, %v1884_v42 }
 0xb95   : > { %3576 = vrsqrt.f32 %v1885_v43 }
 0xb9f   : > { %v3577_v45 = vpop.eup %3576 }
 0xba0   : > { %v1887_v48 = vmul.f32 %v3577_v45, %v1879_v38 }
 0xba2   : > { %v1894_v50 = vmul.f32 %v3107_v46, %v1887_v48 }
 0xba4   : > { %v1901_v51 = vadd.f32 %v3108_v49, %v1894_v50 }
 0xba6   : > { %v1923_v53 = vpack.c.bf16 %v1901_v51, %v1901_v51 }
 0xba8   : > { %3327 = vmatmul.mubr.msk.bf16.vlgmr.msra.gmra.mrb[28].mxu0 %vm1004_vm0, %v1923_v53 }
 0xba9   : > { %3331 = vmatpush3.bf16.msra.mxu0 %v3548_v52  ;;  %3334 = vmatprep.mubr.msk.bf16.mxu0 %vm3695_vm1, %v3694_v9 }
 0xbaa   : > { %3332 = vmatprep.subr.bf16.mxu0 %v3694_v9 }
 0xbad   : > { %3333 = vmatpush3.bf16.msra.mxu0 %v3549_v55 }
 0xbae   : > { %3346 = vmatprep.subr.bf16.mxu0 %v3694_v9 }
 0xbb0   : > { %3335 = vmatmul.mubr.msk.bf16.vlgmr.msra.gmra.mrb[32].mxu0 %vm1004_vm0, %v1924_v56 }
 0xbb1   : > { %3348 = vmatprep.mubr.msk.bf16.mxu0 %vm3695_vm1, %v3694_v9 }
 0xc7b   : > { %v1980_v58 = vpop.f32.mrb[28].mxu0 }
 0xc7c   : > { %v1981_v59 = vadd.f32 %v3109_v57, %v1980_v58  ;;  %v3328_v60 = vpop.f32.mrb[29].mxu0 }
 0xc7d   : > { %v1983_v61 = vpop.f32.mrb[30].mxu0 }
 0xc7e   : > { %v4098_v62 = vpack.c.bf16 %v1981_v59, %v1981_v59  ;;  %v3329_v63 = vpop.f32.mrb[31].mxu0 }
 0xc80   : > { %2268 = vrot.lane.b32.xlu1 %v4098_v62, %s4331_s6 }
 0xc83   : > { %v2041_v2 = vpop.f32.mrb[32].mxu0 }
 0xc84   : > { %v2042_v3 = vadd.f32 %v3113_v1, %v2041_v2  ;;  %v3336_v4 = vpop.f32.mrb[33].mxu0 }
 0xc85   : > { %v2044_v5 = vpop.f32.mrb[34].mxu0 }
 0xc86   : > { %v4103_v47 = vpack.c.bf16 %v2042_v3, %v2042_v3  ;;  %v3337_v6 = vpop.f32.mrb[35].mxu0 }
 0xc88   : > { %2430 = vrot.lane.b32.xlu1 %v4103_v47, %s4333_s26  ;;  %v2119_v7 = vsel %vm1242_vm2, %v4103_v47, 0 }
 0xc89   : > { %3347 = vmatpush3.bf16.xpose.msra.mxu0 %v2119_v7 }
 0xc8a   : > { %3358 = vmatprep.subr.bf16.mxu0 %v3694_v9 }
 0xc90   : > { %3349 = vmatmul.mubr.msk.bf16.vlgmr.msra.gmra.mrb[36].mxu0 %vm1242_vm2, %v4098_v62 }
 0xc91   : > { %3360 = vmatprep.mubr.msk.bf16.mxu0 %vm3695_vm1, %v3694_v9  ;;  %3359 = vmatpush3.bf16.msra.mxu0 %v2224_v41 }
 0xc92   : > { %3370 = vmatprep.subr.bf16.mxu0 %v3694_v9 }
 0xcf2   : > { %v2269_v38 = vpop.permute.xlu1 %2268 }
 0xcfa   : > { %v2431_v39 = vpop.permute.xlu1 %2430 }
 0xcfb   : > { %v2436_v0 = vsel %vm1242_vm2, %v2431_v39, 0 }
 0xd63   : > { %v2155_v12 = vpop.f32.mrb[36].mxu0 }
 0xd64   : > { %v2156_v13 = vadd.f32 %v2155_v12, %v4122_v11  ;;  %v3350_v14 = vpop.f32.mrb[37].mxu0 }
 0xd65   : > { %v2158_v44 = vpop.f32.mrb[38].mxu0 }
 0xd66   : > { %v3351_v15 = vpop.f32.mrb[39].mxu0  ;;  %v2161_v16 = vsel %vm1242_vm2, %v2156_v13, -inf }
 0xd67   : > { %2162 = vmax.xlane.f32.xlu0 %v2161_v16 }
 0xdf4   : > { %v2163_v21 = vpop.xlane.xlu0 %2162 }
 0xdf5   : > { %v2164_v22 = vsub.f32 %v2156_v13, %v2163_v21 }
 0xdf7   : > { %v2165_v23 = vmul.f32 1.442695, %v2164_v22 }
 0xdf9   : > { %3578 = vpow2.f32 %v2165_v23 }
 0xe03   : > { %v3579_v24 = vpop.eup %3578 }
 0xe04   : > { %v2167_v25 = vsel %vm1242_vm2, %v3579_v24, 0.0 }
 0xe05   : > { %2168 = vadd.xlane.f32.xlu0 %v2167_v25 }
 0xe1b   : > { %2271 = vrot.lane.b32.xlu0 %v4103_v47, %s4331_s6 }
 0xe1f   : > { %2428 = vrot.lane.b32.xlu0 %v4098_v62, %s4333_s26 }
 0xe92   : > { %v2169_v31 = vpop.xlane.xlu0 %2168 }
 0xe93   : > { %3580 = vrcp.f32 %v2169_v31 }
 0xe96   : > { %v2272_v35 = vpop.permute.xlu0 %2271 }
 0xe97   : > { %v2277_v37 = vsel %vm1242_vm2, %v2272_v35, 0 }
 0xe9a   : > { %v2429_v32 = vpop.permute.xlu0 %2428 }
 0xe9d   : > { %v3581_v33 = vpop.eup %3580 }
 0xe9e   : > { %v2171_v34 = vmul.f32 %v3581_v33, %v3579_v24 }
 0xea0   : > { %v2172_v36 = vpack.c.bf16 %v2171_v34, %v2171_v34 }
 0xea2   : > { %3355 = vmatmul.mubr.msk.bf16.vlgmr.msra.gmra.mrb[24].mxu1 %vm1242_vm2, %v2172_v36  ;;  %v1919_v36 = vld [vmem:[%s4335_s10 + $0x4] sm:$0xf] }
 0xea3   : > { %3365 = vmatpush3.bf16.xpose.msra.mxu1 %v2277_v37  ;;  %3366 = vmatprep.mubr.msk.bf16.mxu1 %vm3695_vm1, %v3694_v9  ;;  %v2385_v37 = vsel %vm1304_vm3, %v1919_v36, 0 }
 0xea4   : > { %3382 = vmatprep.subr.bf16.mxu1 %v3694_v9 }
 0xeaa   : > { %3367 = vmatmul.mubr.msk.bf16.vlgmr.msra.gmra.mrb[28].mxu1 %vm1242_vm2, %v2269_v38 }
 0xeab   : > { %3383 = vmatpush3.bf16.xpose.msra.mxu1 %v2436_v0  ;;  %3384 = vmatprep.mubr.msk.bf16.mxu1 %vm3695_vm1, %v3694_v9 }
 0xeac   : > { %3388 = vmatprep.subr.bf16.mxu1 %v3694_v9 }
 0xeb2   : > { %3385 = vmatmul.mubr.msk.bf16.vlgmr.msra.gmra.mrb[32].mxu1 %vm1242_vm2, %v2429_v32 }
 0xeb3   : > { %3390 = vmatprep.mubr.msk.bf16.mxu1 %vm3695_vm1, %v3694_v9 }
 0xf75   : > { %v2213_v42 = vpop.f32.mrb[24].mxu1 }
 0xf76   : > { %v2219_v43 = vpack.c.bf16 %v2213_v42, %v2213_v42  ;;  %v3356_v45 = vpop.f32.mrb[25].mxu1 }
 0xf77   : > { %v2216_v46 = vpop.f32.mrb[26].mxu1  ;;  %v2543_v45 = vsel %vm1304_vm3, %v1920_v40, 0 }
 0xf78   : > { %v3357_v48 = vpop.f32.mrb[27].mxu1  ;;  %3361 = vmatmul.mubr.msk.bf16.vlgmr.msra.gmra.mrb[40].mxu0 %vm1242_vm2, %v2219_v43 }
 0xf79   : > { %3372 = vmatprep.mubr.msk.bf16.mxu0 %vm3695_vm1, %v3694_v9 }
 0xf7d   : > { %v2313_v49 = vpop.f32.mrb[28].mxu1 }
 0xf7e   : > { %v3368_v50 = vpop.f32.mrb[29].mxu1  ;;  %v2314_v2 = vadd.f32 %v2313_v49, %v4122_v11 }
 0xf7f   : > { %v2316_v51 = vpop.f32.mrb[30].mxu1 }
 0xf80   : > { %v3369_v52 = vpop.f32.mrb[31].mxu1  ;;  %v2319_v3 = vsel %vm1242_vm2, %v2314_v2, -inf }
 0xf85   : > { %v2472_v53 = vpop.f32.mrb[32].mxu1 }
 0xf86   : > { %v2473_v54 = vadd.f32 %v2472_v53, %v4122_v11  ;;  %v3386_v55 = vpop.f32.mrb[33].mxu1  ;;  %v1921_v53 = vld [vmem:[%s4335_s10 + $0xc] sm:$0xf] }
 0xf87   : > { %v2475_v56 = vpop.f32.mrb[34].mxu1 }
 0xf88   : > { %v3387_v57 = vpop.f32.mrb[35].mxu1  ;;  %v2478_v58 = vsel %vm1242_vm2, %v2473_v54, -inf  ;;  %v2701_v56 = vsel %vm1304_vm3, %v1921_v53, 0 }
 0xf89   : > { %2479 = vmax.xlane.f32.xlu1 %v2478_v58 }
 0xf9a   : > { %2588 = vrot.lane.b32.xlu1 %v4103_v47, %s4336_s16 }
 0xf9e   : > { %2586 = vrot.lane.b32.xlu1 %v4098_v62, %s4336_s16 }
0x1016   : > { %v2480_v59 = vpop.xlane.xlu1 %2479 }
0x1017   : > { %v2481_v60 = vsub.f32 %v2473_v54, %v2480_v59 }
0x1019   : > { %v2482_v61 = vmul.f32 1.442695, %v2481_v60 }
0x101a   : > { %v2589_v7 = vpop.permute.xlu1 %2588 }
0x101b   : > { %3582 = vpow2.f32 %v2482_v61  ;;  %v2594_v10 = vsel %vm1242_vm2, %v2589_v7, 0 }
0x101e   : > { %v2587_v12 = vpop.permute.xlu1 %2586 }
0x1025   : > { %v3583_v63 = vpop.eup %3582 }
0x1026   : > { %v2484_v1 = vsel %vm1242_vm2, %v3583_v63, 0.0 }
0x1027   : > { %2485 = vadd.xlane.f32.xlu0 %v2484_v1 }
0x103d   : > { %2490 = vrot.lane.b32.xlu0 %v4128_v28, %s4333_s26  ;;  %s4339_s26 = sld [smem:[#allocation20_spill]] }
0x105c   : > { %2320 = vmax.xlane.f32.xlu0 %v2319_v3 }
0x1072   : > { %2332 = vrot.lane.b32.xlu0 %v4128_v28, %s4331_s6  ;;  %s4337_s6 = sld [smem:[#allocation19_spill]] }
0x10b4   : > { %v2486_v62 = vpop.xlane.xlu0 %2485 }
0x10b5   : > { %3584 = vrcp.f32 %v2486_v62 }
0x10b8   : > { %v2491_v4 = vpop.permute.xlu0 %2490 }
0x10b9   : > { %v2496_v5 = vsel %vm1304_vm3, %v2491_v4, 0 }
0x10ba   : > { %3389 = vmatpush3.bf16.msra.mxu1 %v2496_v5 }
0x10bb   : > { %3400 = vmatprep.subr.bf16.mxu1 %v3694_v9 }
0x10bf   : > { %v3585_v47 = vpop.eup %3584 }
0x10c0   : > { %v2488_v6 = vmul.f32 %v3585_v47, %v3583_v63  ;;  %v3121_v63 = vld [vmem:[%s4337_s6] ss:$0 sm:$0xff]  ;;  %s4342_s6 = sld [smem:[#allocation23_spill]] }
0x10c1   : > { %v2111_v1 = vadd.f32 %v4072_v30, %v3121_v63  ;;  %v3553_v30 = vld [vmem:[%s4338_s3 + $0x8] sm:$0xff]  }
0x10c2   : > { %v2489_v8 = vpack.c.bf16 %v2488_v6, %v2488_v6 }
0x10c4   : > { %3391 = vmatmul.mubr.msk.bf16.vlgmr.msra.gmra.mrb[36].mxu1 %vm1242_vm2, %v2489_v8 }
0x10c5   : > { %3401 = vmatpush3.bf16.xpose.msra.mxu1 %v2594_v10  ;;  %3402 = vmatprep.mubr.msk.bf16.mxu1 %vm3695_vm1, %v3694_v9 }
0x10c6   : > { %3418 = vmatprep.subr.bf16.mxu1 %v3694_v9 }
0x10cc   : > { %3403 = vmatmul.mubr.msk.bf16.vlgmr.msra.gmra.mrb[40].mxu1 %vm1242_vm2, %v2587_v12 }
0x10cd   : > { %3422 = vmatprep.mubr.msk.bf16.mxu1 %vm3695_vm1, %v3694_v9 }
0x10e9   : > { %v2321_v13 = vpop.xlane.xlu0 %2320 }
0x10ea   : > { %v2322_v14 = vsub.f32 %v2314_v2, %v2321_v13  ;;  %v3552_v13 = vld [vmem:[%s4338_s3] sm:$0xff]  }
0x10eb   : > { %3419 = vmatpush3.bf16.msra.mxu1 %v3552_v13 }
0x10ec   : > { %v2323_v44 = vmul.f32 1.442695, %v2322_v14  ;;  %3420 = vmatprep.subr.bf16.mxu1 %v3694_v9 }
0x10ed   : > { %v2333_v15 = vpop.permute.xlu0 %2332 }
0x10ee   : > { %3586 = vpow2.f32 %v2323_v44  ;;  %v2338_v16 = vsel %vm1304_vm3, %v2333_v15, 0 }
0x10ef   : > { %3371 = vmatpush3.bf16.msra.mxu0 %v2338_v16  ;;  %3421 = vmatpush3.bf16.msra.mxu1 %v3553_v30 }
0x10f0   : > { %3376 = vmatprep.subr.bf16.mxu0 %v3694_v9  ;;  %3426 = vmatprep.subr.bf16.mxu1 %v3694_v9 }
0x10f8   : > { %v3587_v17 = vpop.eup %3586 }
0x10f9   : > { %v2325_v18 = vsel %vm1242_vm2, %v3587_v17, 0.0 }
0x10fa   : > { %2326 = vadd.xlane.f32.xlu1 %v2325_v18 }
0x1187   : > { %v2327_v19 = vpop.xlane.xlu1 %2326 }
0x1188   : > { %3588 = vrcp.f32 %v2327_v19  ;;  %v3135_v19 = vld [vmem:[%s4340_s8] ss:$0 sm:$0xff] }
0x1192   : > { %v3589_v20 = vpop.eup %3588 }
0x1193   : > { %v2329_v21 = vmul.f32 %v3589_v20, %v3587_v17  ;;  %v3134_v17 = vld [vmem:[%s4339_s26] ss:$0 sm:$0xff]  ;;  %s988_s26 = sand.u32 1, %s3652_s1  }
0x1194   : > { %s3077_s8 = sshll.u32 %s988_s26, 3  ;;  %s2957_s10 = scalar_lea.sflag [#allocation3], %s988_s26 }
0x1195   : > { %v2330_v22 = vpack.c.bf16 %v2329_v21, %v2329_v21  ;;  %s990_s3 = scalar_lea.vmem [#allocation2], %s3077_s8 }
0x1197   : > { %3373 = vmatmul.mubr.msk.bf16.vlgmr.msra.gmra.mrb[44].mxu0 %vm1242_vm2, %v2330_v22  ;;  %v2532_v23 = vpop.f32.mrb[36].mxu1 }
0x1198   : > { %v3392_v24 = vpop.f32.mrb[37].mxu1  ;;  %3378 = vmatprep.mubr.msk.bf16.mxu0 %vm3695_vm1, %v3694_v9  ;;  %3377 = vmatpush3.bf16.msra.mxu0 %v2385_v37  ;;  %v2538_v49 = vpack.c.bf16 %v2532_v23, %v2532_v23 }
0x1199   : > { %v2535_v25 = vpop.f32.mrb[38].mxu1  ;;  %3394 = vmatprep.subr.bf16.mxu0 %v3694_v9 }
0x119a   : > { %v3393_v26 = vpop.f32.mrb[39].mxu1 }
0x119f   : > { %v2630_v27 = vpop.f32.mrb[40].mxu1 }
0x11a0   : > { %v2631_v29 = vadd.f32 %v2630_v27, %v4122_v11  ;;  %v3404_v31 = vpop.f32.mrb[41].mxu1  ;;  %v3136_v27 = vld [vmem:[%s4342_s6] ss:$0 sm:$0xff]  ;;  %s3149_s6 = sshll.u32 %s3891_s0, 7  ;;  %s3699_s0 = smov [#allocation2]  }
0x11a1   : > { %v2633_v33 = vpop.f32.mrb[42].mxu1  ;;  %s4239_s5 = scalar_lea.hbm %s3868_s20, %s3149_s6  ;;  %s3602_s8 = sshll.u32 %s3699_s0, 4  ;;  %s3603_s8 = int_to_ptr.vmem [resolvable:$false] %s3602_s8 }
0x11a2   : > { %v3405_v34 = vpop.f32.mrb[43].mxu1  ;;  %v2636_v35 = vsel %vm1242_vm2, %v2631_v29, -inf }
0x11a3   : > { %2637 = vmax.xlane.f32.xlu1 %v2636_v35 }
0x1230   : > { %v2638_v38 = vpop.xlane.xlu1 %2637 }
0x1231   : > { %v2639_v39 = vsub.f32 %v2631_v29, %v2638_v38  ;;  %v3140_v38 = vld [vmem:[%s4343_s4] ss:$0 sm:$0xff]  ;;  %s2970_s4 = sshll.u32 %s990_s3, 4  ;;  %s4241_s4 = int_to_ptr.vmem [resolvable:$true] %s2970_s4 }
0x1232   : > { %s3598_s12 = scalar_lea.vmem %s4241_s4, 128  ;;  %p3605_p0 = scmp.lt.s32.totalorder %s4241_s4, %s3603_s8 }
0x1233   : > { %v2640_v0 = vmul.f32 1.442695, %v2639_v39  ;;  %p3599_p11 = scmp.ne.s32.totalorder %s4241_s4, %s3598_s12 }
0x1235   : > { %3590 = vpow2.f32 %v2640_v0  ;;  %p3600_p12 = pnand %p3599_p11, %p3908_p5 }
0x1237   : > { %p3601_p13 = pneg %p3600_p12 }
0x123f   : > { %v3591_v32 = vpop.eup %3590 }
0x1240   : > { %v2642_v11 = vsel %vm1242_vm2, %v3591_v32, 0.0 }
0x1241   : > { %2643 = vadd.xlane.f32.xlu1 %v2642_v11 }
0x1252   : > { %2648 = vrot.lane.b32.xlu1 %v4128_v28, %s4336_s16  ;;  %s4341_s16 = sld [smem:[#allocation24_spill]] }
0x1258   : > { %v3554_v22 = vld [vmem:[%s4341_s16] sm:$0xff]   ;;  %v3555_v24 = vld [vmem:[%s4341_s16 + $0x8] sm:$0xff]   ;;  %v3556_v25 = vld [vmem:[%s4341_s16 + $0x10] sm:$0xff]  }
0x1259   : > { %v3557_v26 = vld [vmem:[%s4341_s16 + $0x18] sm:$0xff]  }
0x126a   : > { %v2374_v41 = vpop.f32.mrb[44].mxu0 }
0x126b   : > { %v2380_v42 = vpack.c.bf16 %v2374_v41, %v2374_v41  ;;  %v3374_v43 = vpop.f32.mrb[45].mxu0 }
0x126c   : > { %v2377_v46 = vpop.f32.mrb[46].mxu0 }
0x126d   : > { %v3375_v48 = vpop.f32.mrb[47].mxu0  ;;  %3379 = vmatmul.mubr.msk.bf16.vlgmr.msra.gmra.mrb[40].mxu0 %vm1242_vm2, %v2380_v42 }
0x126e   : > { %3395 = vmatpush3.bf16.msra.mxu0 %v2543_v45  ;;  %3396 = vmatprep.mubr.msk.bf16.mxu0 %vm3695_vm1, %v3694_v9 }
0x126f   : > { %3406 = vmatprep.subr.bf16.mxu0 %v3694_v9 }
0x1279   : > { %3397 = vmatmul.mubr.msk.bf16.vlgmr.msra.gmra.mrb[40].mxu0 %vm1242_vm2, %v2538_v49 }
0x127a   : > { %3408 = vmatprep.mubr.msk.bf16.mxu0 %vm3695_vm1, %v3694_v9 }
0x12ce   : > { %v2644_v28 = vpop.xlane.xlu1 %2643 }
0x12cf   : > { %3592 = vrcp.f32 %v2644_v28 }
0x12d2   : > { %v2649_v50 = vpop.permute.xlu1 %2648 }
0x12d3   : > { %v2654_v51 = vsel %vm1304_vm3, %v2649_v50, 0 }
0x12d4   : > { %3407 = vmatpush3.bf16.msra.mxu0 %v2654_v51 }
0x12d5   : > { %3412 = vmatprep.subr.bf16.mxu0 %v3694_v9 }
0x12d9   : > { %v3593_v52 = vpop.eup %3592 }
0x12da   : > { %v2646_v54 = vmul.f32 %v3593_v52, %v3591_v32  ;;  %v3146_v52 = vld [vmem:[%s3858_s17] ss:$0 sm:$0xff] }
0x12dc   : > { %v2647_v55 = vpack.c.bf16 %v2646_v54, %v2646_v54  ;;  %v3147_v54 = vld [vmem:[%s4344_s9] ss:$0 sm:$0xff]  ;;  %s3604_s9 = scalar_lea.vmem %s3603_s8, 256 }
0x12dd   : > { %p3606_p1 = scmp.lt.s32.totalorder %s3604_s9, %s3598_s12 }
0x12de   : > { %3409 = vmatmul.mubr.msk.bf16.vlgmr.msra.gmra.mrb[48].mxu0 %vm1242_vm2, %v2647_v55 }
0x12df   : > { %3413 = vmatpush3.bf16.msra.mxu0 %v2701_v56  ;;  %3414 = vmatprep.mubr.msk.bf16.mxu0 %vm3695_vm1, %v3694_v9  ;;  %p3607_p2 = por %p3606_p1, %p3605_p0 }
0x12e1   : > { %p3608_p3 = pnand %p3607_p2, %p3601_p13 }
0x13b1   : > { %v2690_v57 = vpop.f32.mrb[48].mxu0 }
0x13b2   : > { %v2696_v58 = vpack.c.bf16 %v2690_v57, %v2690_v57  ;;  %v3410_v59 = vpop.f32.mrb[49].mxu0 }
0x13b3   : > { %v2693_v60 = vpop.f32.mrb[50].mxu0 }
0x13b4   : > { %v3411_v61 = vpop.f32.mrb[51].mxu0  ;;  %3415 = vmatmul.mubr.msk.bf16.vlgmr.msra.gmra.mrb[40].mxu0 %vm1242_vm2, %v2696_v58 }
0x1487   : > { %v2737_v2 = vpop.f32.mrb[40].mxu0 }
0x1488   : > { %v3439_v3 = vadd.f32 %v2737_v2, %v2111_v1  ;;  %v3416_v62 = vpop.f32.mrb[41].mxu0 }
0x1489   : > { %v2740_v4 = vpop.f32.mrb[42].mxu0 }
0x148a   : > { %v3417_v5 = vpop.f32.mrb[43].mxu0  ;;  %v2746_v47 = vsel %vm1004_vm0, %v3439_v3, 0.0 }
0x148b   : > { %2747 = vadd.xlane.f32.xlu0 %v2746_v47 }
0x1518   : > { %v2748_v6 = vpop.xlane.xlu0 %2747 }
0x1519   : > { %v2749_v7 = vmul.f32 0.03125, %v2748_v6 }
0x151b   : > { %v2750_v8 = vsub.f32 %v3439_v3, %v2749_v7 }
0x151d   : > { %v2751_v10 = vmul.f32 %v2750_v8, %v2750_v8 }
0x151f   : > { %v2752_v12 = vsel %vm1004_vm0, %v2751_v10, 0.0 }
0x1520   : > { %2753 = vadd.xlane.f32.xlu1 %v2752_v12 }
0x15ad   : > { %v2754_v14 = vpop.xlane.xlu1 %2753 }
0x15ae   : > { %v2755_v44 = vmul.f32 0.03125, %v2754_v14 }
0x15b0   : > { %v2756_v15 = vadd.f32 1e-06, %v2755_v44 }
0x15b2   : > { %3594 = vrsqrt.f32 %v2756_v15 }
0x15bc   : > { %v3595_v16 = vpop.eup %3594 }
0x15bd   : > { %v2758_v18 = vmul.f32 %v3595_v16, %v2750_v8 }
0x15bf   : > { %v2765_v20 = vmul.f32 %v3134_v17, %v2758_v18 }
0x15c1   : > { %v2772_v21 = vadd.f32 %v3135_v19, %v2765_v20 }
0x15c3   : > { %v2773_v23 = vpack.c.bf16 %v2772_v21, %v2772_v21 }
0x15c5   : > { %3423 = vmatmul.mubr.msk.bf16.vlgmr.msra.gmra.mrb[44].mxu1 %vm1004_vm0, %v2773_v23 }
0x15c6   : > { %3427 = vmatpush3.bf16.msra.mxu1 %v3554_v22  ;;  %3434 = vmatprep.mubr.msk.bf16.mxu1 %vm3695_vm1, %v3694_v9 }
0x15c7   : > { %3428 = vmatprep.subr.bf16.mxu1 %v3694_v9 }
0x15ca   : > { %3429 = vmatpush3.bf16.msra.mxu1 %v3555_v24 }
0x15cb   : > { %3430 = vmatprep.subr.bf16.mxu1 %v3694_v9 }
0x15ce   : > { %3431 = vmatpush3.bf16.msra.mxu1 %v3556_v25 }
0x15cf   : > { %3432 = vmatprep.subr.bf16.mxu1 %v3694_v9 }
0x15d2   : > { %3433 = vmatpush3.bf16.msra.mxu1 %v3557_v26 }
0x1698   : > { %v2834_v29 = vpop.f32.mrb[44].mxu1 }
0x1699   : > { %v2835_v31 = vadd.f32 %v3136_v27, %v2834_v29  ;;  %v3424_v33 = vpop.f32.mrb[45].mxu1 }
0x169a   : > { %v2837_v34 = vpop.f32.mrb[46].mxu1 }
0x169b   : > { %v2840_v35 = vmax.f32 %v2835_v31, 0.0  ;;  %v3425_v36 = vpop.f32.mrb[47].mxu1 }
0x169d   : > { %v2841_v37 = vpack.c.bf16 %v2840_v35, %v2840_v35 }
0x169f   : > { %3435 = vmatmul.mubr.msk.bf16.vlgmr.msra.gmra.mrb[48].mxu1 %vm2881_vm4, %v2841_v37 }
0x1772   : > { %v2919_v39 = vpop.f32.mrb[48].mxu1 }
0x1773   : > { %v2920_v0 = vadd.f32 %v3140_v38, %v2919_v39  ;;  %v3436_v32 = vpop.f32.mrb[49].mxu1 }
0x1774   : > { %v2922_v11 = vpop.f32.mrb[50].mxu1 }
0x1775   : > { %v3437_v40 = vpop.f32.mrb[51].mxu1  ;;  %v2925_v9 = vadd.f32 %v3439_v3, %v2920_v0 }
0x1777   : > { %v2928_v41 = vsel %vm1004_vm0, %v2925_v9, 0.0 }
0x1778   : > { %2929 = vadd.xlane.f32.xlu0 %v2928_v41 }
0x1805   : > { %v2930_v42 = vpop.xlane.xlu0 %2929 }
0x1806   : > { %v2931_v43 = vmul.f32 0.03125, %v2930_v42 }
0x1808   : > { %v2932_v45 = vsub.f32 %v2925_v9, %v2931_v43 }
0x180a   : > { %v2933_v46 = vmul.f32 %v2932_v45, %v2932_v45 }
0x180c   : > { %v2934_v48 = vsel %vm1004_vm0, %v2933_v46, 0.0 }
0x180d   : > { %2935 = vadd.xlane.f32.xlu0 %v2934_v48 }
0x189a   : > { %v2936_v49 = vpop.xlane.xlu0 %2935 }
0x189b   : > { %v2937_v28 = vmul.f32 0.03125, %v2936_v49 }
0x189d   : > { %v2938_v50 = vadd.f32 1e-06, %v2937_v28 }
0x189f   : > { %3596 = vrsqrt.f32 %v2938_v50 }
0x18a9   : > { %v3597_v51 = vpop.eup %3596 }
0x18aa   : > { %v2940_v53 = vmul.f32 %v3597_v51, %v2932_v45 }
0x18ac   : > { %v2947_v55 = vmul.f32 %v3146_v52, %v2940_v53 }
0x18ae   : > { %v2954_v56 = vadd.f32 %v3147_v54, %v2947_v55 }
0x18b0   : > { %2955 = vst.msk [vmem:[%s990_s3] sm:$0xff] %vm1004_vm0, %v2954_v56 }
0x18b1   : > { %3611 = shalt.err (!%p3608_p3)
}
0x18b2   : > { %s3612_s3 = scalar_lea.hbm %s4239_s5, 128  ;;  %s3616_s26 = scalar_lea.hbm %s3868_s20, 256 }
0x18b3   : > { %p3613_p4 = scmp.ne.s32.totalorder %s4239_s5, %s3612_s3  ;;  %p3617_p9 = scmp.lt.u32.totalorder %s4239_s5, %s3868_s20 }
0x18b4   : > { %p3618_p10 = scmp.lt.u32.totalorder %s3616_s26, %s3612_s3  ;;  %p3620_p12 = scmp.lt.u32.totalorder %s3612_s3, %s4239_s5 }
0x18b5   : > { %p3614_p7 = pnand %p3613_p4, %p3908_p5 }
0x18b6   : > { %p3619_p11 = por %p3618_p10, %p3617_p9 }
0x18b7   : > { %p3615_p8 = pneg %p3614_p7 }
0x18b8   : > { %p3621_p0 = por %p3620_p12, %p3619_p11 }
0x18ba   : > { %p3622_p13 = pnand %p3621_p0, %p3615_p8 }
0x18bc   : > { %3625 = shalt.err (!%p3622_p13)
}
0x18bd   : > { %3464 = dma.vmem_to_hbm [thread:$0]  (%p3908_p5), %s4241_s4, 128, %s4239_s5, %s2957_s10  }
0x18be PF: > { %p3470_p1 = scmp.ge.s32.totalorder %s3660_s7, 2  ;;  %s2982_s9 = sand.u32 1, %s3648_s28  }
0x18bf   : > { %s2983_s12 = scalar_lea.sflag [#allocation3], %s2982_s9 }
0x18c0   : > { %p3467_p2 = pnand %p3470_p1, %p3912_p6 }
0x18c2   : > { %3643 = dma.done.wait (!%p3467_p2), %s2983_s12, 128  }
0x18c3   : > { %3645 = vsyncadd (!%p3467_p2), %s2983_s12, 4294967168  ;;  %p75_p3 = scmp.ge.s32.totalorder %s3895_s11, 4   ;;  %s4345_s28 = smov %s3652_s1 }
0x18c4   : > { %s4346_s1 = smov %s3656_s2  ;;  %s4347_s2 = smov %s3906_s18 }
0x18c5   : > { %s4348_s7 = smov %s3895_s11  ;;  %77 = sbr.rel (!%p75_p3) target bundleno = 64 (0x40), region = 218 }
0x18cc   :  { %2988 = vsyncpa [#allocation3], 1 }
0x18cd   :  { %2990 = vsyncpa [#allocation3 + $0x1], 1 }

</bundles_post_ra>
